<compile_context>
chip_gen: v7x
topology: tpu7x:2x2x1
jax: 0.10.0
libtpu: 0.0.40
codegen_flags: <defaults>
</compile_context>

<pallas_src>
import functools
import math

import jax
import jax.numpy as jnp
import numpy as np
from jax import lax
from jax.experimental import pallas as pl
from jax.experimental.pallas import tpu as pltpu

NEG_SLOPE = 0.01  # nn.LeakyReLU default negative_slope


def _leaky_relu(x):
    return jnp.where(x >= 0, x, NEG_SLOPE * x)


# --------------------------------------------------------------------------
# fused kernel (batch on lanes):
#   h_ref   (TB, H)            batch tile, features on lanes
#   wfc_ref (KK*16, H)         site-major rows (row = s*16 + c), mxu dtype
#   bfc_ref (KK*16, 1)         f32
#   w1_ref  (KK*32, KK*16)     block-diagonal conv1, mxu dtype
#   w2_ref  (KK*32, KK*32)     block-diagonal conv2, mxu dtype
#   w3_ref  (n_ch*KK, KK*32)   block-diagonal conv3, rows channel-major, mxu dtype
#   b*_ref  (rows, 1)          f32
#   o_ref   (n_ch*KK, TB)      f32, lane-dense in batch
# --------------------------------------------------------------------------
def _fused_kernel(h_ref, wfc_ref, bfc_ref, w1_ref, b1_ref, w2_ref, b2_ref,
                  w3_ref, b3_ref, o_ref, *, mxu_dtype):
    f32 = jnp.float32

    # fc: (KK*16, H) x (TB, H)^T -> (KK*16, TB); batch stays on the lane axis.
    fc = lax.dot_general(
        wfc_ref[...], h_ref[...],
        dimension_numbers=(((1,), (1,)), ((), ())),
        preferred_element_type=f32)
    y = _leaky_relu(fc + bfc_ref[...])                           # f32 epilogue

    # Three block-diagonal 1x1-conv matmuls (all K*K sites at once).
    y = _leaky_relu(jnp.dot(w1_ref[...], y.astype(mxu_dtype),
                            preferred_element_type=f32) + b1_ref[...])
    y = _leaky_relu(jnp.dot(w2_ref[...], y.astype(mxu_dtype),
                            preferred_element_type=f32) + b2_ref[...])
    y = jnp.dot(w3_ref[...], y.astype(mxu_dtype),
                preferred_element_type=f32) + b3_ref[...]

    o_ref[...] = y                                               # one dense slab store


# --------------------------------------------------------------------------
# host-side weight re-layouts (tiny; traced once under jit)
# --------------------------------------------------------------------------
def _prepare_weights(params, K, n_channels, mxu_dtype):
    mid1, mid3 = 16, 32
    KK = K * K
    f32 = jnp.float32

    wfc, bfc = params["fc"]        # (16*K*K, H), (16*K*K,)
    w1, b1 = params["conv1"]       # (32, 16, 1, 1), (32,)
    w2, b2 = params["conv2"]       # (32, 32, 1, 1), (32,)
    w3, b3 = params["conv3"]       # (n_ch, 32, 1, 1), (n_ch,)

    # fc rows: PyTorch order (c*KK + s) -> site-major (s*16 + c)
    H = wfc.shape[1]
    wfc_site = (wfc.astype(f32).reshape(mid1, KK, H)
                .transpose(1, 0, 2).reshape(KK * mid1, H)).astype(mxu_dtype)
    bfc_site = bfc.astype(f32).reshape(mid1, KK).T.reshape(KK * mid1, 1)

    eye = jnp.eye(KK, dtype=f32)
    w1m = w1[:, :, 0, 0].astype(f32)
    w2m = w2[:, :, 0, 0].astype(f32)
    w3m = w3[:, :, 0, 0].astype(f32)

    w1_bd = jnp.kron(eye, w1m).astype(mxu_dtype)                 # (KK*32, KK*16)
    w2_bd = jnp.kron(eye, w2m).astype(mxu_dtype)                 # (KK*32, KK*32)
    # conv3: site-major block-diag, then permute rows to channel-major (c*KK + s)
    w3_bd = jnp.kron(eye, w3m)                                   # rows = s*n_ch + c
    w3_bd = (w3_bd.reshape(KK, n_channels, KK * mid3)
             .transpose(1, 0, 2).reshape(n_channels * KK, KK * mid3)
             .astype(mxu_dtype))

    b1_bd = jnp.tile(b1.astype(f32), KK)[:, None]                # (KK*32, 1)
    b2_bd = jnp.tile(b2.astype(f32), KK)[:, None]                # (KK*32, 1)
    b3_bd = jnp.repeat(b3.astype(f32), KK)[:, None]              # (n_ch*KK, 1) channel-major
    return wfc_site, bfc_site, w1_bd, b1_bd, w2_bd, b2_bd, w3_bd, b3_bd


def _pick_batch_tile(b_pad):
    """b_pad is a multiple of 128.  Prefer >= 2 grid steps (v7x has 2 TCs)."""
    for tb in (2048, 1024, 512, 256, 128):
        if b_pad % tb == 0 and b_pad // tb >= 2:
            return tb
    return min(b_pad, 2048)   # b_pad == 128: single full-width block


# --------------------------------------------------------------------------
# public wrapper
# --------------------------------------------------------------------------
@functools.partial(jax.jit, static_argnames=("kernel_size", "n_channels", "use_bf16"))
def hyper_conv2d_kernel_net(h, params, *, kernel_size, n_channels, use_bf16=False):
    """Forward pass. h: (B, h_elements) -> (B, n_channels, K, K) (NCHW)."""
    B, H = h.shape
    K = kernel_size
    KK = K * K
    f32 = jnp.float32
    mxu_dtype = jnp.bfloat16 if use_bf16 else f32   # bf16 = fast MXU path on v6e/v7x

    (wfc_site, bfc_site, w1_bd, b1_bd,
     w2_bd, b2_bd, w3_bd, b3_bd) = _prepare_weights(params, K, n_channels, mxu_dtype)

    # lane-dense batch: pad B up to a multiple of 128
    B_pad = ((B + 127) // 128) * 128
    h_p = h.astype(mxu_dtype)
    if B_pad != B:
        h_p = jnp.pad(h_p, ((0, B_pad - B), (0, 0)))

    TB = _pick_batch_tile(B_pad)
    grid = (B_pad // TB,)
    n_rows = n_channels * KK

    kernel = functools.partial(_fused_kernel, mxu_dtype=mxu_dtype)

    def resident():
        # whole array resident in VMEM for the entire call (weights / biases)
        return pl.BlockSpec(memory_space=pltpu.MemorySpace.VMEM)

    out_t = pl.pallas_call(
        kernel,
        out_shape=jax.ShapeDtypeStruct((n_rows, B_pad), f32),
        grid=grid,
        in_specs=[
            pl.BlockSpec((TB, H), lambda i: (i, 0)),   # batch tile of h
            resident(),   # wfc_site
            resident(),   # bfc_site
            resident(),   # w1_bd
            resident(),   # b1_bd
            resident(),   # w2_bd
            resident(),   # b2_bd
            resident(),   # w3_bd
            resident(),   # b3_bd
        ],
        out_specs=pl.BlockSpec((n_rows, TB), lambda i: (0, i)),
        compiler_params=pltpu.CompilerParams(
            dimension_semantics=("parallel",)),
    )(h_p, wfc_site, bfc_site, w1_bd, b1_bd, w2_bd, b2_bd, w3_bd, b3_bd)

    # channel-major rows (c*KK + s): a single 2-D transpose + free reshape -> NCHW
    return out_t[:, :B].T.reshape(B, n_channels, K, K)


# --------------------------------------------------------------------------
# deterministic parameter initialization (mirrors the module's __init__ shapes)
# --------------------------------------------------------------------------
def init_params(key, h_elements, n_channels, kernel_size):
    mid1, mid2, mid3 = 16, 32, 32
    K = kernel_size
    ks = jax.random.split(key, 8)

    def kaiming_normal(k, shape, fan_in):
        std = math.sqrt(2.0 / fan_in)
        return std * jax.random.normal(k, shape, jnp.float32)

    def xavier_normal(k, shape, fan_in, fan_out):
        std = math.sqrt(2.0 / (fan_in + fan_out))
        return std * jax.random.normal(k, shape, jnp.float32)

    def default_bias(k, n, fan_in):
        bound = 1.0 / math.sqrt(fan_in)
        return jax.random.uniform(k, (n,), jnp.float32, -bound, bound)

    M1 = mid1 * K * K
    wfc = kaiming_normal(ks[0], (M1, h_elements), h_elements)
    bfc = default_bias(ks[1], M1, h_elements)
    w1 = kaiming_normal(ks[2], (mid2, mid1, 1, 1), mid1)
    b1 = default_bias(ks[3], mid2, mid1)
    w2 = kaiming_normal(ks[4], (mid3, mid2, 1, 1), mid2)
    b2 = default_bias(ks[5], mid3, mid2)
    w3 = xavier_normal(ks[6], (n_channels, mid3, 1, 1), mid3, n_channels)
    b3 = default_bias(ks[7], n_channels, mid3)
    return {"fc": (wfc, bfc), "conv1": (w1, b1),
            "conv2": (w2, b2), "conv3": (w3, b3)}


# --------------------------------------------------------------------------
# pure-JAX reference (same math, no Pallas).  mxu_dtype=bfloat16 emulates the
# bf16-operand / f32-accumulate fast path for a tight correctness check.
# --------------------------------------------------------------------------
def reference_forward(h, params, *, kernel_size, n_channels, mxu_dtype=jnp.float32):
    f32 = jnp.float32
    B = h.shape[0]
    K = kernel_size
    wfc, bfc = params["fc"]
    w1, b1 = params["conv1"]
    w2, b2 = params["conv2"]
    w3, b3 = params["conv3"]

    def mm(x, w):  # (..., Cin) @ (Cout, Cin)^T with f32 accumulation
        return lax.dot_general(
            x.astype(mxu_dtype), w.astype(mxu_dtype),
            dimension_numbers=(((x.ndim - 1,), (1,)), ((), ())),
            preferred_element_type=f32)

    k = _leaky_relu(mm(h, wfc) + bfc.astype(f32))                  # (B, 16*K*K)
    k = k.reshape(B, 16, K, K)                                     # NCHW

    def conv1x1(x, w, b):
        xc = jnp.moveaxis(x, 1, -1)                                # (B, K, K, C)
        y = mm(xc, w[:, :, 0, 0])                                  # (B, K, K, O)
        return jnp.moveaxis(y, -1, 1) + b.astype(f32)[None, :, None, None]

    k = _leaky_relu(conv1x1(k, w1, b1))
    k = _leaky_relu(conv1x1(k, w2, b2))
    k = conv1x1(k, w3, b3)
    return k                                                       # (B, n_ch, K, K)


if __name__ == "__main__":
    root = jax.random.PRNGKey(0)

    configs = [
        dict(B=2, h_elements=8, n_channels=4, kernel_size=3),      # tiny, padded to 128
        dict(B=300, h_elements=8, n_channels=4, kernel_size=3),    # non-128-multiple batch
        dict(B=1024, h_elements=8, n_channels=4, kernel_size=3),   # multi-step grid
    ]

    for idx, cfg in enumerate(configs):
        kp, kh = jax.random.split(jax.random.fold_in(root, idx))
        params = init_params(kp, cfg["h_elements"], cfg["n_channels"],
                             cfg["kernel_size"])
        h = jax.random.normal(kh, (cfg["B"], cfg["h_elements"]), jnp.float32)
        out_shape = (cfg["B"], cfg["n_channels"], cfg["kernel_size"], cfg["kernel_size"])

        # ---- f32 MXU path (exact vs reference) ----
        out = hyper_conv2d_kernel_net(h, params, kernel_size=cfg["kernel_size"],
                                      n_channels=cfg["n_channels"], use_bf16=False)
        out = jax.block_until_ready(out)
        assert out.shape == out_shape, out.shape
        ref = reference_forward(h, params, kernel_size=cfg["kernel_size"],
                                n_channels=cfg["n_channels"])
        ref = jax.block_until_ready(ref)
        np.testing.assert_allclose(np.asarray(out), np.asarray(ref),
                                   rtol=2e-5, atol=2e-5)

        # ---- bf16-operand MXU path (v6e/v7x fast path), vs bf16-emulating reference ----
        out_bf = hyper_conv2d_kernel_net(h, params, kernel_size=cfg["kernel_size"],
                                         n_channels=cfg["n_channels"], use_bf16=True)
        out_bf = jax.block_until_ready(out_bf)
        assert out_bf.shape == out_shape, out_bf.shape
        ref_bf = reference_forward(h, params, kernel_size=cfg["kernel_size"],
                                   n_channels=cfg["n_channels"],
                                   mxu_dtype=jnp.bfloat16)
        ref_bf = jax.block_until_ready(ref_bf)
        np.testing.assert_allclose(np.asarray(out_bf), np.asarray(ref_bf),
                                   rtol=2e-2, atol=2e-2)

    print("KERNEL_OK")
</pallas_src>

<mosaic_0001>
module attributes {stable_mosaic.version = 11 : i64} {
  func.func @_fused_kernel(%arg0: i32, %arg1: memref<128x8xf32, #tpu.memory_space<vmem>>, %arg2: memref<144x8xf32, #tpu.memory_space<vmem>>, %arg3: memref<144x1xf32, #tpu.memory_space<vmem>>, %arg4: memref<288x144xf32, #tpu.memory_space<vmem>>, %arg5: memref<288x1xf32, #tpu.memory_space<vmem>>, %arg6: memref<288x288xf32, #tpu.memory_space<vmem>>, %arg7: memref<288x1xf32, #tpu.memory_space<vmem>>, %arg8: memref<36x288xf32, #tpu.memory_space<vmem>>, %arg9: memref<36x1xf32, #tpu.memory_space<vmem>>, %arg10: memref<36x128xf32, #tpu.memory_space<vmem>>) attributes {dimension_semantics = [#tpu.dimension_semantics<parallel>], iteration_bounds = array<i64: 1>, scalar_prefetch = 0 : i64, scratch_operands = 0 : i64, tpu.core_type = #tpu.core_type<tc>, window_params = [{transform_indices = @transform_0, window_bounds = array<i64: 128, 8>}, {pipeline_mode = #tpu.pipeline_mode<synchronous>, transform_indices = @transform_1, window_bounds = array<i64: 144, 8>}, {pipeline_mode = #tpu.pipeline_mode<synchronous>, transform_indices = @transform_2, window_bounds = array<i64: 144, 1>}, {pipeline_mode = #tpu.pipeline_mode<synchronous>, transform_indices = @transform_3, window_bounds = array<i64: 288, 144>}, {pipeline_mode = #tpu.pipeline_mode<synchronous>, transform_indices = @transform_4, window_bounds = array<i64: 288, 1>}, {pipeline_mode = #tpu.pipeline_mode<synchronous>, transform_indices = @transform_5, window_bounds = array<i64: 288, 288>}, {pipeline_mode = #tpu.pipeline_mode<synchronous>, transform_indices = @transform_6, window_bounds = array<i64: 288, 1>}, {pipeline_mode = #tpu.pipeline_mode<synchronous>, transform_indices = @transform_7, window_bounds = array<i64: 36, 288>}, {pipeline_mode = #tpu.pipeline_mode<synchronous>, transform_indices = @transform_8, window_bounds = array<i64: 36, 1>}, {transform_indices = @transform_9, window_bounds = array<i64: 36, 128>}]} {
    %c0 = arith.constant 0 : index
    %c0_0 = arith.constant 0 : index
    %0 = vector.load %arg2[%c0, %c0_0] : memref<144x8xf32, #tpu.memory_space<vmem>>, vector<144x8xf32>
    %c0_1 = arith.constant 0 : index
    %c0_2 = arith.constant 0 : index
    %1 = vector.load %arg1[%c0_1, %c0_2] : memref<128x8xf32, #tpu.memory_space<vmem>>, vector<128x8xf32>
    %cst = arith.constant dense<0.000000e+00> : vector<144x128xf32>
    %2 = tpu.matmul %0, %1, %cst {dimension_numbers = #tpu.dot_dimension_numbers<[1], [1], [0], [0], [0, 0, 1, 0], [], []>} : vector<144x8xf32>, vector<128x8xf32>, vector<144x128xf32> -> vector<144x128xf32>
    %c0_3 = arith.constant 0 : index
    %c0_4 = arith.constant 0 : index
    %3 = vector.load %arg3[%c0_3, %c0_4] : memref<144x1xf32, #tpu.memory_space<vmem>>, vector<144x1xf32>
    %4 = vector.broadcast %3 : vector<144x1xf32> to vector<144x128xf32>
    %5 = arith.addf %2, %4 : vector<144x128xf32>
    %cst_5 = arith.constant 0.000000e+00 : f32
    %6 = vector.broadcast %cst_5 : f32 to vector<144x128xf32>
    %7 = arith.cmpf oge, %5, %6 : vector<144x128xf32>
    %cst_6 = arith.constant 0.00999999977 : f32
    %8 = vector.broadcast %cst_6 : f32 to vector<144x128xf32>
    %9 = arith.mulf %8, %5 : vector<144x128xf32>
    %10 = arith.select %7, %5, %9 : vector<144x128xi1>, vector<144x128xf32>
    %c0_7 = arith.constant 0 : index
    %c0_8 = arith.constant 0 : index
    %11 = vector.load %arg4[%c0_7, %c0_8] : memref<288x144xf32, #tpu.memory_space<vmem>>, vector<288x144xf32>
    %cst_9 = arith.constant dense<0.000000e+00> : vector<288x128xf32>
    %12 = tpu.matmul %11, %10, %cst_9 {dimension_numbers = #tpu.dot_dimension_numbers<[1], [0], [0], [1], [0, 0, 1, 1], [], []>} : vector<288x144xf32>, vector<144x128xf32>, vector<288x128xf32> -> vector<288x128xf32>
    %c0_10 = arith.constant 0 : index
    %c0_11 = arith.constant 0 : index
    %13 = vector.load %arg5[%c0_10, %c0_11] : memref<288x1xf32, #tpu.memory_space<vmem>>, vector<288x1xf32>
    %14 = vector.broadcast %13 : vector<288x1xf32> to vector<288x128xf32>
    %15 = arith.addf %12, %14 : vector<288x128xf32>
    %cst_12 = arith.constant 0.000000e+00 : f32
    %16 = vector.broadcast %cst_12 : f32 to vector<288x128xf32>
    %17 = arith.cmpf oge, %15, %16 : vector<288x128xf32>
    %cst_13 = arith.constant 0.00999999977 : f32
    %18 = vector.broadcast %cst_13 : f32 to vector<288x128xf32>
    %19 = arith.mulf %18, %15 : vector<288x128xf32>
    %20 = arith.select %17, %15, %19 : vector<288x128xi1>, vector<288x128xf32>
    %c0_14 = arith.constant 0 : index
    %c0_15 = arith.constant 0 : index
    %21 = vector.load %arg6[%c0_14, %c0_15] : memref<288x288xf32, #tpu.memory_space<vmem>>, vector<288x288xf32>
    %cst_16 = arith.constant dense<0.000000e+00> : vector<288x128xf32>
    %22 = tpu.matmul %21, %20, %cst_16 {dimension_numbers = #tpu.dot_dimension_numbers<[1], [0], [0], [1], [0, 0, 1, 1], [], []>} : vector<288x288xf32>, vector<288x128xf32>, vector<288x128xf32> -> vector<288x128xf32>
    %c0_17 = arith.constant 0 : index
    %c0_18 = arith.constant 0 : index
    %23 = vector.load %arg7[%c0_17, %c0_18] : memref<288x1xf32, #tpu.memory_space<vmem>>, vector<288x1xf32>
    %24 = vector.broadcast %23 : vector<288x1xf32> to vector<288x128xf32>
    %25 = arith.addf %22, %24 : vector<288x128xf32>
    %cst_19 = arith.constant 0.000000e+00 : f32
    %26 = vector.broadcast %cst_19 : f32 to vector<288x128xf32>
    %27 = arith.cmpf oge, %25, %26 : vector<288x128xf32>
    %cst_20 = arith.constant 0.00999999977 : f32
    %28 = vector.broadcast %cst_20 : f32 to vector<288x128xf32>
    %29 = arith.mulf %28, %25 : vector<288x128xf32>
    %30 = arith.select %27, %25, %29 : vector<288x128xi1>, vector<288x128xf32>
    %c0_21 = arith.constant 0 : index
    %c0_22 = arith.constant 0 : index
    %31 = vector.load %arg8[%c0_21, %c0_22] : memref<36x288xf32, #tpu.memory_space<vmem>>, vector<36x288xf32>
    %cst_23 = arith.constant dense<0.000000e+00> : vector<36x128xf32>
    %32 = tpu.matmul %31, %30, %cst_23 {dimension_numbers = #tpu.dot_dimension_numbers<[1], [0], [0], [1], [0, 0, 1, 1], [], []>} : vector<36x288xf32>, vector<288x128xf32>, vector<36x128xf32> -> vector<36x128xf32>
    %c0_24 = arith.constant 0 : index
    %c0_25 = arith.constant 0 : index
    %33 = vector.load %arg9[%c0_24, %c0_25] : memref<36x1xf32, #tpu.memory_space<vmem>>, vector<36x1xf32>
    %34 = vector.broadcast %33 : vector<36x1xf32> to vector<36x128xf32>
    %35 = arith.addf %32, %34 : vector<36x128xf32>
    %c0_26 = arith.constant 0 : index
    %c0_27 = arith.constant 0 : index
    %36 = vector.load %arg10[%c0_26, %c0_27] : memref<36x128xf32, #tpu.memory_space<vmem>>, vector<36x128xf32>
    tpu.vector_store %arg10[%c0_26, %c0_27], %35 {strides = array<i32>} : memref<36x128xf32, #tpu.memory_space<vmem>>, vector<36x128xf32>,
    return
  }
  func.func @transform_0(%arg0: i32) -> (i32, i32) {
    %c0_i32 = arith.constant 0 : i32
    %c0_i32_0 = arith.constant 0 : i32
    return %arg0, %c0_i32 : i32, i32
  }
  func.func @transform_1(%arg0: i32) -> (i32, i32) {
    %c0_i32 = arith.constant 0 : i32
    %c0_i32_0 = arith.constant 0 : i32
    %c0_i32_1 = arith.constant 0 : i32
    return %c0_i32, %c0_i32_0 : i32, i32
  }
  func.func @transform_2(%arg0: i32) -> (i32, i32) {
    %c0_i32 = arith.constant 0 : i32
    %c0_i32_0 = arith.constant 0 : i32
    %c0_i32_1 = arith.constant 0 : i32
    return %c0_i32, %c0_i32_0 : i32, i32
  }
  func.func @transform_3(%arg0: i32) -> (i32, i32) {
    %c0_i32 = arith.constant 0 : i32
    %c0_i32_0 = arith.constant 0 : i32
    %c0_i32_1 = arith.constant 0 : i32
    return %c0_i32, %c0_i32_0 : i32, i32
  }
  func.func @transform_4(%arg0: i32) -> (i32, i32) {
    %c0_i32 = arith.constant 0 : i32
    %c0_i32_0 = arith.constant 0 : i32
    %c0_i32_1 = arith.constant 0 : i32
    return %c0_i32, %c0_i32_0 : i32, i32
  }
  func.func @transform_5(%arg0: i32) -> (i32, i32) {
    %c0_i32 = arith.constant 0 : i32
    %c0_i32_0 = arith.constant 0 : i32
    %c0_i32_1 = arith.constant 0 : i32
    return %c0_i32, %c0_i32_0 : i32, i32
  }
  func.func @transform_6(%arg0: i32) -> (i32, i32) {
    %c0_i32 = arith.constant 0 : i32
    %c0_i32_0 = arith.constant 0 : i32
    %c0_i32_1 = arith.constant 0 : i32
    return %c0_i32, %c0_i32_0 : i32, i32
  }
  func.func @transform_7(%arg0: i32) -> (i32, i32) {
    %c0_i32 = arith.constant 0 : i32
    %c0_i32_0 = arith.constant 0 : i32
    %c0_i32_1 = arith.constant 0 : i32
    return %c0_i32, %c0_i32_0 : i32, i32
  }
  func.func @transform_8(%arg0: i32) -> (i32, i32) {
    %c0_i32 = arith.constant 0 : i32
    %c0_i32_0 = arith.constant 0 : i32
    %c0_i32_1 = arith.constant 0 : i32
    return %c0_i32, %c0_i32_0 : i32, i32
  }
  func.func @transform_9(%arg0: i32) -> (i32, i32) {
    %c0_i32 = arith.constant 0 : i32
    %c0_i32_0 = arith.constant 0 : i32
    return %c0_i32, %arg0 : i32, i32
  }
}

</mosaic_0001>

<bundles_post_ra>
// kernel: tile.13
= control target key start
LH: loop header
LB: loop body
LE: loop exit
PB: predicated region body
PF: predicated region fallthrough
CT: control target
= control target key end

     0   :  { %s28_s0 = inlined_call_operand.vmem [shape: f32[32], index: 0, kind: input, shape index: {}]   ;;  %s29_s1 = inlined_call_operand.vmem [shape: f32[9,32], index: 1, kind: output, shape index: {}]  }
   0x1   :  { %v4_v0 = vld [vmem:[%s28_s0] ss:$0 sm:$0xff] }
   0x2   :  { %5 = vst [vmem:[%s29_s1] sm:$0xff] %v4_v0  ;;  %8 = vst [vmem:[%s29_s1 + $0x8] sm:$0xff] %v4_v0 }

// kernel: tile.0
= control target key start
LH: loop header
LB: loop body
LE: loop exit
PB: predicated region body
PF: predicated region fallthrough
CT: control target
= control target key end

     0   :  { %vm3_vm0 = vcmask 7168   ;;  %s1211_s8 = smov 126   ;;  %s1212_s9 = smov 127   ;;  %s2544_s0 = inlined_call_operand.vmem [shape: f32[9,32], index: 0, kind: input, shape index: {}]   ;;  %s2545_s1 = inlined_call_operand.vmem [shape: f32[288,1], index: 1, kind: output, shape index: {}]  }
   0x1   :  { %v1255_v0 = vld [vmem:[%s2544_s0] sm:$0xff]   ;;  %v888_v1 = vld [vmem:[%s2544_s0 + $0x8] sm:$0x1]   ;;  %s1213_s3 = smov 125   ;;  %s1214_s6 = smov 124  }
   0x2   :  { %52 = vrot.lane.b32.xlu1 %v1255_v0, %s1211_s8  ;;  %25 = vrot.lane.b32.xlu0 %v1255_v0, %s1212_s9  ;;  %4 = vst.msk [vmem:[%s2545_s1] sm:$0x1] %vm3_vm0, %v1255_v0   ;;  %861 = vst.msk [vmem:[%s2545_s1 + $0x1f] sm:$0x2] %vm3_vm0, %v1255_v0   ;;  %s1216_s12 = smov 122   ;;  %s1217_s15 = smov 121  }
   0x3   :  { %862 = vst.msk [vmem:[%s2545_s1 + $0x3e] sm:$0x4] %vm3_vm0, %v1255_v0   ;;  %863 = vst.msk [vmem:[%s2545_s1 + $0x5d] sm:$0x8] %vm3_vm0, %v1255_v0   ;;  %v878_v2 = vld [vmem:[%s2544_s0 + $0x8] sm:$0x1]  }
   0x4   :  { %864 = vst.msk [vmem:[%s2545_s1 + $0x7c] sm:$0x10] %vm3_vm0, %v1255_v0   ;;  %865 = vst.msk [vmem:[%s2545_s1 + $0x9b] sm:$0x20] %vm3_vm0, %v1255_v0   ;;  %v898_v3 = vld [vmem:[%s2544_s0 + $0x8] sm:$0x1]  }
   0x5   :  { %866 = vst.msk [vmem:[%s2545_s1 + $0xba] sm:$0x40] %vm3_vm0, %v1255_v0   ;;  %867 = vst.msk [vmem:[%s2545_s1 + $0xd9] sm:$0x80] %vm3_vm0, %v1255_v0   ;;  %v908_v4 = vld [vmem:[%s2544_s0 + $0x8] sm:$0x1]  }
   0x6   :  { %73 = vrot.lane.b32.xlu1 %v888_v1, %s1211_s8  ;;  %46 = vrot.lane.b32.xlu0 %v878_v2, %s1212_s9  ;;  %v918_v5 = vld [vmem:[%s2544_s0 + $0x8] sm:$0x1]   ;;  %s1215_s9 = smov 123   ;;  %s1218_s18 = smov 120  }
   0x7   :  { %v928_v6 = vld [vmem:[%s2544_s0 + $0x8] sm:$0x1]   ;;  %s1219_s21 = smov 119   ;;  %s1220_s24 = smov 118  }
   0x8   :  { %v938_v7 = vld [vmem:[%s2544_s0 + $0x8] sm:$0x1]   ;;  %s1221_s27 = smov 117   ;;  %s1222_s30 = smov 116  }
   0x9   :  { %v948_v8 = vld [vmem:[%s2544_s0 + $0x8] sm:$0x1]   ;;  %s1223_s4 = smov 115   ;;  %s1224_s7 = smov 114  }
   0xa   :  { %100 = vrot.lane.b32.xlu1 %v898_v3, %s1213_s3  ;;  %79 = vrot.lane.b32.xlu0 %v1255_v0, %s1213_s3  ;;  %v958_v9 = vld [vmem:[%s2544_s0 + $0x8] sm:$0x1]   ;;  %s1225_s10 = smov 113   ;;  %s1226_s13 = smov 112  }
   0xb   :  { %v968_v10 = vld [vmem:[%s2544_s0 + $0x8] sm:$0x1]   ;;  %s1227_s16 = smov 111   ;;  %s1228_s19 = smov 110  }
   0xc   :  { %v978_v11 = vld [vmem:[%s2544_s0 + $0x8] sm:$0x1]   ;;  %s1229_s22 = smov 109   ;;  %s1230_s25 = smov 108  }
   0xd   :  { %v988_v12 = vld [vmem:[%s2544_s0 + $0x8] sm:$0x1]   ;;  %s1231_s28 = smov 107   ;;  %s1232_s2 = smov 106  }
   0xe   :  { %127 = vrot.lane.b32.xlu1 %v908_v4, %s1214_s6  ;;  %106 = vrot.lane.b32.xlu0 %v1255_v0, %s1214_s6  ;;  %v998_v13 = vld [vmem:[%s2544_s0 + $0x8] sm:$0x1]   ;;  %s1233_s5 = smov 105   ;;  %s1234_s8 = smov 104  }
   0xf   :  { %v1008_v14 = vld [vmem:[%s2544_s0 + $0x8] sm:$0x1]   ;;  %s1235_s11 = smov 103   ;;  %s1236_s14 = smov 102  }
  0x10   :  { %v1018_v15 = vld [vmem:[%s2544_s0 + $0x8] sm:$0x1]   ;;  %s1237_s17 = smov 101  }
  0x11   :  { %v1028_v16 = vld [vmem:[%s2544_s0 + $0x8] sm:$0x1]  }
  0x12   :  { %154 = vrot.lane.b32.xlu1 %v918_v5, %s1215_s9  ;;  %133 = vrot.lane.b32.xlu0 %v1255_v0, %s1215_s9  ;;  %v1038_v17 = vld [vmem:[%s2544_s0 + $0x8] sm:$0x1]  }
  0x13   :  { %v1048_v18 = vld [vmem:[%s2544_s0 + $0x8] sm:$0x1]  }
  0x14   :  { %v1058_v19 = vld [vmem:[%s2544_s0 + $0x8] sm:$0x1]  }
  0x15   :  { %v1068_v20 = vld [vmem:[%s2544_s0 + $0x8] sm:$0x1]  }
  0x16   :  { %181 = vrot.lane.b32.xlu1 %v928_v6, %s1216_s12  ;;  %160 = vrot.lane.b32.xlu0 %v1255_v0, %s1216_s12  ;;  %v1078_v21 = vld [vmem:[%s2544_s0 + $0x8] sm:$0x1]  }
  0x17   :  { %v1088_v22 = vld [vmem:[%s2544_s0 + $0x8] sm:$0x1]  }
  0x18   :  { %v1098_v23 = vld [vmem:[%s2544_s0 + $0x8] sm:$0x1]  }
  0x19   :  { %v1108_v24 = vld [vmem:[%s2544_s0 + $0x8] sm:$0x1]  }
  0x1a   :  { %208 = vrot.lane.b32.xlu1 %v938_v7, %s1217_s15  ;;  %187 = vrot.lane.b32.xlu0 %v1255_v0, %s1217_s15  ;;  %v1118_v25 = vld [vmem:[%s2544_s0 + $0x8] sm:$0x1]  }
  0x1b   :  { %v1128_v26 = vld [vmem:[%s2544_s0 + $0x8] sm:$0x1]  }
  0x1c   :  { %v1138_v27 = vld [vmem:[%s2544_s0 + $0x8] sm:$0x1]  }
  0x1d   :  { %v1148_v28 = vld [vmem:[%s2544_s0 + $0x8] sm:$0x1]  }
  0x1e   :  { %235 = vrot.lane.b32.xlu1 %v948_v8, %s1218_s18  ;;  %214 = vrot.lane.b32.xlu0 %v1255_v0, %s1218_s18  ;;  %v868_v29 = vld [vmem:[%s2544_s0 + $0x8] sm:$0x1]  }
  0x1f   :  { %869 = vst.msk [vmem:[%s2545_s1 + $0x100] sm:$0x1] %vm3_vm0, %v868_v29   ;;  %v1158_v30 = vld [vmem:[%s2544_s0 + $0x8] sm:$0x1]  }
  0x20   :  { %v1168_v31 = vld [vmem:[%s2544_s0 + $0x8] sm:$0x1]  }
  0x21   :  { %v1178_v34 = vld [vmem:[%s2544_s0 + $0x8] sm:$0x1]  }
  0x22   :  { %262 = vrot.lane.b32.xlu1 %v958_v9, %s1219_s21  ;;  %241 = vrot.lane.b32.xlu0 %v1255_v0, %s1219_s21 }
  0x26   :  { %289 = vrot.lane.b32.xlu1 %v968_v10, %s1220_s24  ;;  %268 = vrot.lane.b32.xlu0 %v1255_v0, %s1220_s24  ;;  %s1238_s24 = smov 100  }
  0x2a   :  { %316 = vrot.lane.b32.xlu1 %v978_v11, %s1221_s27  ;;  %295 = vrot.lane.b32.xlu0 %v1255_v0, %s1221_s27  ;;  %s1239_s27 = smov 99  }
  0x2e   :  { %343 = vrot.lane.b32.xlu1 %v988_v12, %s1222_s30  ;;  %322 = vrot.lane.b32.xlu0 %v1255_v0, %s1222_s30 }
  0x32   :  { %370 = vrot.lane.b32.xlu1 %v998_v13, %s1223_s4  ;;  %349 = vrot.lane.b32.xlu0 %v1255_v0, %s1223_s4  ;;  %s1240_s4 = smov 98  }
  0x36   :  { %397 = vrot.lane.b32.xlu1 %v1008_v14, %s1224_s7  ;;  %376 = vrot.lane.b32.xlu0 %v1255_v0, %s1224_s7 }
  0x3a   :  { %424 = vrot.lane.b32.xlu1 %v1018_v15, %s1225_s10  ;;  %403 = vrot.lane.b32.xlu0 %v1255_v0, %s1225_s10  ;;  %s1241_s10 = smov 97  }
  0x3e   :  { %451 = vrot.lane.b32.xlu1 %v1028_v16, %s1226_s13  ;;  %430 = vrot.lane.b32.xlu0 %v1255_v0, %s1226_s13 }
  0x42   :  { %478 = vrot.lane.b32.xlu1 %v1038_v17, %s1227_s16  ;;  %457 = vrot.lane.b32.xlu0 %v1255_v0, %s1227_s16 }
  0x46   :  { %505 = vrot.lane.b32.xlu1 %v1048_v18, %s1228_s19  ;;  %484 = vrot.lane.b32.xlu0 %v1255_v0, %s1228_s19 }
  0x4a   :  { %532 = vrot.lane.b32.xlu1 %v1058_v19, %s1229_s22  ;;  %511 = vrot.lane.b32.xlu0 %v1255_v0, %s1229_s22 }
  0x4e   :  { %559 = vrot.lane.b32.xlu1 %v1068_v20, %s1230_s25  ;;  %538 = vrot.lane.b32.xlu0 %v1255_v0, %s1230_s25 }
  0x52   :  { %586 = vrot.lane.b32.xlu1 %v1078_v21, %s1231_s28  ;;  %565 = vrot.lane.b32.xlu0 %v1255_v0, %s1231_s28 }
  0x56   :  { %613 = vrot.lane.b32.xlu1 %v1088_v22, %s1232_s2  ;;  %592 = vrot.lane.b32.xlu0 %v1255_v0, %s1232_s2 }
  0x5a   :  { %640 = vrot.lane.b32.xlu1 %v1098_v23, %s1233_s5  ;;  %619 = vrot.lane.b32.xlu0 %v1255_v0, %s1233_s5 }
  0x5e   :  { %667 = vrot.lane.b32.xlu1 %v1108_v24, %s1234_s8  ;;  %646 = vrot.lane.b32.xlu0 %v1255_v0, %s1234_s8 }
  0x62   :  { %694 = vrot.lane.b32.xlu1 %v1118_v25, %s1235_s11  ;;  %673 = vrot.lane.b32.xlu0 %v1255_v0, %s1235_s11 }
  0x66   :  { %721 = vrot.lane.b32.xlu1 %v1128_v26, %s1236_s14  ;;  %700 = vrot.lane.b32.xlu0 %v1255_v0, %s1236_s14 }
  0x6a   :  { %748 = vrot.lane.b32.xlu1 %v1138_v27, %s1237_s17  ;;  %727 = vrot.lane.b32.xlu0 %v1255_v0, %s1237_s17 }
  0x6e   :  { %775 = vrot.lane.b32.xlu1 %v1148_v28, %s1238_s24  ;;  %754 = vrot.lane.b32.xlu0 %v1255_v0, %s1238_s24 }
  0x72   :  { %802 = vrot.lane.b32.xlu1 %v1158_v30, %s1239_s27  ;;  %781 = vrot.lane.b32.xlu0 %v1255_v0, %s1239_s27 }
  0x74   :  { %v53_v32 = vpop.permute.xlu1 %52   ;;  %v26_v33 = vpop.permute.xlu0 %25  }
  0x75   :  { %880 = vst.msk [vmem:[%s2545_s1 + $0x2] sm:$0x1] %vm3_vm0, %v53_v32   ;;  %881 = vst.msk [vmem:[%s2545_s1 + $0x21] sm:$0x2] %vm3_vm0, %v53_v32  }
  0x76   :  { %882 = vst.msk [vmem:[%s2545_s1 + $0x40] sm:$0x4] %vm3_vm0, %v53_v32   ;;  %883 = vst.msk [vmem:[%s2545_s1 + $0x5f] sm:$0x8] %vm3_vm0, %v53_v32   ;;  %829 = vrot.lane.b32.xlu1 %v1168_v31, %s1240_s4  ;;  %808 = vrot.lane.b32.xlu0 %v1255_v0, %s1240_s4 }
  0x77   :  { %884 = vst.msk [vmem:[%s2545_s1 + $0x7e] sm:$0x10] %vm3_vm0, %v53_v32   ;;  %885 = vst.msk [vmem:[%s2545_s1 + $0x9d] sm:$0x20] %vm3_vm0, %v53_v32  }
  0x78   :  { %886 = vst.msk [vmem:[%s2545_s1 + $0xbc] sm:$0x40] %vm3_vm0, %v53_v32   ;;  %887 = vst.msk [vmem:[%s2545_s1 + $0xdb] sm:$0x80] %vm3_vm0, %v53_v32   ;;  %v74_v35 = vpop.permute.xlu1 %73   ;;  %v47_v36 = vpop.permute.xlu0 %46  }
  0x79   :  { %870 = vst.msk [vmem:[%s2545_s1 + $0x1] sm:$0x1] %vm3_vm0, %v26_v33   ;;  %871 = vst.msk [vmem:[%s2545_s1 + $0x20] sm:$0x2] %vm3_vm0, %v26_v33  }
  0x7a   :  { %872 = vst.msk [vmem:[%s2545_s1 + $0x3f] sm:$0x4] %vm3_vm0, %v26_v33   ;;  %873 = vst.msk [vmem:[%s2545_s1 + $0x5e] sm:$0x8] %vm3_vm0, %v26_v33   ;;  %856 = vrot.lane.b32.xlu1 %v1178_v34, %s1241_s10  ;;  %835 = vrot.lane.b32.xlu0 %v1255_v0, %s1241_s10 }
  0x7b   :  { %874 = vst.msk [vmem:[%s2545_s1 + $0x7d] sm:$0x10] %vm3_vm0, %v26_v33   ;;  %875 = vst.msk [vmem:[%s2545_s1 + $0x9c] sm:$0x20] %vm3_vm0, %v26_v33  }
  0x7c   :  { %876 = vst.msk [vmem:[%s2545_s1 + $0xbb] sm:$0x40] %vm3_vm0, %v26_v33   ;;  %877 = vst.msk [vmem:[%s2545_s1 + $0xda] sm:$0x80] %vm3_vm0, %v26_v33   ;;  %v101_v37 = vpop.permute.xlu1 %100   ;;  %v80_v38 = vpop.permute.xlu0 %79  }
  0x7d   :  { %889 = vst.msk [vmem:[%s2545_s1 + $0x102] sm:$0x1] %vm3_vm0, %v74_v35   ;;  %879 = vst.msk [vmem:[%s2545_s1 + $0x101] sm:$0x1] %vm3_vm0, %v47_v36  }
  0x7e   :  { %899 = vst.msk [vmem:[%s2545_s1 + $0x103] sm:$0x1] %vm3_vm0, %v101_v37   ;;  %890 = vst.msk [vmem:[%s2545_s1 + $0x3] sm:$0x1] %vm3_vm0, %v80_v38  }
  0x7f   :  { %891 = vst.msk [vmem:[%s2545_s1 + $0x22] sm:$0x2] %vm3_vm0, %v80_v38   ;;  %892 = vst.msk [vmem:[%s2545_s1 + $0x41] sm:$0x4] %vm3_vm0, %v80_v38  }
  0x80   :  { %893 = vst.msk [vmem:[%s2545_s1 + $0x60] sm:$0x8] %vm3_vm0, %v80_v38   ;;  %894 = vst.msk [vmem:[%s2545_s1 + $0x7f] sm:$0x10] %vm3_vm0, %v80_v38   ;;  %v128_v39 = vpop.permute.xlu1 %127   ;;  %v107_v40 = vpop.permute.xlu0 %106  }
  0x81   :  { %895 = vst.msk [vmem:[%s2545_s1 + $0x9e] sm:$0x20] %vm3_vm0, %v80_v38   ;;  %896 = vst.msk [vmem:[%s2545_s1 + $0xbd] sm:$0x40] %vm3_vm0, %v80_v38  }
  0x82   :  { %897 = vst.msk [vmem:[%s2545_s1 + $0xdc] sm:$0x80] %vm3_vm0, %v80_v38   ;;  %909 = vst.msk [vmem:[%s2545_s1 + $0x104] sm:$0x1] %vm3_vm0, %v128_v39  }
  0x83   :  { %900 = vst.msk [vmem:[%s2545_s1 + $0x4] sm:$0x1] %vm3_vm0, %v107_v40   ;;  %901 = vst.msk [vmem:[%s2545_s1 + $0x23] sm:$0x2] %vm3_vm0, %v107_v40  }
  0x84   :  { %902 = vst.msk [vmem:[%s2545_s1 + $0x42] sm:$0x4] %vm3_vm0, %v107_v40   ;;  %903 = vst.msk [vmem:[%s2545_s1 + $0x61] sm:$0x8] %vm3_vm0, %v107_v40   ;;  %v155_v41 = vpop.permute.xlu1 %154   ;;  %v134_v42 = vpop.permute.xlu0 %133  }
  0x85   :  { %904 = vst.msk [vmem:[%s2545_s1 + $0x80] sm:$0x10] %vm3_vm0, %v107_v40   ;;  %905 = vst.msk [vmem:[%s2545_s1 + $0x9f] sm:$0x20] %vm3_vm0, %v107_v40  }
  0x86   :  { %906 = vst.msk [vmem:[%s2545_s1 + $0xbe] sm:$0x40] %vm3_vm0, %v107_v40   ;;  %907 = vst.msk [vmem:[%s2545_s1 + $0xdd] sm:$0x80] %vm3_vm0, %v107_v40  }
  0x87   :  { %919 = vst.msk [vmem:[%s2545_s1 + $0x105] sm:$0x1] %vm3_vm0, %v155_v41   ;;  %910 = vst.msk [vmem:[%s2545_s1 + $0x5] sm:$0x1] %vm3_vm0, %v134_v42  }
  0x88   :  { %911 = vst.msk [vmem:[%s2545_s1 + $0x24] sm:$0x2] %vm3_vm0, %v134_v42   ;;  %912 = vst.msk [vmem:[%s2545_s1 + $0x43] sm:$0x4] %vm3_vm0, %v134_v42   ;;  %v182_v43 = vpop.permute.xlu1 %181   ;;  %v161_v44 = vpop.permute.xlu0 %160  }
  0x89   :  { %913 = vst.msk [vmem:[%s2545_s1 + $0x62] sm:$0x8] %vm3_vm0, %v134_v42   ;;  %914 = vst.msk [vmem:[%s2545_s1 + $0x81] sm:$0x10] %vm3_vm0, %v134_v42  }
  0x8a   :  { %915 = vst.msk [vmem:[%s2545_s1 + $0xa0] sm:$0x20] %vm3_vm0, %v134_v42   ;;  %916 = vst.msk [vmem:[%s2545_s1 + $0xbf] sm:$0x40] %vm3_vm0, %v134_v42  }
  0x8b   :  { %917 = vst.msk [vmem:[%s2545_s1 + $0xde] sm:$0x80] %vm3_vm0, %v134_v42   ;;  %929 = vst.msk [vmem:[%s2545_s1 + $0x106] sm:$0x1] %vm3_vm0, %v182_v43  }
  0x8c   :  { %920 = vst.msk [vmem:[%s2545_s1 + $0x6] sm:$0x1] %vm3_vm0, %v161_v44   ;;  %921 = vst.msk [vmem:[%s2545_s1 + $0x25] sm:$0x2] %vm3_vm0, %v161_v44   ;;  %v209_v45 = vpop.permute.xlu1 %208   ;;  %v188_v46 = vpop.permute.xlu0 %187  }
  0x8d   :  { %922 = vst.msk [vmem:[%s2545_s1 + $0x44] sm:$0x4] %vm3_vm0, %v161_v44   ;;  %923 = vst.msk [vmem:[%s2545_s1 + $0x63] sm:$0x8] %vm3_vm0, %v161_v44  }
  0x8e   :  { %924 = vst.msk [vmem:[%s2545_s1 + $0x82] sm:$0x10] %vm3_vm0, %v161_v44   ;;  %925 = vst.msk [vmem:[%s2545_s1 + $0xa1] sm:$0x20] %vm3_vm0, %v161_v44  }
  0x8f   :  { %926 = vst.msk [vmem:[%s2545_s1 + $0xc0] sm:$0x40] %vm3_vm0, %v161_v44   ;;  %927 = vst.msk [vmem:[%s2545_s1 + $0xdf] sm:$0x80] %vm3_vm0, %v161_v44  }
  0x90   :  { %939 = vst.msk [vmem:[%s2545_s1 + $0x107] sm:$0x1] %vm3_vm0, %v209_v45   ;;  %930 = vst.msk [vmem:[%s2545_s1 + $0x7] sm:$0x1] %vm3_vm0, %v188_v46   ;;  %v236_v47 = vpop.permute.xlu1 %235   ;;  %v215_v48 = vpop.permute.xlu0 %214  }
  0x91   :  { %931 = vst.msk [vmem:[%s2545_s1 + $0x26] sm:$0x2] %vm3_vm0, %v188_v46   ;;  %932 = vst.msk [vmem:[%s2545_s1 + $0x45] sm:$0x4] %vm3_vm0, %v188_v46  }
  0x92   :  { %933 = vst.msk [vmem:[%s2545_s1 + $0x64] sm:$0x8] %vm3_vm0, %v188_v46   ;;  %934 = vst.msk [vmem:[%s2545_s1 + $0x83] sm:$0x10] %vm3_vm0, %v188_v46  }
  0x93   :  { %935 = vst.msk [vmem:[%s2545_s1 + $0xa2] sm:$0x20] %vm3_vm0, %v188_v46   ;;  %936 = vst.msk [vmem:[%s2545_s1 + $0xc1] sm:$0x40] %vm3_vm0, %v188_v46  }
  0x94   :  { %937 = vst.msk [vmem:[%s2545_s1 + $0xe0] sm:$0x80] %vm3_vm0, %v188_v46   ;;  %949 = vst.msk [vmem:[%s2545_s1 + $0x108] sm:$0x1] %vm3_vm0, %v236_v47   ;;  %v263_v49 = vpop.permute.xlu1 %262   ;;  %v242_v50 = vpop.permute.xlu0 %241  }
  0x95   :  { %940 = vst.msk [vmem:[%s2545_s1 + $0x8] sm:$0x1] %vm3_vm0, %v215_v48   ;;  %941 = vst.msk [vmem:[%s2545_s1 + $0x27] sm:$0x2] %vm3_vm0, %v215_v48  }
  0x96   :  { %942 = vst.msk [vmem:[%s2545_s1 + $0x46] sm:$0x4] %vm3_vm0, %v215_v48   ;;  %943 = vst.msk [vmem:[%s2545_s1 + $0x65] sm:$0x8] %vm3_vm0, %v215_v48  }
  0x97   :  { %944 = vst.msk [vmem:[%s2545_s1 + $0x84] sm:$0x10] %vm3_vm0, %v215_v48   ;;  %945 = vst.msk [vmem:[%s2545_s1 + $0xa3] sm:$0x20] %vm3_vm0, %v215_v48  }
  0x98   :  { %946 = vst.msk [vmem:[%s2545_s1 + $0xc2] sm:$0x40] %vm3_vm0, %v215_v48   ;;  %947 = vst.msk [vmem:[%s2545_s1 + $0xe1] sm:$0x80] %vm3_vm0, %v215_v48   ;;  %v290_v51 = vpop.permute.xlu1 %289   ;;  %v269_v52 = vpop.permute.xlu0 %268  }
  0x99   :  { %959 = vst.msk [vmem:[%s2545_s1 + $0x109] sm:$0x1] %vm3_vm0, %v263_v49   ;;  %950 = vst.msk [vmem:[%s2545_s1 + $0x9] sm:$0x1] %vm3_vm0, %v242_v50  }
  0x9a   :  { %951 = vst.msk [vmem:[%s2545_s1 + $0x28] sm:$0x2] %vm3_vm0, %v242_v50   ;;  %952 = vst.msk [vmem:[%s2545_s1 + $0x47] sm:$0x4] %vm3_vm0, %v242_v50  }
  0x9b   :  { %953 = vst.msk [vmem:[%s2545_s1 + $0x66] sm:$0x8] %vm3_vm0, %v242_v50   ;;  %954 = vst.msk [vmem:[%s2545_s1 + $0x85] sm:$0x10] %vm3_vm0, %v242_v50  }
  0x9c   :  { %955 = vst.msk [vmem:[%s2545_s1 + $0xa4] sm:$0x20] %vm3_vm0, %v242_v50   ;;  %956 = vst.msk [vmem:[%s2545_s1 + $0xc3] sm:$0x40] %vm3_vm0, %v242_v50   ;;  %v317_v53 = vpop.permute.xlu1 %316   ;;  %v296_v54 = vpop.permute.xlu0 %295  }
  0x9d   :  { %957 = vst.msk [vmem:[%s2545_s1 + $0xe2] sm:$0x80] %vm3_vm0, %v242_v50   ;;  %969 = vst.msk [vmem:[%s2545_s1 + $0x10a] sm:$0x1] %vm3_vm0, %v290_v51  }
  0x9e   :  { %960 = vst.msk [vmem:[%s2545_s1 + $0xa] sm:$0x1] %vm3_vm0, %v269_v52   ;;  %961 = vst.msk [vmem:[%s2545_s1 + $0x29] sm:$0x2] %vm3_vm0, %v269_v52  }
  0x9f   :  { %962 = vst.msk [vmem:[%s2545_s1 + $0x48] sm:$0x4] %vm3_vm0, %v269_v52   ;;  %963 = vst.msk [vmem:[%s2545_s1 + $0x67] sm:$0x8] %vm3_vm0, %v269_v52  }
  0xa0   :  { %964 = vst.msk [vmem:[%s2545_s1 + $0x86] sm:$0x10] %vm3_vm0, %v269_v52   ;;  %965 = vst.msk [vmem:[%s2545_s1 + $0xa5] sm:$0x20] %vm3_vm0, %v269_v52   ;;  %v344_v55 = vpop.permute.xlu1 %343   ;;  %v323_v56 = vpop.permute.xlu0 %322  }
  0xa1   :  { %966 = vst.msk [vmem:[%s2545_s1 + $0xc4] sm:$0x40] %vm3_vm0, %v269_v52   ;;  %967 = vst.msk [vmem:[%s2545_s1 + $0xe3] sm:$0x80] %vm3_vm0, %v269_v52  }
  0xa2   :  { %979 = vst.msk [vmem:[%s2545_s1 + $0x10b] sm:$0x1] %vm3_vm0, %v317_v53   ;;  %970 = vst.msk [vmem:[%s2545_s1 + $0xb] sm:$0x1] %vm3_vm0, %v296_v54  }
  0xa3   :  { %971 = vst.msk [vmem:[%s2545_s1 + $0x2a] sm:$0x2] %vm3_vm0, %v296_v54   ;;  %972 = vst.msk [vmem:[%s2545_s1 + $0x49] sm:$0x4] %vm3_vm0, %v296_v54  }
  0xa4   :  { %973 = vst.msk [vmem:[%s2545_s1 + $0x68] sm:$0x8] %vm3_vm0, %v296_v54   ;;  %974 = vst.msk [vmem:[%s2545_s1 + $0x87] sm:$0x10] %vm3_vm0, %v296_v54   ;;  %v371_v57 = vpop.permute.xlu1 %370   ;;  %v350_v58 = vpop.permute.xlu0 %349  }
  0xa5   :  { %975 = vst.msk [vmem:[%s2545_s1 + $0xa6] sm:$0x20] %vm3_vm0, %v296_v54   ;;  %976 = vst.msk [vmem:[%s2545_s1 + $0xc5] sm:$0x40] %vm3_vm0, %v296_v54  }
  0xa6   :  { %977 = vst.msk [vmem:[%s2545_s1 + $0xe4] sm:$0x80] %vm3_vm0, %v296_v54   ;;  %989 = vst.msk [vmem:[%s2545_s1 + $0x10c] sm:$0x1] %vm3_vm0, %v344_v55  }
  0xa7   :  { %980 = vst.msk [vmem:[%s2545_s1 + $0xc] sm:$0x1] %vm3_vm0, %v323_v56   ;;  %981 = vst.msk [vmem:[%s2545_s1 + $0x2b] sm:$0x2] %vm3_vm0, %v323_v56  }
  0xa8   :  { %982 = vst.msk [vmem:[%s2545_s1 + $0x4a] sm:$0x4] %vm3_vm0, %v323_v56   ;;  %983 = vst.msk [vmem:[%s2545_s1 + $0x69] sm:$0x8] %vm3_vm0, %v323_v56   ;;  %v398_v59 = vpop.permute.xlu1 %397   ;;  %v377_v60 = vpop.permute.xlu0 %376  }
  0xa9   :  { %984 = vst.msk [vmem:[%s2545_s1 + $0x88] sm:$0x10] %vm3_vm0, %v323_v56   ;;  %985 = vst.msk [vmem:[%s2545_s1 + $0xa7] sm:$0x20] %vm3_vm0, %v323_v56  }
  0xaa   :  { %986 = vst.msk [vmem:[%s2545_s1 + $0xc6] sm:$0x40] %vm3_vm0, %v323_v56   ;;  %987 = vst.msk [vmem:[%s2545_s1 + $0xe5] sm:$0x80] %vm3_vm0, %v323_v56  }
  0xab   :  { %999 = vst.msk [vmem:[%s2545_s1 + $0x10d] sm:$0x1] %vm3_vm0, %v371_v57   ;;  %990 = vst.msk [vmem:[%s2545_s1 + $0xd] sm:$0x1] %vm3_vm0, %v350_v58  }
  0xac   :  { %991 = vst.msk [vmem:[%s2545_s1 + $0x2c] sm:$0x2] %vm3_vm0, %v350_v58   ;;  %992 = vst.msk [vmem:[%s2545_s1 + $0x4b] sm:$0x4] %vm3_vm0, %v350_v58   ;;  %v425_v61 = vpop.permute.xlu1 %424   ;;  %v404_v62 = vpop.permute.xlu0 %403  }
  0xad   :  { %993 = vst.msk [vmem:[%s2545_s1 + $0x6a] sm:$0x8] %vm3_vm0, %v350_v58   ;;  %994 = vst.msk [vmem:[%s2545_s1 + $0x89] sm:$0x10] %vm3_vm0, %v350_v58  }
  0xae   :  { %995 = vst.msk [vmem:[%s2545_s1 + $0xa8] sm:$0x20] %vm3_vm0, %v350_v58   ;;  %996 = vst.msk [vmem:[%s2545_s1 + $0xc7] sm:$0x40] %vm3_vm0, %v350_v58  }
  0xaf   :  { %997 = vst.msk [vmem:[%s2545_s1 + $0xe6] sm:$0x80] %vm3_vm0, %v350_v58   ;;  %1009 = vst.msk [vmem:[%s2545_s1 + $0x10e] sm:$0x1] %vm3_vm0, %v398_v59  }
  0xb0   :  { %1000 = vst.msk [vmem:[%s2545_s1 + $0xe] sm:$0x1] %vm3_vm0, %v377_v60   ;;  %1001 = vst.msk [vmem:[%s2545_s1 + $0x2d] sm:$0x2] %vm3_vm0, %v377_v60   ;;  %v452_v63 = vpop.permute.xlu1 %451   ;;  %v431_v0 = vpop.permute.xlu0 %430  }
  0xb1   :  { %1002 = vst.msk [vmem:[%s2545_s1 + $0x4c] sm:$0x4] %vm3_vm0, %v377_v60   ;;  %1003 = vst.msk [vmem:[%s2545_s1 + $0x6b] sm:$0x8] %vm3_vm0, %v377_v60  }
  0xb2   :  { %1004 = vst.msk [vmem:[%s2545_s1 + $0x8a] sm:$0x10] %vm3_vm0, %v377_v60   ;;  %1005 = vst.msk [vmem:[%s2545_s1 + $0xa9] sm:$0x20] %vm3_vm0, %v377_v60  }
  0xb3   :  { %1006 = vst.msk [vmem:[%s2545_s1 + $0xc8] sm:$0x40] %vm3_vm0, %v377_v60   ;;  %1007 = vst.msk [vmem:[%s2545_s1 + $0xe7] sm:$0x80] %vm3_vm0, %v377_v60  }
  0xb4   :  { %1019 = vst.msk [vmem:[%s2545_s1 + $0x10f] sm:$0x1] %vm3_vm0, %v425_v61   ;;  %1010 = vst.msk [vmem:[%s2545_s1 + $0xf] sm:$0x1] %vm3_vm0, %v404_v62   ;;  %v479_v1 = vpop.permute.xlu1 %478   ;;  %v458_v2 = vpop.permute.xlu0 %457  }
  0xb5   :  { %1011 = vst.msk [vmem:[%s2545_s1 + $0x2e] sm:$0x2] %vm3_vm0, %v404_v62   ;;  %1012 = vst.msk [vmem:[%s2545_s1 + $0x4d] sm:$0x4] %vm3_vm0, %v404_v62  }
  0xb6   :  { %1013 = vst.msk [vmem:[%s2545_s1 + $0x6c] sm:$0x8] %vm3_vm0, %v404_v62   ;;  %1014 = vst.msk [vmem:[%s2545_s1 + $0x8b] sm:$0x10] %vm3_vm0, %v404_v62  }
  0xb7   :  { %1015 = vst.msk [vmem:[%s2545_s1 + $0xaa] sm:$0x20] %vm3_vm0, %v404_v62   ;;  %1016 = vst.msk [vmem:[%s2545_s1 + $0xc9] sm:$0x40] %vm3_vm0, %v404_v62  }
  0xb8   :  { %1017 = vst.msk [vmem:[%s2545_s1 + $0xe8] sm:$0x80] %vm3_vm0, %v404_v62   ;;  %1029 = vst.msk [vmem:[%s2545_s1 + $0x110] sm:$0x1] %vm3_vm0, %v452_v63   ;;  %v506_v3 = vpop.permute.xlu1 %505   ;;  %v485_v4 = vpop.permute.xlu0 %484  }
  0xb9   :  { %1020 = vst.msk [vmem:[%s2545_s1 + $0x10] sm:$0x1] %vm3_vm0, %v431_v0   ;;  %1021 = vst.msk [vmem:[%s2545_s1 + $0x2f] sm:$0x2] %vm3_vm0, %v431_v0  }
  0xba   :  { %1022 = vst.msk [vmem:[%s2545_s1 + $0x4e] sm:$0x4] %vm3_vm0, %v431_v0   ;;  %1023 = vst.msk [vmem:[%s2545_s1 + $0x6d] sm:$0x8] %vm3_vm0, %v431_v0  }
  0xbb   :  { %1024 = vst.msk [vmem:[%s2545_s1 + $0x8c] sm:$0x10] %vm3_vm0, %v431_v0   ;;  %1025 = vst.msk [vmem:[%s2545_s1 + $0xab] sm:$0x20] %vm3_vm0, %v431_v0  }
  0xbc   :  { %1026 = vst.msk [vmem:[%s2545_s1 + $0xca] sm:$0x40] %vm3_vm0, %v431_v0   ;;  %1027 = vst.msk [vmem:[%s2545_s1 + $0xe9] sm:$0x80] %vm3_vm0, %v431_v0   ;;  %v533_v5 = vpop.permute.xlu1 %532   ;;  %v512_v6 = vpop.permute.xlu0 %511  }
  0xbd   :  { %1039 = vst.msk [vmem:[%s2545_s1 + $0x111] sm:$0x1] %vm3_vm0, %v479_v1   ;;  %1030 = vst.msk [vmem:[%s2545_s1 + $0x11] sm:$0x1] %vm3_vm0, %v458_v2  }
  0xbe   :  { %1031 = vst.msk [vmem:[%s2545_s1 + $0x30] sm:$0x2] %vm3_vm0, %v458_v2   ;;  %1032 = vst.msk [vmem:[%s2545_s1 + $0x4f] sm:$0x4] %vm3_vm0, %v458_v2  }
  0xbf   :  { %1033 = vst.msk [vmem:[%s2545_s1 + $0x6e] sm:$0x8] %vm3_vm0, %v458_v2   ;;  %1034 = vst.msk [vmem:[%s2545_s1 + $0x8d] sm:$0x10] %vm3_vm0, %v458_v2  }
  0xc0   :  { %1035 = vst.msk [vmem:[%s2545_s1 + $0xac] sm:$0x20] %vm3_vm0, %v458_v2   ;;  %1036 = vst.msk [vmem:[%s2545_s1 + $0xcb] sm:$0x40] %vm3_vm0, %v458_v2   ;;  %v560_v7 = vpop.permute.xlu1 %559   ;;  %v539_v8 = vpop.permute.xlu0 %538  }
  0xc1   :  { %1037 = vst.msk [vmem:[%s2545_s1 + $0xea] sm:$0x80] %vm3_vm0, %v458_v2   ;;  %1049 = vst.msk [vmem:[%s2545_s1 + $0x112] sm:$0x1] %vm3_vm0, %v506_v3  }
  0xc2   :  { %1040 = vst.msk [vmem:[%s2545_s1 + $0x12] sm:$0x1] %vm3_vm0, %v485_v4   ;;  %1041 = vst.msk [vmem:[%s2545_s1 + $0x31] sm:$0x2] %vm3_vm0, %v485_v4  }
  0xc3   :  { %1042 = vst.msk [vmem:[%s2545_s1 + $0x50] sm:$0x4] %vm3_vm0, %v485_v4   ;;  %1043 = vst.msk [vmem:[%s2545_s1 + $0x6f] sm:$0x8] %vm3_vm0, %v485_v4  }
  0xc4   :  { %1044 = vst.msk [vmem:[%s2545_s1 + $0x8e] sm:$0x10] %vm3_vm0, %v485_v4   ;;  %1045 = vst.msk [vmem:[%s2545_s1 + $0xad] sm:$0x20] %vm3_vm0, %v485_v4   ;;  %v587_v9 = vpop.permute.xlu1 %586   ;;  %v566_v10 = vpop.permute.xlu0 %565  }
  0xc5   :  { %1046 = vst.msk [vmem:[%s2545_s1 + $0xcc] sm:$0x40] %vm3_vm0, %v485_v4   ;;  %1047 = vst.msk [vmem:[%s2545_s1 + $0xeb] sm:$0x80] %vm3_vm0, %v485_v4  }
  0xc6   :  { %1059 = vst.msk [vmem:[%s2545_s1 + $0x113] sm:$0x1] %vm3_vm0, %v533_v5   ;;  %1050 = vst.msk [vmem:[%s2545_s1 + $0x13] sm:$0x1] %vm3_vm0, %v512_v6  }
  0xc7   :  { %1051 = vst.msk [vmem:[%s2545_s1 + $0x32] sm:$0x2] %vm3_vm0, %v512_v6   ;;  %1052 = vst.msk [vmem:[%s2545_s1 + $0x51] sm:$0x4] %vm3_vm0, %v512_v6  }
  0xc8   :  { %1053 = vst.msk [vmem:[%s2545_s1 + $0x70] sm:$0x8] %vm3_vm0, %v512_v6   ;;  %1054 = vst.msk [vmem:[%s2545_s1 + $0x8f] sm:$0x10] %vm3_vm0, %v512_v6   ;;  %v614_v11 = vpop.permute.xlu1 %613   ;;  %v593_v12 = vpop.permute.xlu0 %592  }
  0xc9   :  { %1055 = vst.msk [vmem:[%s2545_s1 + $0xae] sm:$0x20] %vm3_vm0, %v512_v6   ;;  %1056 = vst.msk [vmem:[%s2545_s1 + $0xcd] sm:$0x40] %vm3_vm0, %v512_v6  }
  0xca   :  { %1057 = vst.msk [vmem:[%s2545_s1 + $0xec] sm:$0x80] %vm3_vm0, %v512_v6   ;;  %1069 = vst.msk [vmem:[%s2545_s1 + $0x114] sm:$0x1] %vm3_vm0, %v560_v7  }
  0xcb   :  { %1060 = vst.msk [vmem:[%s2545_s1 + $0x14] sm:$0x1] %vm3_vm0, %v539_v8   ;;  %1061 = vst.msk [vmem:[%s2545_s1 + $0x33] sm:$0x2] %vm3_vm0, %v539_v8  }
  0xcc   :  { %1062 = vst.msk [vmem:[%s2545_s1 + $0x52] sm:$0x4] %vm3_vm0, %v539_v8   ;;  %1063 = vst.msk [vmem:[%s2545_s1 + $0x71] sm:$0x8] %vm3_vm0, %v539_v8   ;;  %v641_v13 = vpop.permute.xlu1 %640   ;;  %v620_v14 = vpop.permute.xlu0 %619  }
  0xcd   :  { %1064 = vst.msk [vmem:[%s2545_s1 + $0x90] sm:$0x10] %vm3_vm0, %v539_v8   ;;  %1065 = vst.msk [vmem:[%s2545_s1 + $0xaf] sm:$0x20] %vm3_vm0, %v539_v8  }
  0xce   :  { %1066 = vst.msk [vmem:[%s2545_s1 + $0xce] sm:$0x40] %vm3_vm0, %v539_v8   ;;  %1067 = vst.msk [vmem:[%s2545_s1 + $0xed] sm:$0x80] %vm3_vm0, %v539_v8  }
  0xcf   :  { %1079 = vst.msk [vmem:[%s2545_s1 + $0x115] sm:$0x1] %vm3_vm0, %v587_v9   ;;  %1070 = vst.msk [vmem:[%s2545_s1 + $0x15] sm:$0x1] %vm3_vm0, %v566_v10  }
  0xd0   :  { %1071 = vst.msk [vmem:[%s2545_s1 + $0x34] sm:$0x2] %vm3_vm0, %v566_v10   ;;  %1072 = vst.msk [vmem:[%s2545_s1 + $0x53] sm:$0x4] %vm3_vm0, %v566_v10   ;;  %v668_v15 = vpop.permute.xlu1 %667   ;;  %v647_v16 = vpop.permute.xlu0 %646  }
  0xd1   :  { %1073 = vst.msk [vmem:[%s2545_s1 + $0x72] sm:$0x8] %vm3_vm0, %v566_v10   ;;  %1074 = vst.msk [vmem:[%s2545_s1 + $0x91] sm:$0x10] %vm3_vm0, %v566_v10  }
  0xd2   :  { %1075 = vst.msk [vmem:[%s2545_s1 + $0xb0] sm:$0x20] %vm3_vm0, %v566_v10   ;;  %1076 = vst.msk [vmem:[%s2545_s1 + $0xcf] sm:$0x40] %vm3_vm0, %v566_v10  }
  0xd3   :  { %1077 = vst.msk [vmem:[%s2545_s1 + $0xee] sm:$0x80] %vm3_vm0, %v566_v10   ;;  %1089 = vst.msk [vmem:[%s2545_s1 + $0x116] sm:$0x1] %vm3_vm0, %v614_v11  }
  0xd4   :  { %1080 = vst.msk [vmem:[%s2545_s1 + $0x16] sm:$0x1] %vm3_vm0, %v593_v12   ;;  %1081 = vst.msk [vmem:[%s2545_s1 + $0x35] sm:$0x2] %vm3_vm0, %v593_v12   ;;  %v695_v17 = vpop.permute.xlu1 %694   ;;  %v674_v18 = vpop.permute.xlu0 %673  }
  0xd5   :  { %1082 = vst.msk [vmem:[%s2545_s1 + $0x54] sm:$0x4] %vm3_vm0, %v593_v12   ;;  %1083 = vst.msk [vmem:[%s2545_s1 + $0x73] sm:$0x8] %vm3_vm0, %v593_v12  }
  0xd6   :  { %1084 = vst.msk [vmem:[%s2545_s1 + $0x92] sm:$0x10] %vm3_vm0, %v593_v12   ;;  %1085 = vst.msk [vmem:[%s2545_s1 + $0xb1] sm:$0x20] %vm3_vm0, %v593_v12  }
  0xd7   :  { %1086 = vst.msk [vmem:[%s2545_s1 + $0xd0] sm:$0x40] %vm3_vm0, %v593_v12   ;;  %1087 = vst.msk [vmem:[%s2545_s1 + $0xef] sm:$0x80] %vm3_vm0, %v593_v12  }
  0xd8   :  { %1099 = vst.msk [vmem:[%s2545_s1 + $0x117] sm:$0x1] %vm3_vm0, %v641_v13   ;;  %1090 = vst.msk [vmem:[%s2545_s1 + $0x17] sm:$0x1] %vm3_vm0, %v620_v14   ;;  %v722_v19 = vpop.permute.xlu1 %721   ;;  %v701_v20 = vpop.permute.xlu0 %700  }
  0xd9   :  { %1091 = vst.msk [vmem:[%s2545_s1 + $0x36] sm:$0x2] %vm3_vm0, %v620_v14   ;;  %1092 = vst.msk [vmem:[%s2545_s1 + $0x55] sm:$0x4] %vm3_vm0, %v620_v14  }
  0xda   :  { %1093 = vst.msk [vmem:[%s2545_s1 + $0x74] sm:$0x8] %vm3_vm0, %v620_v14   ;;  %1094 = vst.msk [vmem:[%s2545_s1 + $0x93] sm:$0x10] %vm3_vm0, %v620_v14  }
  0xdb   :  { %1095 = vst.msk [vmem:[%s2545_s1 + $0xb2] sm:$0x20] %vm3_vm0, %v620_v14   ;;  %1096 = vst.msk [vmem:[%s2545_s1 + $0xd1] sm:$0x40] %vm3_vm0, %v620_v14  }
  0xdc   :  { %1097 = vst.msk [vmem:[%s2545_s1 + $0xf0] sm:$0x80] %vm3_vm0, %v620_v14   ;;  %1109 = vst.msk [vmem:[%s2545_s1 + $0x118] sm:$0x1] %vm3_vm0, %v668_v15   ;;  %v749_v21 = vpop.permute.xlu1 %748   ;;  %v728_v22 = vpop.permute.xlu0 %727  }
  0xdd   :  { %1100 = vst.msk [vmem:[%s2545_s1 + $0x18] sm:$0x1] %vm3_vm0, %v647_v16   ;;  %1101 = vst.msk [vmem:[%s2545_s1 + $0x37] sm:$0x2] %vm3_vm0, %v647_v16  }
  0xde   :  { %1102 = vst.msk [vmem:[%s2545_s1 + $0x56] sm:$0x4] %vm3_vm0, %v647_v16   ;;  %1103 = vst.msk [vmem:[%s2545_s1 + $0x75] sm:$0x8] %vm3_vm0, %v647_v16  }
  0xdf   :  { %1104 = vst.msk [vmem:[%s2545_s1 + $0x94] sm:$0x10] %vm3_vm0, %v647_v16   ;;  %1105 = vst.msk [vmem:[%s2545_s1 + $0xb3] sm:$0x20] %vm3_vm0, %v647_v16  }
  0xe0   :  { %1106 = vst.msk [vmem:[%s2545_s1 + $0xd2] sm:$0x40] %vm3_vm0, %v647_v16   ;;  %1107 = vst.msk [vmem:[%s2545_s1 + $0xf1] sm:$0x80] %vm3_vm0, %v647_v16   ;;  %v776_v23 = vpop.permute.xlu1 %775   ;;  %v755_v24 = vpop.permute.xlu0 %754  }
  0xe1   :  { %1119 = vst.msk [vmem:[%s2545_s1 + $0x119] sm:$0x1] %vm3_vm0, %v695_v17   ;;  %1110 = vst.msk [vmem:[%s2545_s1 + $0x19] sm:$0x1] %vm3_vm0, %v674_v18  }
  0xe2   :  { %1111 = vst.msk [vmem:[%s2545_s1 + $0x38] sm:$0x2] %vm3_vm0, %v674_v18   ;;  %1112 = vst.msk [vmem:[%s2545_s1 + $0x57] sm:$0x4] %vm3_vm0, %v674_v18  }
  0xe3   :  { %1113 = vst.msk [vmem:[%s2545_s1 + $0x76] sm:$0x8] %vm3_vm0, %v674_v18   ;;  %1114 = vst.msk [vmem:[%s2545_s1 + $0x95] sm:$0x10] %vm3_vm0, %v674_v18  }
  0xe4   :  { %1115 = vst.msk [vmem:[%s2545_s1 + $0xb4] sm:$0x20] %vm3_vm0, %v674_v18   ;;  %1116 = vst.msk [vmem:[%s2545_s1 + $0xd3] sm:$0x40] %vm3_vm0, %v674_v18   ;;  %v803_v25 = vpop.permute.xlu1 %802   ;;  %v782_v26 = vpop.permute.xlu0 %781  }
  0xe5   :  { %1117 = vst.msk [vmem:[%s2545_s1 + $0xf2] sm:$0x80] %vm3_vm0, %v674_v18   ;;  %1129 = vst.msk [vmem:[%s2545_s1 + $0x11a] sm:$0x1] %vm3_vm0, %v722_v19  }
  0xe6   :  { %1120 = vst.msk [vmem:[%s2545_s1 + $0x1a] sm:$0x1] %vm3_vm0, %v701_v20   ;;  %1121 = vst.msk [vmem:[%s2545_s1 + $0x39] sm:$0x2] %vm3_vm0, %v701_v20  }
  0xe7   :  { %1122 = vst.msk [vmem:[%s2545_s1 + $0x58] sm:$0x4] %vm3_vm0, %v701_v20   ;;  %1123 = vst.msk [vmem:[%s2545_s1 + $0x77] sm:$0x8] %vm3_vm0, %v701_v20  }
  0xe8   :  { %1124 = vst.msk [vmem:[%s2545_s1 + $0x96] sm:$0x10] %vm3_vm0, %v701_v20   ;;  %1125 = vst.msk [vmem:[%s2545_s1 + $0xb5] sm:$0x20] %vm3_vm0, %v701_v20   ;;  %v830_v27 = vpop.permute.xlu1 %829   ;;  %v809_v28 = vpop.permute.xlu0 %808  }
  0xe9   :  { %1126 = vst.msk [vmem:[%s2545_s1 + $0xd4] sm:$0x40] %vm3_vm0, %v701_v20   ;;  %1127 = vst.msk [vmem:[%s2545_s1 + $0xf3] sm:$0x80] %vm3_vm0, %v701_v20  }
  0xea   :  { %1139 = vst.msk [vmem:[%s2545_s1 + $0x11b] sm:$0x1] %vm3_vm0, %v749_v21   ;;  %1130 = vst.msk [vmem:[%s2545_s1 + $0x1b] sm:$0x1] %vm3_vm0, %v728_v22  }
  0xeb   :  { %1131 = vst.msk [vmem:[%s2545_s1 + $0x3a] sm:$0x2] %vm3_vm0, %v728_v22   ;;  %1132 = vst.msk [vmem:[%s2545_s1 + $0x59] sm:$0x4] %vm3_vm0, %v728_v22  }
  0xec   :  { %1133 = vst.msk [vmem:[%s2545_s1 + $0x78] sm:$0x8] %vm3_vm0, %v728_v22   ;;  %1134 = vst.msk [vmem:[%s2545_s1 + $0x97] sm:$0x10] %vm3_vm0, %v728_v22   ;;  %v857_v29 = vpop.permute.xlu1 %856   ;;  %v836_v30 = vpop.permute.xlu0 %835  }
  0xed   :  { %1135 = vst.msk [vmem:[%s2545_s1 + $0xb6] sm:$0x20] %vm3_vm0, %v728_v22   ;;  %1136 = vst.msk [vmem:[%s2545_s1 + $0xd5] sm:$0x40] %vm3_vm0, %v728_v22  }
  0xee   :  { %1137 = vst.msk [vmem:[%s2545_s1 + $0xf4] sm:$0x80] %vm3_vm0, %v728_v22   ;;  %1149 = vst.msk [vmem:[%s2545_s1 + $0x11c] sm:$0x1] %vm3_vm0, %v776_v23  }
  0xef   :  { %1140 = vst.msk [vmem:[%s2545_s1 + $0x1c] sm:$0x1] %vm3_vm0, %v755_v24   ;;  %1141 = vst.msk [vmem:[%s2545_s1 + $0x3b] sm:$0x2] %vm3_vm0, %v755_v24  }
  0xf0   :  { %1142 = vst.msk [vmem:[%s2545_s1 + $0x5a] sm:$0x4] %vm3_vm0, %v755_v24   ;;  %1143 = vst.msk [vmem:[%s2545_s1 + $0x79] sm:$0x8] %vm3_vm0, %v755_v24  }
  0xf1   :  { %1144 = vst.msk [vmem:[%s2545_s1 + $0x98] sm:$0x10] %vm3_vm0, %v755_v24   ;;  %1145 = vst.msk [vmem:[%s2545_s1 + $0xb7] sm:$0x20] %vm3_vm0, %v755_v24  }
  0xf2   :  { %1146 = vst.msk [vmem:[%s2545_s1 + $0xd6] sm:$0x40] %vm3_vm0, %v755_v24   ;;  %1147 = vst.msk [vmem:[%s2545_s1 + $0xf5] sm:$0x80] %vm3_vm0, %v755_v24  }
  0xf3   :  { %1159 = vst.msk [vmem:[%s2545_s1 + $0x11d] sm:$0x1] %vm3_vm0, %v803_v25   ;;  %1150 = vst.msk [vmem:[%s2545_s1 + $0x1d] sm:$0x1] %vm3_vm0, %v782_v26  }
  0xf4   :  { %1151 = vst.msk [vmem:[%s2545_s1 + $0x3c] sm:$0x2] %vm3_vm0, %v782_v26   ;;  %1152 = vst.msk [vmem:[%s2545_s1 + $0x5b] sm:$0x4] %vm3_vm0, %v782_v26  }
  0xf5   :  { %1153 = vst.msk [vmem:[%s2545_s1 + $0x7a] sm:$0x8] %vm3_vm0, %v782_v26   ;;  %1154 = vst.msk [vmem:[%s2545_s1 + $0x99] sm:$0x10] %vm3_vm0, %v782_v26  }
  0xf6   :  { %1155 = vst.msk [vmem:[%s2545_s1 + $0xb8] sm:$0x20] %vm3_vm0, %v782_v26   ;;  %1156 = vst.msk [vmem:[%s2545_s1 + $0xd7] sm:$0x40] %vm3_vm0, %v782_v26  }
  0xf7   :  { %1157 = vst.msk [vmem:[%s2545_s1 + $0xf6] sm:$0x80] %vm3_vm0, %v782_v26   ;;  %1169 = vst.msk [vmem:[%s2545_s1 + $0x11e] sm:$0x1] %vm3_vm0, %v830_v27  }
  0xf8   :  { %1160 = vst.msk [vmem:[%s2545_s1 + $0x1e] sm:$0x1] %vm3_vm0, %v809_v28   ;;  %1161 = vst.msk [vmem:[%s2545_s1 + $0x3d] sm:$0x2] %vm3_vm0, %v809_v28  }
  0xf9   :  { %1162 = vst.msk [vmem:[%s2545_s1 + $0x5c] sm:$0x4] %vm3_vm0, %v809_v28   ;;  %1163 = vst.msk [vmem:[%s2545_s1 + $0x7b] sm:$0x8] %vm3_vm0, %v809_v28  }
  0xfa   :  { %1164 = vst.msk [vmem:[%s2545_s1 + $0x9a] sm:$0x10] %vm3_vm0, %v809_v28   ;;  %1165 = vst.msk [vmem:[%s2545_s1 + $0xb9] sm:$0x20] %vm3_vm0, %v809_v28  }
  0xfb   :  { %1166 = vst.msk [vmem:[%s2545_s1 + $0xd8] sm:$0x40] %vm3_vm0, %v809_v28   ;;  %1167 = vst.msk [vmem:[%s2545_s1 + $0xf7] sm:$0x80] %vm3_vm0, %v809_v28  }
  0xfc   :  { %1179 = vst.msk [vmem:[%s2545_s1 + $0x11f] sm:$0x1] %vm3_vm0, %v857_v29   ;;  %1170 = vst.msk [vmem:[%s2545_s1 + $0x1f] sm:$0x1] %vm3_vm0, %v836_v30  }
  0xfd   :  { %1171 = vst.msk [vmem:[%s2545_s1 + $0x3e] sm:$0x2] %vm3_vm0, %v836_v30   ;;  %1172 = vst.msk [vmem:[%s2545_s1 + $0x5d] sm:$0x4] %vm3_vm0, %v836_v30  }
  0xfe   :  { %1173 = vst.msk [vmem:[%s2545_s1 + $0x7c] sm:$0x8] %vm3_vm0, %v836_v30   ;;  %1174 = vst.msk [vmem:[%s2545_s1 + $0x9b] sm:$0x10] %vm3_vm0, %v836_v30  }
  0xff   :  { %1175 = vst.msk [vmem:[%s2545_s1 + $0xba] sm:$0x20] %vm3_vm0, %v836_v30   ;;  %1176 = vst.msk [vmem:[%s2545_s1 + $0xd9] sm:$0x40] %vm3_vm0, %v836_v30  }
 0x100   :  { %1177 = vst.msk [vmem:[%s2545_s1 + $0xf8] sm:$0x80] %vm3_vm0, %v836_v30  }

// kernel: hyper_conv2d_kernel_net.1
= control target key start
LH: loop header
LB: loop body
LE: loop exit
PB: predicated region body
PF: predicated region fallthrough
CT: control target
= control target key end

     0   :  { %vm174_vm0 = vcmask 64512   ;;  %v3108_v0 = vmov 0   ;;  %vm774_vm2 = vcmask 130048   ;;  %s4521_s2 = inlined_call_operand.vmem [shape: f32[144,1], index: 2, kind: input, shape index: {}]   ;;  %s4522_s0 = inlined_call_operand.vmem [shape: f32[128,8], index: 0, kind: input, shape index: {}]   ;;  %s4523_s1 = inlined_call_operand.vmem [shape: f32[144,8], index: 1, kind: input, shape index: {}]   ;;  %s4524_s4 = inlined_call_operand.vmem [shape: f32[288,1], index: 4, kind: input, shape index: {}]   ;;  %s4525_s6 = inlined_call_operand.vmem [shape: f32[288,1], index: 6, kind: input, shape index: {}]   ;;  %s4526_s8 = inlined_call_operand.vmem [shape: f32[36,1], index: 8, kind: input, shape index: {}]   ;;  %s4527_s3 = inlined_call_operand.vmem [shape: f32[288,144], index: 3, kind: input, shape index: {}]   ;;  %s4528_s5 = inlined_call_operand.vmem [shape: f32[288,288], index: 5, kind: input, shape index: {}]   ;;  %s4529_s7 = inlined_call_operand.vmem [shape: f32[36,288], index: 7, kind: input, shape index: {}]   ;;  %s4530_s9 = inlined_call_operand.vmem [shape: f32[36,128], index: 9, kind: output, shape index: {}]  }
   0x1   :  { %3107 = vset.pattern.permute.xlu1 %v3108_v0  ;;  %3106 = vset.pattern.permute.xlu0 %v3108_v0  ;;  %v68_v1 = vld [vmem:[%s4521_s2 + $0x10] sm:$0xff]  ;;  %v66_v2 = vld [vmem:[%s4521_s2] sm:$0xff]  ;;  %v51_v4 = vld [vmem:[%s4522_s0 + $0x8] sm:$0xff] }
   0x2   :  { %v50_v3 = vld [vmem:[%s4522_s0] sm:$0xff]  ;;  %96 = vperm.xlu1 %3107, %v68_v1   ;;  %86 = vperm.xlu0 %3106, %v66_v2   ;;  %vm3176_vm1 = vmpackc.low %vm174_vm0, %vm174_vm0  ;;  %v69_v7 = vld [vmem:[%s4521_s2 + $0x18] sm:$0xff] }
   0x3   :  { %v2901_v6 = vpack.c.bf16 %v51_v4, %v50_v3  ;;  %v67_v8 = vld [vmem:[%s4521_s2 + $0x8] sm:$0xff]  ;;  %v52_v9 = vld [vmem:[%s4522_s0 + $0x10] sm:$0xff]  ;;  %v53_v10 = vld [vmem:[%s4522_s0 + $0x18] sm:$0xff] }
   0x4   :  { %v2907_v11 = vpack.c.bf16 %v53_v10, %v52_v9  ;;  %v71_v12 = vld [vmem:[%s4521_s2 + $0x28] sm:$0xff]  ;;  %v70_v13 = vld [vmem:[%s4521_s2 + $0x20] sm:$0xff]  ;;  %v73_v16 = vld [vmem:[%s4521_s2 + $0x38] sm:$0xff] }
   0x5   :  { %2903 = vmatprep.subr.msk.bf16.mxu0 %vm3176_vm1, %v2901_v6  ;;  %v54_v14 = vld [vmem:[%s4522_s0 + $0x20] sm:$0xff]  ;;  %v55_v15 = vld [vmem:[%s4522_s0 + $0x28] sm:$0xff]  ;;  %v72_v18 = vld [vmem:[%s4521_s2 + $0x30] sm:$0xff] }
   0x6   :  { %2906 = vmatpush3.bf16.xpose.msk.msra.mxu0 %vm3176_vm1, %v2901_v6  ;;  %101 = vperm.xlu1 %3107, %v69_v7   ;;  %v2913_v17 = vpack.c.bf16 %v55_v15, %v54_v14  ;;  %v75_v19 = vld [vmem:[%s4521_s2 + $0x48] sm:$0xff]  ;;  %v74_v20 = vld [vmem:[%s4521_s2 + $0x40] sm:$0xff]  ;;  %v56_v21 = vld [vmem:[%s4522_s0 + $0x30] sm:$0xff] }
   0x7   :  { %91 = vperm.xlu0 %3106, %v67_v8   ;;  %2909 = vmatprep.subr.msk.bf16.mxu0 %vm3176_vm1, %v2907_v11  ;;  %v57_v22 = vld [vmem:[%s4522_s0 + $0x38] sm:$0xff]  ;;  %v32_v23 = vld [vmem:[%s4523_s1] sm:$0xff]  ;;  %v76_v26 = vld [vmem:[%s4521_s2 + $0x50] sm:$0xff] }
   0x8   :  { %v77_v24 = vld [vmem:[%s4521_s2 + $0x58] sm:$0xff]  ;;  %v2919_v25 = vpack.c.bf16 %v57_v22, %v56_v21  ;;  %2789 = vmatprep.mubr.msk.f32.mxu0 %vm174_vm0, %v32_v23  ;;  %v79_v27 = vld [vmem:[%s4521_s2 + $0x68] sm:$0xff]  ;;  %v78_v28 = vld [vmem:[%s4521_s2 + $0x60] sm:$0xff] }
   0x9   :  { %v58_v29 = vld [vmem:[%s4522_s0 + $0x40] sm:$0xff]  ;;  %v59_v30 = vld [vmem:[%s4522_s0 + $0x48] sm:$0xff]  ;;  %v81_v31 = vld [vmem:[%s4521_s2 + $0x78] sm:$0xff] }
   0xa   :  { %111 = vperm.xlu1 %3107, %v71_v12   ;;  %v2925_v32 = vpack.c.bf16 %v59_v30, %v58_v29  ;;  %v80_v33 = vld [vmem:[%s4521_s2 + $0x70] sm:$0xff]  ;;  %v83_v34 = vld [vmem:[%s4521_s2 + $0x88] sm:$0xff]  ;;  %v82_v35 = vld [vmem:[%s4521_s2 + $0x80] sm:$0xff] }
   0xb   :  { %106 = vperm.xlu0 %3106, %v70_v13   ;;  %v60_v36 = vld [vmem:[%s4522_s0 + $0x50] sm:$0xff]  ;;  %v61_v37 = vld [vmem:[%s4522_s0 + $0x58] sm:$0xff]  ;;  %v559_v38 = vld [vmem:[%s4524_s4 + $0x8] sm:$0xff] }
   0xc   :  { %v2931_v39 = vpack.c.bf16 %v61_v37, %v60_v36  ;;  %v558_v40 = vld [vmem:[%s4524_s4] sm:$0xff]  ;;  %v561_v41 = vld [vmem:[%s4524_s4 + $0x18] sm:$0xff]  ;;  %v560_v42 = vld [vmem:[%s4524_s4 + $0x10] sm:$0xff] }
   0xd   :  { %v62_v43 = vld [vmem:[%s4522_s0 + $0x60] sm:$0xff]  ;;  %v63_v44 = vld [vmem:[%s4522_s0 + $0x68] sm:$0xff]  ;;  %v565_v48 = vld [vmem:[%s4524_s4 + $0x38] sm:$0xff] }
   0xe   :  { %2912 = vmatpush3.bf16.xpose.msk.msra.mxu0 %vm3176_vm1, %v2907_v11  ;;  %121 = vperm.xlu1 %3107, %v73_v16   ;;  %v563_v45 = vld [vmem:[%s4524_s4 + $0x28] sm:$0xff]  ;;  %v2937_v46 = vpack.c.bf16 %v63_v44, %v62_v43  ;;  %v562_v47 = vld [vmem:[%s4524_s4 + $0x20] sm:$0xff]  ;;  %v564_v49 = vld [vmem:[%s4524_s4 + $0x30] sm:$0xff] }
   0xf   :  { %116 = vperm.xlu0 %3106, %v72_v18   ;;  %2915 = vmatprep.subr.msk.bf16.mxu0 %vm3176_vm1, %v2913_v17  ;;  %v64_v50 = vld [vmem:[%s4522_s0 + $0x70] sm:$0xff]  ;;  %v65_v51 = vld [vmem:[%s4522_s0 + $0x78] sm:$0xff]  ;;  %v567_v52 = vld [vmem:[%s4524_s4 + $0x48] sm:$0xff] }
  0x10   :  { %v2943_v53 = vpack.c.bf16 %v65_v51, %v64_v50  ;;  %v566_v54 = vld [vmem:[%s4524_s4 + $0x40] sm:$0xff]  ;;  %v569_v55 = vld [vmem:[%s4524_s4 + $0x58] sm:$0xff]  ;;  %v568_v56 = vld [vmem:[%s4524_s4 + $0x50] sm:$0xff] }
  0x11   :  { %v571_v57 = vld [vmem:[%s4524_s4 + $0x68] sm:$0xff]  ;;  %v570_v58 = vld [vmem:[%s4524_s4 + $0x60] sm:$0xff]  ;;  %v573_v59 = vld [vmem:[%s4524_s4 + $0x78] sm:$0xff] }
  0x12   :  { %131 = vperm.xlu1 %3107, %v75_v19   ;;  %v572_v60 = vld [vmem:[%s4524_s4 + $0x70] sm:$0xff]  ;;  %v33_v61 = vld [vmem:[%s4523_s1 + $0x8] sm:$0xff]  ;;  %v574_v0 = vld [vmem:[%s4524_s4 + $0x80] sm:$0xff] }
  0x13   :  { %126 = vperm.xlu0 %3106, %v74_v20   ;;  %v575_v62 = vld [vmem:[%s4524_s4 + $0x88] sm:$0xff]  ;;  %v34_v63 = vld [vmem:[%s4523_s1 + $0x10] sm:$0xff]  ;;  %v35_v1 = vld [vmem:[%s4523_s1 + $0x18] sm:$0xff] }
  0x14   :  { %v577_v2 = vld [vmem:[%s4524_s4 + $0x98] sm:$0xff]  ;;  %v36_v3 = vld [vmem:[%s4523_s1 + $0x20] sm:$0xff]  ;;  %v576_v4 = vld [vmem:[%s4524_s4 + $0x90] sm:$0xff] }
  0x15   :  { %v37_v5 = vld [vmem:[%s4523_s1 + $0x28] sm:$0xff]  ;;  %v38_v7 = vld [vmem:[%s4523_s1 + $0x30] sm:$0xff]  ;;  %v578_v8 = vld [vmem:[%s4524_s4 + $0xa0] sm:$0xff] }
  0x16   :  { %2918 = vmatpush3.bf16.xpose.msk.msra.mxu0 %vm3176_vm1, %v2913_v17  ;;  %141 = vperm.xlu1 %3107, %v77_v24   ;;  %v579_v6 = vld [vmem:[%s4524_s4 + $0xa8] sm:$0xff]  ;;  %v39_v9 = vld [vmem:[%s4523_s1 + $0x38] sm:$0xff]  ;;  %v40_v11 = vld [vmem:[%s4523_s1 + $0x40] sm:$0xff] }
  0x17   :  { %136 = vperm.xlu0 %3106, %v76_v26   ;;  %2921 = vmatprep.subr.msk.bf16.mxu0 %vm3176_vm1, %v2919_v25  ;;  %v581_v10 = vld [vmem:[%s4524_s4 + $0xb8] sm:$0xff]  ;;  %v580_v12 = vld [vmem:[%s4524_s4 + $0xb0] sm:$0xff]  ;;  %v41_v13 = vld [vmem:[%s4523_s1 + $0x48] sm:$0xff] }
  0x18   :  { %v583_v14 = vld [vmem:[%s4524_s4 + $0xc8] sm:$0xff]  ;;  %v42_v15 = vld [vmem:[%s4523_s1 + $0x50] sm:$0xff]  ;;  %v582_v16 = vld [vmem:[%s4524_s4 + $0xc0] sm:$0xff] }
  0x19   :  { %v43_v17 = vld [vmem:[%s4523_s1 + $0x58] sm:$0xff]  ;;  %v44_v19 = vld [vmem:[%s4523_s1 + $0x60] sm:$0xff]  ;;  %v584_v20 = vld [vmem:[%s4524_s4 + $0xd0] sm:$0xff] }
  0x1a   :  { %151 = vperm.xlu1 %3107, %v79_v27   ;;  %v585_v18 = vld [vmem:[%s4524_s4 + $0xd8] sm:$0xff]  ;;  %v45_v21 = vld [vmem:[%s4523_s1 + $0x68] sm:$0xff]  ;;  %v46_v23 = vld [vmem:[%s4523_s1 + $0x70] sm:$0xff] }
  0x1b   :  { %146 = vperm.xlu0 %3106, %v78_v28   ;;  %v587_v22 = vld [vmem:[%s4524_s4 + $0xe8] sm:$0xff]  ;;  %v586_v24 = vld [vmem:[%s4524_s4 + $0xe0] sm:$0xff]  ;;  %v589_v26 = vld [vmem:[%s4524_s4 + $0xf8] sm:$0xff] }
  0x1c   :  { %v48_v27 = vld [vmem:[%s4523_s1 + $0x80] sm:$0xff]  ;;  %v588_v28 = vld [vmem:[%s4524_s4 + $0xf0] sm:$0xff]  ;;  %v49_v29 = vld [vmem:[%s4523_s1 + $0x88] sm:$0xff] }
  0x1d   :  { %v591_v30 = vld [vmem:[%s4524_s4 + $0x108] sm:$0xff]  ;;  %v1344_v37 = vld [vmem:[%s4525_s6] sm:$0xff] }
  0x1e   :  { %2924 = vmatpush3.bf16.xpose.msk.msra.mxu0 %vm3176_vm1, %v2919_v25  ;;  %161 = vperm.xlu1 %3107, %v81_v31   ;;  %v47_v25 = vld [vmem:[%s4523_s1 + $0x78] sm:$0xff]  ;;  %v590_v31 = vld [vmem:[%s4524_s4 + $0x100] sm:$0xff]  ;;  %v1345_v36 = vld [vmem:[%s4525_s6 + $0x8] sm:$0xff] }
  0x1f   :  { %156 = vperm.xlu0 %3106, %v80_v33   ;;  %2927 = vmatprep.subr.msk.bf16.mxu0 %vm3176_vm1, %v2925_v32  ;;  %v592_v33 = vld [vmem:[%s4524_s4 + $0x110] sm:$0xff]  ;;  %v1364_v43 = vld [vmem:[%s4525_s6 + $0xa0] sm:$0xff]  ;;  %v1349_v44 = vld [vmem:[%s4525_s6 + $0x28] sm:$0xff] }
  0x20   :  { %v1369_v50 = vld [vmem:[%s4525_s6 + $0xc8] sm:$0xff]  ;;  %v1368_v51 = vld [vmem:[%s4525_s6 + $0xc0] sm:$0xff] }
  0x22   :  { %171 = vperm.xlu1 %3107, %v83_v34   ;;  %v1361_v34 = vld [vmem:[%s4525_s6 + $0x88] sm:$0xff] }
  0x23   :  { %166 = vperm.xlu0 %3106, %v82_v35   ;;  %v1360_v35 = vld [vmem:[%s4525_s6 + $0x80] sm:$0xff] }
  0x26   :  { %2930 = vmatpush3.bf16.xpose.msk.msra.mxu0 %vm3176_vm1, %v2925_v32  ;;  %601 = vperm.xlu1 %3107, %v559_v38   ;;  %v593_v32 = vld [vmem:[%s4524_s4 + $0x118] sm:$0xff] }
  0x27   :  { %596 = vperm.xlu0 %3106, %v558_v40   ;;  %2933 = vmatprep.subr.msk.bf16.mxu0 %vm3176_vm1, %v2931_v39  ;;  %v1363_v38 = vld [vmem:[%s4525_s6 + $0x98] sm:$0xff] }
  0x28   :  { %v1347_v40 = vld [vmem:[%s4525_s6 + $0x18] sm:$0xff] }
  0x2a   :  { %611 = vperm.xlu1 %3107, %v561_v41   ;;  %v1346_v41 = vld [vmem:[%s4525_s6 + $0x10] sm:$0xff] }
  0x2b   :  { %606 = vperm.xlu0 %3106, %v560_v42   ;;  %v1365_v42 = vld [vmem:[%s4525_s6 + $0xa8] sm:$0xff] }
  0x2e   :  { %2936 = vmatpush3.bf16.xpose.msk.msra.mxu0 %vm3176_vm1, %v2931_v39  ;;  %621 = vperm.xlu1 %3107, %v563_v45   ;;  %v1362_v39 = vld [vmem:[%s4525_s6 + $0x90] sm:$0xff]  ;;  %v1348_v45 = vld [vmem:[%s4525_s6 + $0x20] sm:$0xff] }
  0x2f   :  { %616 = vperm.xlu0 %3106, %v562_v47   ;;  %2939 = vmatprep.subr.msk.bf16.mxu0 %vm3176_vm1, %v2937_v46  ;;  %v1366_v47 = vld [vmem:[%s4525_s6 + $0xb0] sm:$0xff] }
  0x32   :  { %631 = vperm.xlu1 %3107, %v565_v48   ;;  %v1351_v48 = vld [vmem:[%s4525_s6 + $0x38] sm:$0xff] }
  0x33   :  { %626 = vperm.xlu0 %3106, %v564_v49   ;;  %v1350_v49 = vld [vmem:[%s4525_s6 + $0x30] sm:$0xff] }
  0x36   :  { %2942 = vmatpush3.bf16.xpose.msk.msra.mxu0 %vm3176_vm1, %v2937_v46  ;;  %641 = vperm.xlu1 %3107, %v567_v52   ;;  %v1367_v46 = vld [vmem:[%s4525_s6 + $0xb8] sm:$0xff]  ;;  %v1353_v52 = vld [vmem:[%s4525_s6 + $0x48] sm:$0xff] }
  0x37   :  { %636 = vperm.xlu0 %3106, %v566_v54   ;;  %2945 = vmatprep.subr.msk.bf16.mxu0 %vm3176_vm1, %v2943_v53  ;;  %v1371_v54 = vld [vmem:[%s4525_s6 + $0xd8] sm:$0xff] }
  0x3a   :  { %651 = vperm.xlu1 %3107, %v569_v55   ;;  %v1370_v55 = vld [vmem:[%s4525_s6 + $0xd0] sm:$0xff] }
  0x3b   :  { %646 = vperm.xlu0 %3106, %v568_v56   ;;  %v1355_v56 = vld [vmem:[%s4525_s6 + $0x58] sm:$0xff] }
  0x3e   :  { %2948 = vmatpush3.bf16.xpose.msk.msra.mxu0 %vm3176_vm1, %v2943_v53  ;;  %661 = vperm.xlu1 %3107, %v571_v57   ;;  %v1352_v53 = vld [vmem:[%s4525_s6 + $0x40] sm:$0xff]  ;;  %v1354_v57 = vld [vmem:[%s4525_s6 + $0x50] sm:$0xff] }
  0x3f   :  { %656 = vperm.xlu0 %3106, %v570_v58   ;;  %v1373_v58 = vld [vmem:[%s4525_s6 + $0xe8] sm:$0xff] }
  0x42   :  { %671 = vperm.xlu1 %3107, %v573_v59   ;;  %v1372_v59 = vld [vmem:[%s4525_s6 + $0xe0] sm:$0xff] }
  0x43   :  { %666 = vperm.xlu0 %3106, %v572_v60   ;;  %v1357_v60 = vld [vmem:[%s4525_s6 + $0x68] sm:$0xff] }
  0x45   :  { %2790 = vmatmul.mubr.msk.f32.vlgmr.msra.gmra.mrb[0].mxu0 %vm174_vm0, %v33_v61  ;;  %v1356_v61 = vld [vmem:[%s4525_s6 + $0x60] sm:$0xff] }
  0x46   :  { %681 = vperm.xlu1 %3107, %v575_v62   ;;  %2792 = vmatprep.mubr.msk.f32.mxu0 %vm174_vm0, %v34_v63  ;;  %v4533_v62 = vmov 0.0|0.0   ;;  %v1375_v63 = vld [vmem:[%s4525_s6 + $0xf8] sm:$0xff] }
  0x47   :  { %676 = vperm.xlu0 %3106, %v574_v0   ;;  %2949 = vmatprep.subr.bf16.mxu1 %v4533_v62  ;;  %v1374_v0 = vld [vmem:[%s4525_s6 + $0xf0] sm:$0xff] }
  0x48   :  { %2976 = vmatprep.subr.bf16.mxu0 %v4533_v62 }
  0x49   :  { %2793 = vmatmul.mubr.msk.f32.gmra.mrb[2].mxu0 %vm174_vm0, %v35_v1  ;;  %v1359_v1 = vld [vmem:[%s4525_s6 + $0x78] sm:$0xff] }
  0x4a   :  { %691 = vperm.xlu1 %3107, %v577_v2   ;;  %2795 = vmatprep.mubr.msk.f32.mxu0 %vm174_vm0, %v36_v3  ;;  %v1358_v2 = vld [vmem:[%s4525_s6 + $0x70] sm:$0xff]  ;;  %v1377_v3 = vld [vmem:[%s4525_s6 + $0x108] sm:$0xff] }
  0x4b   :  { %686 = vperm.xlu0 %3106, %v576_v4   ;;  %v1376_v4 = vld [vmem:[%s4525_s6 + $0x100] sm:$0xff] }
  0x4d   :  { %2796 = vmatmul.mubr.msk.f32.gmra.mrb[4].mxu0 %vm174_vm0, %v37_v5  ;;  %v1379_v5 = vld [vmem:[%s4525_s6 + $0x118] sm:$0xff] }
  0x4e   :  { %701 = vperm.xlu1 %3107, %v579_v6   ;;  %2798 = vmatprep.mubr.msk.f32.mxu0 %vm174_vm0, %v38_v7  ;;  %v1378_v6 = vld [vmem:[%s4525_s6 + $0x110] sm:$0xff]  ;;  %v2283_v7 = vld [vmem:[%s4526_s8 + $0x8] sm:$0xff] }
  0x4f   :  { %696 = vperm.xlu0 %3106, %v578_v8   ;;  %v2282_v8 = vld [vmem:[%s4526_s8] sm:$0xff] }
  0x51   :  { %2799 = vmatmul.mubr.msk.f32.gmra.mrb[6].mxu0 %vm174_vm0, %v39_v9  ;;  %v2285_v9 = vld [vmem:[%s4526_s8 + $0x18] sm:$0xff] }
  0x52   :  { %711 = vperm.xlu1 %3107, %v581_v10   ;;  %2801 = vmatprep.mubr.msk.f32.mxu0 %vm174_vm0, %v40_v11  ;;  %v2284_v10 = vld [vmem:[%s4526_s8 + $0x10] sm:$0xff]  ;;  %v2286_v11 = vld [vmem:[%s4526_s8 + $0x20] sm:$0xf] }
  0x53   :  { %706 = vperm.xlu0 %3106, %v580_v12   ;;  %v487_v12 = vld [vmem:[%s4527_s3 + $0x8] sm:$0xff] }
  0x54   :  { %2550 = vmatprep.mubr.msk.f32.mxu1 %vm774_vm2, %v487_v12 }
  0x55   :  { %2802 = vmatmul.mubr.msk.f32.gmra.mrb[8].mxu0 %vm174_vm0, %v41_v13 }
  0x56   :  { %721 = vperm.xlu1 %3107, %v583_v14   ;;  %2804 = vmatprep.mubr.msk.f32.mxu0 %vm174_vm0, %v42_v15 }
  0x57   :  { %716 = vperm.xlu0 %3106, %v582_v16  }
  0x59   :  { %2805 = vmatmul.mubr.msk.f32.gmra.mrb[10].mxu0 %vm174_vm0, %v43_v17 }
  0x5a   :  { %731 = vperm.xlu1 %3107, %v585_v18   ;;  %2807 = vmatprep.mubr.msk.f32.mxu0 %vm174_vm0, %v44_v19 }
  0x5b   :  { %726 = vperm.xlu0 %3106, %v584_v20  }
  0x5d   :  { %2808 = vmatmul.mubr.msk.f32.gmra.mrb[12].mxu0 %vm174_vm0, %v45_v21 }
  0x5e   :  { %741 = vperm.xlu1 %3107, %v587_v22   ;;  %2810 = vmatprep.mubr.msk.f32.mxu0 %vm174_vm0, %v46_v23 }
  0x5f   :  { %736 = vperm.xlu0 %3106, %v586_v24  }
  0x61   :  { %2811 = vmatmul.mubr.msk.f32.gmra.mrb[14].mxu0 %vm174_vm0, %v47_v25 }
  0x62   :  { %751 = vperm.xlu1 %3107, %v589_v26   ;;  %2813 = vmatprep.mubr.msk.f32.mxu0 %vm174_vm0, %v48_v27 }
  0x63   :  { %746 = vperm.xlu0 %3106, %v588_v28  }
  0x65   :  { %2814 = vmatmul.mubr.msk.f32.gmra.mrb[16].mxu0 %vm174_vm0, %v49_v29 }
  0x66   :  { %761 = vperm.xlu1 %3107, %v591_v30  }
  0x67   :  { %756 = vperm.xlu0 %3106, %v590_v31  }
  0x6a   :  { %771 = vperm.xlu1 %3107, %v593_v32  }
  0x6b   :  { %766 = vperm.xlu0 %3106, %v592_v33  }
  0x6e   :  { %1467 = vperm.xlu1 %3107, %v1361_v34  }
  0x6f   :  { %1462 = vperm.xlu0 %3106, %v1360_v35  }
  0x72   :  { %1387 = vperm.xlu1 %3107, %v1345_v36  }
  0x73   :  { %1382 = vperm.xlu0 %3106, %v1344_v37  }
  0x76   :  { %1477 = vperm.xlu1 %3107, %v1363_v38  }
  0x77   :  { %1472 = vperm.xlu0 %3106, %v1362_v39  }
  0x7a   :  { %1397 = vperm.xlu1 %3107, %v1347_v40  }
  0x7b   :  { %1392 = vperm.xlu0 %3106, %v1346_v41  }
  0x7e   :  { %1487 = vperm.xlu1 %3107, %v1365_v42  }
  0x7f   :  { %1482 = vperm.xlu0 %3106, %v1364_v43  }
  0x81   :  { %v97_v13 = vpop.permute.xlu1 %96  ;;  %v87_v14 = vpop.permute.xlu0 %86 }
  0x82   :  { %1407 = vperm.xlu1 %3107, %v1349_v44  }
  0x83   :  { %1402 = vperm.xlu0 %3106, %v1348_v45  }
  0x85   :  { %v102_v15 = vpop.permute.xlu1 %101 }
  0x86   :  { %1497 = vperm.xlu1 %3107, %v1367_v46   ;;  %v92_v16 = vpop.permute.xlu0 %91 }
  0x87   :  { %1492 = vperm.xlu0 %3106, %v1366_v47  }
  0x89   :  { %v112_v17 = vpop.permute.xlu1 %111 }
  0x8a   :  { %1417 = vperm.xlu1 %3107, %v1351_v48   ;;  %v107_v18 = vpop.permute.xlu0 %106 }
  0x8b   :  { %1412 = vperm.xlu0 %3106, %v1350_v49  }
  0x8d   :  { %v122_v22 = vpop.permute.xlu1 %121 }
  0x8e   :  { %1507 = vperm.xlu1 %3107, %v1369_v50   ;;  %v117_v24 = vpop.permute.xlu0 %116 }
  0x8f   :  { %1502 = vperm.xlu0 %3106, %v1368_v51  }
  0x91   :  { %v132_v35 = vpop.permute.xlu1 %131 }
  0x92   :  { %1427 = vperm.xlu1 %3107, %v1353_v52   ;;  %v127_v38 = vpop.permute.xlu0 %126 }
  0x93   :  { %1422 = vperm.xlu0 %3106, %v1352_v53  }
  0x95   :  { %v142_v51 = vpop.permute.xlu1 %141 }
  0x96   :  { %1517 = vperm.xlu1 %3107, %v1371_v54   ;;  %v137_v54 = vpop.permute.xlu0 %136 }
  0x97   :  { %1512 = vperm.xlu0 %3106, %v1370_v55  }
  0x9a   :  { %1437 = vperm.xlu1 %3107, %v1355_v56  }
  0x9b   :  { %1432 = vperm.xlu0 %3106, %v1354_v57  }
  0x9e   :  { %1527 = vperm.xlu1 %3107, %v1373_v58  }
  0x9f   :  { %1522 = vperm.xlu0 %3106, %v1372_v59  }
  0xa2   :  { %1447 = vperm.xlu1 %3107, %v1357_v60  }
  0xa3   :  { %1442 = vperm.xlu0 %3106, %v1356_v61  }
  0xa6   :  { %1537 = vperm.xlu1 %3107, %v1375_v63  }
  0xa7   :  { %1532 = vperm.xlu0 %3106, %v1374_v0  }
  0xaa   :  { %1457 = vperm.xlu1 %3107, %v1359_v1  }
  0xab   :  { %1452 = vperm.xlu0 %3106, %v1358_v2  }
  0xae   :  { %1547 = vperm.xlu1 %3107, %v1377_v3   ;;  %v152_v3 = vpop.permute.xlu1 %151 }
  0xaf   :  { %1542 = vperm.xlu0 %3106, %v1376_v4  }
  0xb2   :  { %1557 = vperm.xlu1 %3107, %v1379_v5  }
  0xb3   :  { %1552 = vperm.xlu0 %3106, %v1378_v6   ;;  %v147_v6 = vpop.permute.xlu0 %146 }
  0xb6   :  { %2294 = vperm.xlu1 %3107, %v2283_v7  }
  0xb7   :  { %2289 = vperm.xlu0 %3106, %v2282_v8  }
  0xba   :  { %2304 = vperm.xlu1 %3107, %v2285_v9  }
  0xbb   :  { %2299 = vperm.xlu0 %3106, %v2284_v10  }
  0xbf   :  { %2309 = vperm.xlu0 %3106, %v2286_v11  }
 0x118   :  { %v2791_v19 = vpop.f32.mrb[0].mxu0 }
 0x119   :  { %v349_v20 = vadd.f32 %v2791_v19, %v92_v16  ;;  %v343_v21 = vpop.f32.mrb[1].mxu0  ;;  %v162_v19 = vpop.permute.xlu1 %161 }
 0x11a   :  { %v344_v23 = vadd.f32 %v343_v21, %v87_v14 }
 0x11b   :  { %v451_v25 = vmul.f32 0.01, %v349_v20  ;;  %vm433_vm3 = vcmp.ge.f32.partialorder %v349_v20, 0.0 }
 0x11c   :  { %v450_v26 = vmul.f32 0.01, %v344_v23  ;;  %v2794_v27 = vpop.f32.mrb[2].mxu0  ;;  %vm432_vm4 = vcmp.ge.f32.partialorder %v344_v23, 0.0 }
 0x11d   :  { %v359_v28 = vadd.f32 %v2794_v27, %v102_v15  ;;  %v353_v29 = vpop.f32.mrb[3].mxu0  ;;  %v469_v30 = vsel %vm433_vm3, %v349_v20, %v451_v25 }
 0x11e   :  { %v354_v31 = vadd.f32 %v353_v29, %v97_v13  ;;  %v468_v32 = vsel %vm432_vm4, %v344_v23, %v450_v26 }
 0x11f   :  { %vm435_vm5 = vcmp.ge.f32.partialorder %v359_v28, 0.0  ;;  %v453_v33 = vmul.f32 0.01, %v359_v28  ;;  %v2950_v34 = vpack.c.bf16 %v469_v30, %v468_v32 }
 0x120   :  { %vm434_vm6 = vcmp.ge.f32.partialorder %v354_v31, 0.0  ;;  %v452_v36 = vmul.f32 0.01, %v354_v31  ;;  %v2797_v37 = vpop.f32.mrb[4].mxu0 }
 0x121   :  { %v369_v39 = vadd.f32 %v2797_v37, %v112_v17  ;;  %v363_v40 = vpop.f32.mrb[5].mxu0  ;;  %2951 = vmatpush1.bf16.msra.mxu1 %v2950_v34  ;;  %v471_v41 = vsel %vm435_vm5, %v359_v28, %v453_v33  ;;  %v172_v34 = vpop.permute.xlu1 %171 }
 0x122   :  { %v364_v42 = vadd.f32 %v363_v40, %v107_v18  ;;  %2952 = vmatprep.subr.bf16.mxu1 %v4533_v62  ;;  %v470_v43 = vsel %vm434_vm6, %v354_v31, %v452_v36 }
 0x123   :  { %vm437_vm7 = vcmp.ge.f32.partialorder %v369_v39, 0.0  ;;  %v455_v44 = vmul.f32 0.01, %v369_v39  ;;  %v2953_v45 = vpack.c.bf16 %v471_v41, %v470_v43 }
 0x124   :  { %vm436_vm8 = vcmp.ge.f32.partialorder %v364_v42, 0.0  ;;  %v454_v46 = vmul.f32 0.01, %v364_v42  ;;  %v2800_v47 = vpop.f32.mrb[6].mxu0 }
 0x125   :  { %v379_v48 = vadd.f32 %v2800_v47, %v122_v22  ;;  %v373_v49 = vpop.f32.mrb[7].mxu0  ;;  %2954 = vmatpush1.bf16.msra.mxu1 %v2953_v45  ;;  %v473_v50 = vsel %vm437_vm7, %v369_v39, %v455_v44  ;;  %v157_v22 = vpop.permute.xlu0 %156 }
 0x126   :  { %v374_v52 = vadd.f32 %v373_v49, %v117_v24  ;;  %2955 = vmatprep.subr.bf16.mxu1 %v4533_v62  ;;  %v472_v53 = vsel %vm436_vm8, %v364_v42, %v454_v46  ;;  %v486_v49 = vld [vmem:[%s4527_s3] sm:$0xff] }
 0x127   :  { %vm439_vm9 = vcmp.ge.f32.partialorder %v379_v48, 0.0  ;;  %v457_v55 = vmul.f32 0.01, %v379_v48  ;;  %v2956_v56 = vpack.c.bf16 %v473_v50, %v472_v53  ;;  %v489_v50 = vld [vmem:[%s4527_s3 + $0x18] sm:$0xff]  ;;  %v490_v53 = vld [vmem:[%s4527_s3 + $0x20] sm:$0xff] }
 0x128   :  { %vm438_vm10 = vcmp.ge.f32.partialorder %v374_v52, 0.0  ;;  %v456_v57 = vmul.f32 0.01, %v374_v52  ;;  %v2803_v58 = vpop.f32.mrb[8].mxu0 }
 0x129   :  { %v389_v59 = vadd.f32 %v2803_v58, %v132_v35  ;;  %v383_v60 = vpop.f32.mrb[9].mxu0  ;;  %2957 = vmatpush1.bf16.msra.mxu1 %v2956_v56  ;;  %v475_v61 = vsel %vm439_vm9, %v379_v48, %v457_v55  ;;  %v167_v37 = vpop.permute.xlu0 %166  ;;  %v492_v55 = vld [vmem:[%s4527_s3 + $0x30] sm:$0xff]  ;;  %v495_v56 = vld [vmem:[%s4527_s3 + $0x48] sm:$0xff]  ;;  %v497_v58 = vld [vmem:[%s4527_s3 + $0x58] sm:$0xff] }
 0x12a   :  { %v384_v63 = vadd.f32 %v383_v60, %v127_v38  ;;  %2958 = vmatprep.subr.bf16.mxu1 %v4533_v62  ;;  %v474_v0 = vsel %vm438_vm10, %v374_v52, %v456_v57  ;;  %v491_v52 = vld [vmem:[%s4527_s3 + $0x28] sm:$0xff]  ;;  %v494_v57 = vld [vmem:[%s4527_s3 + $0x40] sm:$0xff] }
 0x12b   :  { %vm441_vm11 = vcmp.ge.f32.partialorder %v389_v59, 0.0  ;;  %v459_v1 = vmul.f32 0.01, %v389_v59  ;;  %v2959_v2 = vpack.c.bf16 %v475_v61, %v474_v0  ;;  %v499_v60 = vld [vmem:[%s4527_s3 + $0x68] sm:$0xff]  ;;  %v498_v61 = vld [vmem:[%s4527_s3 + $0x60] sm:$0xff]  ;;  %v500_v0 = vld [vmem:[%s4527_s3 + $0x70] sm:$0xff] }
 0x12c   :  { %vm440_vm12 = vcmp.ge.f32.partialorder %v384_v63, 0.0  ;;  %v458_v4 = vmul.f32 0.01, %v384_v63  ;;  %v2806_v5 = vpop.f32.mrb[10].mxu0 }
 0x12d   :  { %v399_v7 = vadd.f32 %v2806_v5, %v142_v51  ;;  %v393_v8 = vpop.f32.mrb[11].mxu0  ;;  %2960 = vmatpush1.bf16.msra.mxu1 %v2959_v2  ;;  %v477_v9 = vsel %vm441_vm11, %v389_v59, %v459_v1  ;;  %v488_v51 = vld [vmem:[%s4527_s3 + $0x10] sm:$0xff]  ;;  %v503_v1 = vld [vmem:[%s4527_s3 + $0x88] sm:$0xff]  ;;  %v502_v2 = vld [vmem:[%s4527_s3 + $0x80] sm:$0xff] }
 0x12e   :  { %v394_v10 = vadd.f32 %v393_v8, %v137_v54  ;;  %2961 = vmatprep.subr.bf16.mxu1 %v4533_v62  ;;  %v476_v11 = vsel %vm440_vm12, %v384_v63, %v458_v4  ;;  %v493_v54 = vld [vmem:[%s4527_s3 + $0x38] sm:$0xff]  ;;  %v496_v59 = vld [vmem:[%s4527_s3 + $0x50] sm:$0xff]  ;;  %v507_v5 = vld [vmem:[%s4527_s3 + $0xa8] sm:$0xff] }
 0x12f   :  { %vm443_vm13 = vcmp.ge.f32.partialorder %v399_v7, 0.0  ;;  %v461_v12 = vmul.f32 0.01, %v399_v7  ;;  %v2962_v13 = vpack.c.bf16 %v477_v9, %v476_v11  ;;  %v501_v63 = vld [vmem:[%s4527_s3 + $0x78] sm:$0xff]  ;;  %v504_v4 = vld [vmem:[%s4527_s3 + $0x90] sm:$0xff]  ;;  %v511_v9 = vld [vmem:[%s4527_s3 + $0xc8] sm:$0xff] }
 0x130   :  { %vm442_vm14 = vcmp.ge.f32.partialorder %v394_v10, 0.0  ;;  %v460_v14 = vmul.f32 0.01, %v394_v10  ;;  %v2809_v15 = vpop.f32.mrb[12].mxu0  ;;  %v508_v8 = vld [vmem:[%s4527_s3 + $0xb0] sm:$0xff]  ;;  %v513_v11 = vld [vmem:[%s4527_s3 + $0xd8] sm:$0xff] }
 0x131   :  { %v409_v16 = vadd.f32 %v2809_v15, %v152_v3  ;;  %v403_v17 = vpop.f32.mrb[13].mxu0  ;;  %2963 = vmatpush1.bf16.msra.mxu1 %v2962_v13  ;;  %v479_v18 = vsel %vm443_vm13, %v399_v7, %v461_v12  ;;  %v505_v3 = vld [vmem:[%s4527_s3 + $0x98] sm:$0xff]  ;;  %v512_v12 = vld [vmem:[%s4527_s3 + $0xd0] sm:$0xff]  ;;  %v515_v13 = vld [vmem:[%s4527_s3 + $0xe8] sm:$0xff] }
 0x132   :  { %v404_v20 = vadd.f32 %v403_v17, %v147_v6  ;;  %2964 = vmatprep.subr.bf16.mxu1 %v4533_v62  ;;  %v478_v21 = vsel %vm442_vm14, %v394_v10, %v460_v14  ;;  %v506_v6 = vld [vmem:[%s4527_s3 + $0xa0] sm:$0xff]  ;;  %v509_v7 = vld [vmem:[%s4527_s3 + $0xb8] sm:$0xff]  ;;  %v519_v17 = vld [vmem:[%s4527_s3 + $0x108] sm:$0xff] }
 0x133   :  { %vm445_vm15 = vcmp.ge.f32.partialorder %v409_v16, 0.0  ;;  %v463_v23 = vmul.f32 0.01, %v409_v16  ;;  %v2965_v24 = vpack.c.bf16 %v479_v18, %v478_v21  ;;  %v510_v10 = vld [vmem:[%s4527_s3 + $0xc0] sm:$0xff]  ;;  %v517_v15 = vld [vmem:[%s4527_s3 + $0xf8] sm:$0xff]  ;;  %v523_v21 = vld [vmem:[%s4527_s3 + $0x128] sm:$0xff] }
 0x134   :  { %vm444_vm0 = vcmp.ge.f32.partialorder %v404_v20, 0.0  ;;  %v462_v25 = vmul.f32 0.01, %v404_v20  ;;  %v2812_v26 = vpop.f32.mrb[14].mxu0  ;;  %v514_v14 = vld [vmem:[%s4527_s3 + $0xe0] sm:$0xff] }
 0x135   :  { %v419_v27 = vadd.f32 %v2812_v26, %v162_v19  ;;  %v413_v28 = vpop.f32.mrb[15].mxu0  ;;  %2966 = vmatpush1.bf16.msra.mxu1 %v2965_v24  ;;  %v481_v29 = vsel %vm445_vm15, %v409_v16, %v463_v23  ;;  %v516_v16 = vld [vmem:[%s4527_s3 + $0xf0] sm:$0xff]  ;;  %v518_v18 = vld [vmem:[%s4527_s3 + $0x100] sm:$0xff]  ;;  %v521_v19 = vld [vmem:[%s4527_s3 + $0x118] sm:$0xff] }
 0x136   :  { %v414_v30 = vadd.f32 %v413_v28, %v157_v22  ;;  %2967 = vmatprep.subr.bf16.mxu1 %v4533_v62  ;;  %v480_v31 = vsel %vm444_vm0, %v404_v20, %v462_v25  ;;  %v520_v20 = vld [vmem:[%s4527_s3 + $0x110] sm:$0xff]  ;;  %v522_v22 = vld [vmem:[%s4527_s3 + $0x120] sm:$0xff]  ;;  %v525_v23 = vld [vmem:[%s4527_s3 + $0x138] sm:$0xff] }
 0x137   :  { %vm447_vm1 = vcmp.ge.f32.partialorder %v419_v27, 0.0  ;;  %v465_v32 = vmul.f32 0.01, %v419_v27  ;;  %v2968_v33 = vpack.c.bf16 %v481_v29, %v480_v31  ;;  %v524_v24 = vld [vmem:[%s4527_s3 + $0x130] sm:$0xff]  ;;  %v527_v25 = vld [vmem:[%s4527_s3 + $0x148] sm:$0xff]  ;;  %v526_v26 = vld [vmem:[%s4527_s3 + $0x140] sm:$0xff] }
 0x138   :  { %vm446_vm3 = vcmp.ge.f32.partialorder %v414_v30, 0.0  ;;  %v464_v35 = vmul.f32 0.01, %v414_v30  ;;  %v2815_v36 = vpop.f32.mrb[16].mxu0  ;;  %v528_v28 = vld [vmem:[%s4527_s3 + $0x150] sm:$0xff]  ;;  %v531_v29 = vld [vmem:[%s4527_s3 + $0x168] sm:$0xff] }
 0x139   :  { %v429_v38 = vadd.f32 %v2815_v36, %v172_v34  ;;  %v423_v39 = vpop.f32.mrb[17].mxu0  ;;  %2969 = vmatpush1.bf16.msra.mxu1 %v2968_v33  ;;  %v483_v40 = vsel %vm447_vm1, %v419_v27, %v465_v32  ;;  %v529_v27 = vld [vmem:[%s4527_s3 + $0x158] sm:$0xff]  ;;  %v532_v32 = vld [vmem:[%s4527_s3 + $0x170] sm:$0xff]  ;;  %v535_v33 = vld [vmem:[%s4527_s3 + $0x188] sm:$0xff] }
 0x13a   :  { %v424_v41 = vadd.f32 %v423_v39, %v167_v37  ;;  %2970 = vmatprep.subr.bf16.mxu1 %v4533_v62  ;;  %v482_v42 = vsel %vm446_vm3, %v414_v30, %v464_v35  ;;  %v530_v30 = vld [vmem:[%s4527_s3 + $0x160] sm:$0xff]  ;;  %v533_v31 = vld [vmem:[%s4527_s3 + $0x178] sm:$0xff]  ;;  %v536_v36 = vld [vmem:[%s4527_s3 + $0x190] sm:$0xff] }
 0x13b   :  { %vm449_vm4 = vcmp.ge.f32.partialorder %v429_v38, 0.0  ;;  %v467_v43 = vmul.f32 0.01, %v429_v38  ;;  %v2971_v44 = vpack.c.bf16 %v483_v40, %v482_v42  ;;  %v534_v34 = vld [vmem:[%s4527_s3 + $0x180] sm:$0xff]  ;;  %v537_v35 = vld [vmem:[%s4527_s3 + $0x198] sm:$0xff]  ;;  %v539_v37 = vld [vmem:[%s4527_s3 + $0x1a8] sm:$0xff] }
 0x13c   :  { %vm448_vm5 = vcmp.ge.f32.partialorder %v424_v41, 0.0  ;;  %v466_v45 = vmul.f32 0.01, %v424_v41  ;;  %v541_v39 = vld [vmem:[%s4527_s3 + $0x1b8] sm:$0xff]  ;;  %v540_v40 = vld [vmem:[%s4527_s3 + $0x1b0] sm:$0xff]  ;;  %v542_v42 = vld [vmem:[%s4527_s3 + $0x1c0] sm:$0xff] }
 0x13d   :  { %2972 = vmatpush1.bf16.msra.mxu1 %v2971_v44  ;;  %v485_v46 = vsel %vm449_vm4, %v429_v38, %v467_v43  ;;  %v538_v38 = vld [vmem:[%s4527_s3 + $0x1a0] sm:$0xff]  ;;  %v545_v43 = vld [vmem:[%s4527_s3 + $0x1d8] sm:$0xff]  ;;  %v544_v44 = vld [vmem:[%s4527_s3 + $0x1d0] sm:$0xff] }
 0x13e   :  { %2973 = vmatprep.subr.bf16.mxu1 %v4533_v62  ;;  %v484_v47 = vsel %vm448_vm5, %v424_v41, %v466_v45  ;;  %v543_v41 = vld [vmem:[%s4527_s3 + $0x1c8] sm:$0xff] }
 0x13f   :  { %v2974_v48 = vpack.c.bf16 %v485_v46, %v484_v47  ;;  %v547_v45 = vld [vmem:[%s4527_s3 + $0x1e8] sm:$0xff]  ;;  %v546_v46 = vld [vmem:[%s4527_s3 + $0x1e0] sm:$0xff]  ;;  %v549_v47 = vld [vmem:[%s4527_s3 + $0x1f8] sm:$0xff] }
 0x141   :  { %2975 = vmatpush1.bf16.msra.mxu1 %v2974_v48  ;;  %v548_v48 = vld [vmem:[%s4527_s3 + $0x1f0] sm:$0xff] }
 0x142   :  { %3070 = vmatprep.subr.bf16.mxu1 %v4533_v62 }
 0x144   :  { %948 = vmatmul.mubr.f32.vlgmr.msra.gmra.mrb[0].mxu1 %v486_v49  ;;  %v551_v49 = vld [vmem:[%s4527_s3 + $0x208] sm:$0xff] }
 0x145   :  { %2551 = vmatprep.mubr.msk.f32.mxu1 %vm774_vm2, %v489_v50  ;;  %v550_v50 = vld [vmem:[%s4527_s3 + $0x200] sm:$0xff] }
 0x148   :  { %953 = vmatmul.mubr.f32.gmra.mrb[2].mxu1 %v488_v51  ;;  %v553_v51 = vld [vmem:[%s4527_s3 + $0x218] sm:$0xff] }
 0x149   :  { %2552 = vmatprep.mubr.msk.f32.mxu1 %vm774_vm2, %v491_v52  ;;  %v552_v52 = vld [vmem:[%s4527_s3 + $0x210] sm:$0xff] }
 0x14c   :  { %958 = vmatmul.mubr.f32.gmra.mrb[4].mxu1 %v490_v53  ;;  %v555_v53 = vld [vmem:[%s4527_s3 + $0x228] sm:$0xff] }
 0x14d   :  { %2553 = vmatprep.mubr.msk.f32.mxu1 %vm774_vm2, %v493_v54  ;;  %v554_v54 = vld [vmem:[%s4527_s3 + $0x220] sm:$0xff] }
 0x150   :  { %963 = vmatmul.mubr.f32.gmra.mrb[6].mxu1 %v492_v55  ;;  %v557_v55 = vld [vmem:[%s4527_s3 + $0x238] sm:$0xff] }
 0x151   :  { %2554 = vmatprep.mubr.msk.f32.mxu1 %vm774_vm2, %v495_v56  ;;  %v556_v56 = vld [vmem:[%s4527_s3 + $0x230] sm:$0xff] }
 0x154   :  { %968 = vmatmul.mubr.f32.gmra.mrb[8].mxu1 %v494_v57  ;;  %v597_v57 = vpop.permute.xlu0 %596 }
 0x155   :  { %2555 = vmatprep.mubr.msk.f32.mxu1 %vm774_vm2, %v497_v58 }
 0x158   :  { %973 = vmatmul.mubr.f32.gmra.mrb[10].mxu1 %v496_v59 }
 0x159   :  { %2556 = vmatprep.mubr.msk.f32.mxu1 %vm774_vm2, %v499_v60 }
 0x15c   :  { %978 = vmatmul.mubr.f32.gmra.mrb[12].mxu1 %v498_v61  ;;  %v602_v61 = vpop.permute.xlu1 %601 }
 0x15d   :  { %2557 = vmatprep.mubr.msk.f32.mxu1 %vm774_vm2, %v501_v63 }
 0x160   :  { %983 = vmatmul.mubr.f32.gmra.mrb[14].mxu1 %v500_v0 }
 0x161   :  { %2558 = vmatprep.mubr.msk.f32.mxu1 %vm774_vm2, %v503_v1 }
 0x164   :  { %988 = vmatmul.mubr.f32.gmra.mrb[16].mxu1 %v502_v2 }
 0x165   :  { %2559 = vmatprep.mubr.msk.f32.mxu1 %vm774_vm2, %v505_v3  ;;  %v1237_v3 = vld [vmem:[%s4528_s5 + $0x8] sm:$0xff] }
 0x166   :  { %1733 = vmatprep.mubr.f32.mxu0 %v1237_v3 }
 0x168   :  { %993 = vmatmul.mubr.f32.gmra.mrb[18].mxu1 %v504_v4  ;;  %v1339_v4 = vld [vmem:[%s4528_s5 + $0x338] sm:$0xff] }
 0x169   :  { %2560 = vmatprep.mubr.msk.f32.mxu1 %vm774_vm2, %v507_v5 }
 0x16c   :  { %998 = vmatmul.mubr.f32.gmra.mrb[20].mxu1 %v506_v6  ;;  %v607_v6 = vpop.permute.xlu0 %606 }
 0x16d   :  { %2561 = vmatprep.mubr.msk.f32.mxu1 %vm774_vm2, %v509_v7 }
 0x170   :  { %1003 = vmatmul.mubr.f32.gmra.mrb[22].mxu1 %v508_v8 }
 0x171   :  { %2562 = vmatprep.mubr.msk.f32.mxu1 %vm774_vm2, %v511_v9 }
 0x174   :  { %1008 = vmatmul.mubr.f32.gmra.mrb[24].mxu1 %v510_v10 }
 0x175   :  { %2563 = vmatprep.mubr.msk.f32.mxu1 %vm774_vm2, %v513_v11 }
 0x178   :  { %1013 = vmatmul.mubr.f32.gmra.mrb[26].mxu1 %v512_v12 }
 0x179   :  { %2564 = vmatprep.mubr.msk.f32.mxu1 %vm774_vm2, %v515_v13  ;;  %v612_v13 = vpop.permute.xlu1 %611 }
 0x17c   :  { %1018 = vmatmul.mubr.f32.gmra.mrb[28].mxu1 %v514_v14 }
 0x17d   :  { %2565 = vmatprep.mubr.msk.f32.mxu1 %vm774_vm2, %v517_v15 }
 0x180   :  { %1023 = vmatmul.mubr.f32.gmra.mrb[30].mxu1 %v516_v16 }
 0x181   :  { %2566 = vmatprep.mubr.msk.f32.mxu1 %vm774_vm2, %v519_v17 }
 0x184   :  { %1028 = vmatmul.mubr.f32.gmra.mrb[32].mxu1 %v518_v18 }
 0x185   :  { %2567 = vmatprep.mubr.msk.f32.mxu1 %vm774_vm2, %v521_v19  ;;  %v617_v19 = vpop.permute.xlu0 %616 }
 0x188   :  { %1033 = vmatmul.mubr.f32.gmra.mrb[34].mxu1 %v520_v20 }
 0x189   :  { %2568 = vmatprep.mubr.msk.f32.mxu1 %vm774_vm2, %v523_v21 }
 0x18c   :  { %1038 = vmatmul.mubr.f32.gmra.mrb[36].mxu1 %v522_v22 }
 0x18d   :  { %2569 = vmatprep.mubr.msk.f32.mxu1 %vm774_vm2, %v525_v23 }
 0x190   :  { %1043 = vmatmul.mubr.f32.gmra.mrb[38].mxu1 %v524_v24 }
 0x191   :  { %2570 = vmatprep.mubr.msk.f32.mxu1 %vm774_vm2, %v527_v25 }
 0x194   :  { %1048 = vmatmul.mubr.f32.gmra.mrb[40].mxu1 %v526_v26  ;;  %v622_v26 = vpop.permute.xlu1 %621 }
 0x195   :  { %2571 = vmatprep.mubr.msk.f32.mxu1 %vm774_vm2, %v529_v27 }
 0x198   :  { %1053 = vmatmul.mubr.f32.gmra.mrb[42].mxu1 %v528_v28 }
 0x199   :  { %2572 = vmatprep.mubr.msk.f32.mxu1 %vm774_vm2, %v531_v29 }
 0x19c   :  { %1058 = vmatmul.mubr.f32.gmra.mrb[44].mxu1 %v530_v30 }
 0x19d   :  { %2573 = vmatprep.mubr.msk.f32.mxu1 %vm774_vm2, %v533_v31 }
 0x1a0   :  { %1063 = vmatmul.mubr.f32.gmra.mrb[46].mxu1 %v532_v32  ;;  %v627_v32 = vpop.permute.xlu0 %626 }
 0x1a1   :  { %2574 = vmatprep.mubr.msk.f32.mxu1 %vm774_vm2, %v535_v33 }
 0x1a4   :  { %1068 = vmatmul.mubr.f32.gmra.mrb[48].mxu1 %v534_v34 }
 0x1a5   :  { %2575 = vmatprep.mubr.msk.f32.mxu1 %vm774_vm2, %v537_v35 }
 0x1a8   :  { %1073 = vmatmul.mubr.f32.gmra.mrb[50].mxu1 %v536_v36 }
 0x1a9   :  { %2576 = vmatprep.mubr.msk.f32.mxu1 %vm774_vm2, %v539_v37 }
 0x1ac   :  { %1078 = vmatmul.mubr.f32.gmra.mrb[52].mxu1 %v538_v38 }
 0x1ad   :  { %2577 = vmatprep.mubr.msk.f32.mxu1 %vm774_vm2, %v541_v39  ;;  %v632_v39 = vpop.permute.xlu1 %631 }
 0x1b0   :  { %1083 = vmatmul.mubr.f32.gmra.mrb[54].mxu1 %v540_v40 }
 0x1b1   :  { %2578 = vmatprep.mubr.msk.f32.mxu1 %vm774_vm2, %v543_v41 }
 0x1b4   :  { %1088 = vmatmul.mubr.f32.gmra.mrb[56].mxu1 %v542_v42 }
 0x1b5   :  { %2579 = vmatprep.mubr.msk.f32.mxu1 %vm774_vm2, %v545_v43 }
 0x1b8   :  { %1093 = vmatmul.mubr.f32.gmra.mrb[58].mxu1 %v544_v44 }
 0x1b9   :  { %2580 = vmatprep.mubr.msk.f32.mxu1 %vm774_vm2, %v547_v45  ;;  %v637_v45 = vpop.permute.xlu0 %636 }
 0x1bc   :  { %1098 = vmatmul.mubr.f32.gmra.mrb[60].mxu1 %v546_v46 }
 0x1bd   :  { %2581 = vmatprep.mubr.msk.f32.mxu1 %vm774_vm2, %v549_v47 }
 0x1c0   :  { %1103 = vmatmul.mubr.f32.gmra.mrb[62].mxu1 %v548_v48 }
 0x1c1   :  { %2582 = vmatprep.mubr.msk.f32.mxu1 %vm774_vm2, %v551_v49 }
 0x1c4   :  { %1108 = vmatmul.mubr.f32.gmra.mrb[64].mxu1 %v550_v50 }
 0x1c5   :  { %2583 = vmatprep.mubr.msk.f32.mxu1 %vm774_vm2, %v553_v51 }
 0x1c8   :  { %1113 = vmatmul.mubr.f32.gmra.mrb[66].mxu1 %v552_v52  ;;  %v642_v52 = vpop.permute.xlu1 %641 }
 0x1c9   :  { %2584 = vmatprep.mubr.msk.f32.mxu1 %vm774_vm2, %v555_v53 }
 0x1cc   :  { %1118 = vmatmul.mubr.f32.gmra.mrb[68].mxu1 %v554_v54 }
 0x1cd   :  { %2585 = vmatprep.mubr.msk.f32.mxu1 %vm774_vm2, %v557_v55 }
 0x1d0   :  { %1123 = vmatmul.mubr.f32.gmra.mrb[70].mxu1 %v556_v56 }
 0x1d1   :  { %1903 = vmatprep.mubr.f32.mxu1 %v1339_v4 }
 0x217   :  { %v949_v58 = vpop.f32.mrb[0].mxu1 }
 0x218   :  { %v950_v59 = vadd.f32 %v949_v58, %v597_v57  ;;  %v951_v60 = vpop.f32.mrb[1].mxu1  ;;  %v647_v58 = vpop.permute.xlu0 %646 }
 0x21a   :  { %v1164_v0 = vmul.f32 0.01, %v950_v59  ;;  %vm1128_vm2 = vcmp.ge.f32.partialorder %v950_v59, 0.0 }
 0x21b   :  { %v954_v63 = vpop.f32.mrb[2].mxu1 }
 0x21c   :  { %v955_v1 = vadd.f32 %v954_v63, %v602_v61  ;;  %v956_v2 = vpop.f32.mrb[3].mxu1  ;;  %v1200_v8 = vsel %vm1128_vm2, %v950_v59, %v1164_v0 }
 0x21d   :  { %v652_v2 = vpop.permute.xlu1 %651 }
 0x21e   :  { %vm1129_vm6 = vcmp.ge.f32.partialorder %v955_v1, 0.0  ;;  %v1165_v5 = vmul.f32 0.01, %v955_v1 }
 0x21f   :  { %v959_v7 = vpop.f32.mrb[4].mxu1 }
 0x220   :  { %v1201_v9 = vsel %vm1129_vm6, %v955_v1, %v1165_v5  ;;  %v960_v10 = vadd.f32 %v959_v7, %v607_v6  ;;  %v961_v11 = vpop.f32.mrb[5].mxu1 }
 0x221   :  { %v2977_v12 = vpack.c.bf16 %v1201_v9, %v1200_v8  ;;  %v657_v8 = vpop.permute.xlu0 %656 }
 0x222   :  { %v1166_v15 = vmul.f32 0.01, %v960_v10  ;;  %vm1130_vm7 = vcmp.ge.f32.partialorder %v960_v10, 0.0 }
 0x223   :  { %v964_v14 = vpop.f32.mrb[6].mxu1  ;;  %2978 = vmatpush1.bf16.msra.mxu0 %v2977_v12  ;;  %3086 = vmatpush1.bf16.msra.mxu1 %v2977_v12 }
 0x224   :  { %v965_v16 = vadd.f32 %v964_v14, %v612_v13  ;;  %v966_v17 = vpop.f32.mrb[7].mxu1  ;;  %2979 = vmatprep.subr.bf16.mxu0 %v4533_v62  ;;  %3071 = vmatprep.subr.bf16.mxu1 %v4533_v62  ;;  %v1202_v21 = vsel %vm1130_vm7, %v960_v10, %v1166_v15  ;;  %v662_v15 = vpop.permute.xlu1 %661 }
 0x226   :  { %vm1131_vm8 = vcmp.ge.f32.partialorder %v965_v16, 0.0  ;;  %v1167_v18 = vmul.f32 0.01, %v965_v16 }
 0x227   :  { %v969_v20 = vpop.f32.mrb[8].mxu1 }
 0x228   :  { %v1203_v22 = vsel %vm1131_vm8, %v965_v16, %v1167_v18  ;;  %v970_v23 = vadd.f32 %v969_v20, %v617_v19  ;;  %v971_v24 = vpop.f32.mrb[9].mxu1 }
 0x229   :  { %v2980_v25 = vpack.c.bf16 %v1203_v22, %v1202_v21  ;;  %v667_v21 = vpop.permute.xlu0 %666 }
 0x22a   :  { %v1168_v28 = vmul.f32 0.01, %v970_v23  ;;  %vm1132_vm9 = vcmp.ge.f32.partialorder %v970_v23, 0.0 }
 0x22b   :  { %v974_v27 = vpop.f32.mrb[10].mxu1  ;;  %2981 = vmatpush1.bf16.msra.mxu0 %v2980_v25  ;;  %3087 = vmatpush1.bf16.msra.mxu1 %v2980_v25 }
 0x22c   :  { %v975_v29 = vadd.f32 %v974_v27, %v622_v26  ;;  %v976_v30 = vpop.f32.mrb[11].mxu1  ;;  %2982 = vmatprep.subr.bf16.mxu0 %v4533_v62  ;;  %3072 = vmatprep.subr.bf16.mxu1 %v4533_v62  ;;  %v1204_v34 = vsel %vm1132_vm9, %v970_v23, %v1168_v28  ;;  %v672_v28 = vpop.permute.xlu1 %671 }
 0x22e   :  { %vm1133_vm10 = vcmp.ge.f32.partialorder %v975_v29, 0.0  ;;  %v1169_v31 = vmul.f32 0.01, %v975_v29 }
 0x22f   :  { %v979_v33 = vpop.f32.mrb[12].mxu1 }
 0x230   :  { %v1205_v35 = vsel %vm1133_vm10, %v975_v29, %v1169_v31  ;;  %v980_v36 = vadd.f32 %v979_v33, %v627_v32  ;;  %v981_v37 = vpop.f32.mrb[13].mxu1 }
 0x231   :  { %v2983_v38 = vpack.c.bf16 %v1205_v35, %v1204_v34  ;;  %v677_v34 = vpop.permute.xlu0 %676 }
 0x232   :  { %v1170_v41 = vmul.f32 0.01, %v980_v36  ;;  %vm1134_vm11 = vcmp.ge.f32.partialorder %v980_v36, 0.0 }
 0x233   :  { %v984_v40 = vpop.f32.mrb[14].mxu1  ;;  %2984 = vmatpush1.bf16.msra.mxu0 %v2983_v38  ;;  %3088 = vmatpush1.bf16.msra.mxu1 %v2983_v38 }
 0x234   :  { %v985_v42 = vadd.f32 %v984_v40, %v632_v39  ;;  %v986_v43 = vpop.f32.mrb[15].mxu1  ;;  %2985 = vmatprep.subr.bf16.mxu0 %v4533_v62  ;;  %3073 = vmatprep.subr.bf16.mxu1 %v4533_v62  ;;  %v1206_v47 = vsel %vm1134_vm11, %v980_v36, %v1170_v41  ;;  %v682_v41 = vpop.permute.xlu1 %681 }
 0x236   :  { %vm1135_vm12 = vcmp.ge.f32.partialorder %v985_v42, 0.0  ;;  %v1171_v44 = vmul.f32 0.01, %v985_v42 }
 0x237   :  { %v989_v46 = vpop.f32.mrb[16].mxu1 }
 0x238   :  { %v1207_v48 = vsel %vm1135_vm12, %v985_v42, %v1171_v44  ;;  %v990_v49 = vadd.f32 %v989_v46, %v637_v45  ;;  %v991_v50 = vpop.f32.mrb[17].mxu1 }
 0x239   :  { %v2986_v51 = vpack.c.bf16 %v1207_v48, %v1206_v47  ;;  %v687_v47 = vpop.permute.xlu0 %686 }
 0x23a   :  { %v1172_v54 = vmul.f32 0.01, %v990_v49  ;;  %vm1136_vm13 = vcmp.ge.f32.partialorder %v990_v49, 0.0 }
 0x23b   :  { %v994_v53 = vpop.f32.mrb[18].mxu1  ;;  %2987 = vmatpush1.bf16.msra.mxu0 %v2986_v51  ;;  %3089 = vmatpush1.bf16.msra.mxu1 %v2986_v51 }
 0x23c   :  { %v995_v55 = vadd.f32 %v994_v53, %v642_v52  ;;  %v996_v56 = vpop.f32.mrb[19].mxu1  ;;  %2988 = vmatprep.subr.bf16.mxu0 %v4533_v62  ;;  %3074 = vmatprep.subr.bf16.mxu1 %v4533_v62  ;;  %v1208_v60 = vsel %vm1136_vm13, %v990_v49, %v1172_v54  ;;  %v692_v54 = vpop.permute.xlu1 %691 }
 0x23e   :  { %vm1137_vm14 = vcmp.ge.f32.partialorder %v995_v55, 0.0  ;;  %v1173_v57 = vmul.f32 0.01, %v995_v55 }
 0x23f   :  { %v999_v59 = vpop.f32.mrb[20].mxu1 }
 0x240   :  { %v1209_v61 = vsel %vm1137_vm14, %v995_v55, %v1173_v57  ;;  %v1000_v63 = vadd.f32 %v999_v59, %v647_v58  ;;  %v1001_v0 = vpop.f32.mrb[21].mxu1 }
 0x241   :  { %v2989_v1 = vpack.c.bf16 %v1209_v61, %v1208_v60  ;;  %v697_v60 = vpop.permute.xlu0 %696 }
 0x242   :  { %v1174_v4 = vmul.f32 0.01, %v1000_v63  ;;  %vm1138_vm15 = vcmp.ge.f32.partialorder %v1000_v63, 0.0 }
 0x243   :  { %v1004_v3 = vpop.f32.mrb[22].mxu1  ;;  %2990 = vmatpush1.bf16.msra.mxu0 %v2989_v1  ;;  %3090 = vmatpush1.bf16.msra.mxu1 %v2989_v1 }
 0x244   :  { %v1005_v5 = vadd.f32 %v1004_v3, %v652_v2  ;;  %v1006_v6 = vpop.f32.mrb[23].mxu1  ;;  %2991 = vmatprep.subr.bf16.mxu0 %v4533_v62  ;;  %3075 = vmatprep.subr.bf16.mxu1 %v4533_v62  ;;  %v1210_v10 = vsel %vm1138_vm15, %v1000_v63, %v1174_v4  ;;  %v702_v4 = vpop.permute.xlu1 %701 }
 0x246   :  { %vm1139_vm0 = vcmp.ge.f32.partialorder %v1005_v5, 0.0  ;;  %v1175_v7 = vmul.f32 0.01, %v1005_v5 }
 0x247   :  { %v1009_v9 = vpop.f32.mrb[24].mxu1 }
 0x248   :  { %v1211_v11 = vsel %vm1139_vm0, %v1005_v5, %v1175_v7  ;;  %v1010_v12 = vadd.f32 %v1009_v9, %v657_v8  ;;  %v1011_v13 = vpop.f32.mrb[25].mxu1 }
 0x249   :  { %v2992_v14 = vpack.c.bf16 %v1211_v11, %v1210_v10  ;;  %v707_v10 = vpop.permute.xlu0 %706 }
 0x24a   :  { %v1176_v17 = vmul.f32 0.01, %v1010_v12  ;;  %vm1140_vm1 = vcmp.ge.f32.partialorder %v1010_v12, 0.0 }
 0x24b   :  { %v1014_v16 = vpop.f32.mrb[26].mxu1  ;;  %2993 = vmatpush1.bf16.msra.mxu0 %v2992_v14  ;;  %3091 = vmatpush1.bf16.msra.mxu1 %v2992_v14 }
 0x24c   :  { %v1015_v18 = vadd.f32 %v1014_v16, %v662_v15  ;;  %v1016_v19 = vpop.f32.mrb[27].mxu1  ;;  %2994 = vmatprep.subr.bf16.mxu0 %v4533_v62  ;;  %3076 = vmatprep.subr.bf16.mxu1 %v4533_v62  ;;  %v1212_v23 = vsel %vm1140_vm1, %v1010_v12, %v1176_v17  ;;  %v712_v17 = vpop.permute.xlu1 %711 }
 0x24e   :  { %vm1141_vm3 = vcmp.ge.f32.partialorder %v1015_v18, 0.0  ;;  %v1177_v20 = vmul.f32 0.01, %v1015_v18 }
 0x24f   :  { %v1019_v22 = vpop.f32.mrb[28].mxu1 }
 0x250   :  { %v1213_v24 = vsel %vm1141_vm3, %v1015_v18, %v1177_v20  ;;  %v1020_v25 = vadd.f32 %v1019_v22, %v667_v21  ;;  %v1021_v26 = vpop.f32.mrb[29].mxu1 }
 0x251   :  { %v2995_v27 = vpack.c.bf16 %v1213_v24, %v1212_v23  ;;  %v717_v23 = vpop.permute.xlu0 %716 }
 0x252   :  { %v1178_v30 = vmul.f32 0.01, %v1020_v25  ;;  %vm1142_vm4 = vcmp.ge.f32.partialorder %v1020_v25, 0.0 }
 0x253   :  { %v1024_v29 = vpop.f32.mrb[30].mxu1  ;;  %2996 = vmatpush1.bf16.msra.mxu0 %v2995_v27  ;;  %3092 = vmatpush1.bf16.msra.mxu1 %v2995_v27 }
 0x254   :  { %v1025_v31 = vadd.f32 %v1024_v29, %v672_v28  ;;  %v1026_v32 = vpop.f32.mrb[31].mxu1  ;;  %2997 = vmatprep.subr.bf16.mxu0 %v4533_v62  ;;  %3077 = vmatprep.subr.bf16.mxu1 %v4533_v62  ;;  %v1214_v36 = vsel %vm1142_vm4, %v1020_v25, %v1178_v30  ;;  %v722_v30 = vpop.permute.xlu1 %721 }
 0x256   :  { %vm1143_vm5 = vcmp.ge.f32.partialorder %v1025_v31, 0.0  ;;  %v1179_v33 = vmul.f32 0.01, %v1025_v31 }
 0x257   :  { %v1029_v35 = vpop.f32.mrb[32].mxu1 }
 0x258   :  { %v1215_v37 = vsel %vm1143_vm5, %v1025_v31, %v1179_v33  ;;  %v1030_v38 = vadd.f32 %v1029_v35, %v677_v34  ;;  %v1031_v39 = vpop.f32.mrb[33].mxu1 }
 0x259   :  { %v2998_v40 = vpack.c.bf16 %v1215_v37, %v1214_v36  ;;  %v727_v36 = vpop.permute.xlu0 %726 }
 0x25a   :  { %v1180_v43 = vmul.f32 0.01, %v1030_v38  ;;  %vm1144_vm2 = vcmp.ge.f32.partialorder %v1030_v38, 0.0 }
 0x25b   :  { %v1034_v42 = vpop.f32.mrb[34].mxu1  ;;  %2999 = vmatpush1.bf16.msra.mxu0 %v2998_v40  ;;  %3093 = vmatpush1.bf16.msra.mxu1 %v2998_v40 }
 0x25c   :  { %v1035_v44 = vadd.f32 %v1034_v42, %v682_v41  ;;  %v1036_v45 = vpop.f32.mrb[35].mxu1  ;;  %3000 = vmatprep.subr.bf16.mxu0 %v4533_v62  ;;  %3078 = vmatprep.subr.bf16.mxu1 %v4533_v62  ;;  %v1216_v49 = vsel %vm1144_vm2, %v1030_v38, %v1180_v43  ;;  %v732_v43 = vpop.permute.xlu1 %731 }
 0x25e   :  { %vm1145_vm6 = vcmp.ge.f32.partialorder %v1035_v44, 0.0  ;;  %v1181_v46 = vmul.f32 0.01, %v1035_v44 }
 0x25f   :  { %v1039_v48 = vpop.f32.mrb[36].mxu1 }
 0x260   :  { %v1217_v50 = vsel %vm1145_vm6, %v1035_v44, %v1181_v46  ;;  %v1040_v51 = vadd.f32 %v1039_v48, %v687_v47  ;;  %v1041_v52 = vpop.f32.mrb[37].mxu1 }
 0x261   :  { %v3001_v53 = vpack.c.bf16 %v1217_v50, %v1216_v49  ;;  %v737_v49 = vpop.permute.xlu0 %736 }
 0x262   :  { %v1182_v56 = vmul.f32 0.01, %v1040_v51  ;;  %vm1146_vm7 = vcmp.ge.f32.partialorder %v1040_v51, 0.0 }
 0x263   :  { %v1044_v55 = vpop.f32.mrb[38].mxu1  ;;  %3002 = vmatpush1.bf16.msra.mxu0 %v3001_v53  ;;  %3094 = vmatpush1.bf16.msra.mxu1 %v3001_v53 }
 0x264   :  { %v1045_v57 = vadd.f32 %v1044_v55, %v692_v54  ;;  %v1046_v58 = vpop.f32.mrb[39].mxu1  ;;  %3003 = vmatprep.subr.bf16.mxu0 %v4533_v62  ;;  %3079 = vmatprep.subr.bf16.mxu1 %v4533_v62  ;;  %v1218_v63 = vsel %vm1146_vm7, %v1040_v51, %v1182_v56  ;;  %v742_v56 = vpop.permute.xlu1 %741  ;;  %vm1560_vm7 = vcmask 261120  }
 0x266   :  { %vm1147_vm8 = vcmp.ge.f32.partialorder %v1045_v57, 0.0  ;;  %v1183_v59 = vmul.f32 0.01, %v1045_v57 }
 0x267   :  { %v1049_v61 = vpop.f32.mrb[40].mxu1 }
 0x268   :  { %v1219_v0 = vsel %vm1147_vm8, %v1045_v57, %v1183_v59  ;;  %v1050_v1 = vadd.f32 %v1049_v61, %v697_v60  ;;  %v1051_v2 = vpop.f32.mrb[41].mxu1 }
 0x269   :  { %v3004_v3 = vpack.c.bf16 %v1219_v0, %v1218_v63  ;;  %v747_v63 = vpop.permute.xlu0 %746 }
 0x26a   :  { %v1184_v6 = vmul.f32 0.01, %v1050_v1  ;;  %vm1148_vm9 = vcmp.ge.f32.partialorder %v1050_v1, 0.0 }
 0x26b   :  { %v1054_v5 = vpop.f32.mrb[42].mxu1  ;;  %3005 = vmatpush1.bf16.msra.mxu0 %v3004_v3  ;;  %3095 = vmatpush1.bf16.msra.mxu1 %v3004_v3 }
 0x26c   :  { %v1055_v7 = vadd.f32 %v1054_v5, %v702_v4  ;;  %v1056_v8 = vpop.f32.mrb[43].mxu1  ;;  %3006 = vmatprep.subr.bf16.mxu0 %v4533_v62  ;;  %3080 = vmatprep.subr.bf16.mxu1 %v4533_v62  ;;  %v1220_v12 = vsel %vm1148_vm9, %v1050_v1, %v1184_v6  ;;  %v752_v6 = vpop.permute.xlu1 %751 }
 0x26e   :  { %vm1149_vm10 = vcmp.ge.f32.partialorder %v1055_v7, 0.0  ;;  %v1185_v9 = vmul.f32 0.01, %v1055_v7 }
 0x26f   :  { %v1059_v11 = vpop.f32.mrb[44].mxu1 }
 0x270   :  { %v1221_v13 = vsel %vm1149_vm10, %v1055_v7, %v1185_v9  ;;  %v1060_v14 = vadd.f32 %v1059_v11, %v707_v10  ;;  %v1061_v15 = vpop.f32.mrb[45].mxu1  ;;  %vm3110_vm10 = vmmov 0  }
 0x271   :  { %v3007_v16 = vpack.c.bf16 %v1221_v13, %v1220_v12  ;;  %v757_v12 = vpop.permute.xlu0 %756 }
 0x272   :  { %v1186_v19 = vmul.f32 0.01, %v1060_v14  ;;  %vm1150_vm11 = vcmp.ge.f32.partialorder %v1060_v14, 0.0 }
 0x273   :  { %v1064_v18 = vpop.f32.mrb[46].mxu1  ;;  %3008 = vmatpush1.bf16.msra.mxu0 %v3007_v16  ;;  %3096 = vmatpush1.bf16.msra.mxu1 %v3007_v16 }
 0x274   :  { %v1065_v20 = vadd.f32 %v1064_v18, %v712_v17  ;;  %v1066_v21 = vpop.f32.mrb[47].mxu1  ;;  %3009 = vmatprep.subr.bf16.mxu0 %v4533_v62  ;;  %3081 = vmatprep.subr.bf16.mxu1 %v4533_v62  ;;  %v1222_v25 = vsel %vm1150_vm11, %v1060_v14, %v1186_v19  ;;  %v762_v19 = vpop.permute.xlu1 %761 }
 0x275   :  { %v1236_v21 = vld [vmem:[%s4528_s5] sm:$0xff] }
 0x276   :  { %vm1151_vm12 = vcmp.ge.f32.partialorder %v1065_v20, 0.0  ;;  %v1187_v22 = vmul.f32 0.01, %v1065_v20 }
 0x277   :  { %v1069_v24 = vpop.f32.mrb[48].mxu1 }
 0x278   :  { %v1223_v26 = vsel %vm1151_vm12, %v1065_v20, %v1187_v22  ;;  %v1070_v27 = vadd.f32 %v1069_v24, %v717_v23  ;;  %v1071_v28 = vpop.f32.mrb[49].mxu1  ;;  %v1338_v22 = vld [vmem:[%s4528_s5 + $0x330] sm:$0xff] }
 0x279   :  { %v3010_v29 = vpack.c.bf16 %v1223_v26, %v1222_v25  ;;  %v1240_v26 = vld [vmem:[%s4528_s5 + $0x20] sm:$0xff] }
 0x27a   :  { %v1188_v32 = vmul.f32 0.01, %v1070_v27  ;;  %vm1152_vm13 = vcmp.ge.f32.partialorder %v1070_v27, 0.0 }
 0x27b   :  { %v1074_v31 = vpop.f32.mrb[50].mxu1  ;;  %3011 = vmatpush1.bf16.msra.mxu0 %v3010_v29  ;;  %3097 = vmatpush1.bf16.msra.mxu1 %v3010_v29  ;;  %v767_v29 = vpop.permute.xlu0 %766 }
 0x27c   :  { %v1075_v33 = vadd.f32 %v1074_v31, %v722_v30  ;;  %v1076_v34 = vpop.f32.mrb[51].mxu1  ;;  %3012 = vmatprep.subr.bf16.mxu0 %v4533_v62  ;;  %3082 = vmatprep.subr.bf16.mxu1 %v4533_v62  ;;  %v1224_v38 = vsel %vm1152_vm13, %v1070_v27, %v1188_v32  ;;  %v1342_v27 = vld [vmem:[%s4528_s5 + $0x350] sm:$0xff]  ;;  %v1239_v31 = vld [vmem:[%s4528_s5 + $0x18] sm:$0xff]  ;;  %v1341_v32 = vld [vmem:[%s4528_s5 + $0x348] sm:$0xff] }
 0x27e   :  { %vm1153_vm14 = vcmp.ge.f32.partialorder %v1075_v33, 0.0  ;;  %v1189_v35 = vmul.f32 0.01, %v1075_v33 }
 0x27f   :  { %v1079_v37 = vpop.f32.mrb[52].mxu1 }
 0x280   :  { %v1225_v39 = vsel %vm1153_vm14, %v1075_v33, %v1189_v35  ;;  %v1080_v40 = vadd.f32 %v1079_v37, %v727_v36  ;;  %v1081_v41 = vpop.f32.mrb[53].mxu1  ;;  %v1243_v37 = vld [vmem:[%s4528_s5 + $0x38] sm:$0xff] }
 0x281   :  { %v3013_v42 = vpack.c.bf16 %v1225_v39, %v1224_v38  ;;  %v1238_v39 = vld [vmem:[%s4528_s5 + $0x10] sm:$0xff] }
 0x282   :  { %v1190_v45 = vmul.f32 0.01, %v1080_v40  ;;  %vm1154_vm15 = vcmp.ge.f32.partialorder %v1080_v40, 0.0 }
 0x283   :  { %v1084_v44 = vpop.f32.mrb[54].mxu1  ;;  %3014 = vmatpush1.bf16.msra.mxu0 %v3013_v42  ;;  %3098 = vmatpush1.bf16.msra.mxu1 %v3013_v42  ;;  %v1242_v42 = vld [vmem:[%s4528_s5 + $0x30] sm:$0xff] }
 0x284   :  { %v1085_v46 = vadd.f32 %v1084_v44, %v732_v43  ;;  %v1086_v47 = vpop.f32.mrb[55].mxu1  ;;  %3015 = vmatprep.subr.bf16.mxu0 %v4533_v62  ;;  %3083 = vmatprep.subr.bf16.mxu1 %v4533_v62  ;;  %v1226_v51 = vsel %vm1154_vm15, %v1080_v40, %v1190_v45  ;;  %v772_v40 = vpop.permute.xlu1 %771  ;;  %v1246_v45 = vld [vmem:[%s4528_s5 + $0x50] sm:$0xff] }
 0x286   :  { %vm1155_vm0 = vcmp.ge.f32.partialorder %v1085_v46, 0.0  ;;  %v1191_v48 = vmul.f32 0.01, %v1085_v46 }
 0x287   :  { %v1089_v50 = vpop.f32.mrb[56].mxu1 }
 0x288   :  { %v1227_v52 = vsel %vm1155_vm0, %v1085_v46, %v1191_v48  ;;  %v1090_v53 = vadd.f32 %v1089_v50, %v737_v49  ;;  %v1091_v54 = vpop.f32.mrb[57].mxu1  ;;  %v1245_v48 = vld [vmem:[%s4528_s5 + $0x48] sm:$0xff] }
 0x289   :  { %v3016_v55 = vpack.c.bf16 %v1227_v52, %v1226_v51  ;;  %v1249_v51 = vld [vmem:[%s4528_s5 + $0x68] sm:$0xff] }
 0x28a   :  { %v1192_v58 = vmul.f32 0.01, %v1090_v53  ;;  %vm1156_vm1 = vcmp.ge.f32.partialorder %v1090_v53, 0.0  ;;  %v1241_v54 = vld [vmem:[%s4528_s5 + $0x28] sm:$0xff] }
 0x28b   :  { %v1094_v57 = vpop.f32.mrb[58].mxu1  ;;  %3017 = vmatpush1.bf16.msra.mxu0 %v3016_v55  ;;  %3099 = vmatpush1.bf16.msra.mxu1 %v3016_v55  ;;  %v1252_v55 = vld [vmem:[%s4528_s5 + $0x80] sm:$0xff] }
 0x28c   :  { %v1095_v59 = vadd.f32 %v1094_v57, %v742_v56  ;;  %v1096_v60 = vpop.f32.mrb[59].mxu1  ;;  %3018 = vmatprep.subr.bf16.mxu0 %v4533_v62  ;;  %3084 = vmatprep.subr.bf16.mxu1 %v4533_v62  ;;  %v1228_v1 = vsel %vm1156_vm1, %v1090_v53, %v1192_v58  ;;  %v1248_v53 = vld [vmem:[%s4528_s5 + $0x60] sm:$0xff]  ;;  %v1251_v57 = vld [vmem:[%s4528_s5 + $0x78] sm:$0xff] }
 0x28d   :  { %v1244_v56 = vld [vmem:[%s4528_s5 + $0x40] sm:$0xff]  ;;  %v1247_v58 = vld [vmem:[%s4528_s5 + $0x58] sm:$0xff]  ;;  %v1250_v60 = vld [vmem:[%s4528_s5 + $0x70] sm:$0xff] }
 0x28e   :  { %vm1157_vm3 = vcmp.ge.f32.partialorder %v1095_v59, 0.0  ;;  %v1193_v61 = vmul.f32 0.01, %v1095_v59 }
 0x28f   :  { %v1099_v0 = vpop.f32.mrb[60].mxu1 }
 0x290   :  { %v1229_v2 = vsel %vm1157_vm3, %v1095_v59, %v1193_v61  ;;  %v1100_v3 = vadd.f32 %v1099_v0, %v747_v63  ;;  %v1101_v4 = vpop.f32.mrb[61].mxu1  ;;  %v1255_v59 = vld [vmem:[%s4528_s5 + $0x98] sm:$0xff]  ;;  %v1254_v61 = vld [vmem:[%s4528_s5 + $0x90] sm:$0xff]  ;;  %v1253_v63 = vld [vmem:[%s4528_s5 + $0x88] sm:$0xff] }
 0x291   :  { %v3019_v5 = vpack.c.bf16 %v1229_v2, %v1228_v1  ;;  %v1258_v0 = vld [vmem:[%s4528_s5 + $0xb0] sm:$0xff]  ;;  %v1256_v1 = vld [vmem:[%s4528_s5 + $0xa0] sm:$0xff]  ;;  %v1257_v2 = vld [vmem:[%s4528_s5 + $0xa8] sm:$0xff] }
 0x292   :  { %v1194_v8 = vmul.f32 0.01, %v1100_v3  ;;  %vm1158_vm4 = vcmp.ge.f32.partialorder %v1100_v3, 0.0  ;;  %v1261_v4 = vld [vmem:[%s4528_s5 + $0xc8] sm:$0xff] }
 0x293   :  { %v1104_v7 = vpop.f32.mrb[62].mxu1  ;;  %3020 = vmatpush1.bf16.msra.mxu0 %v3019_v5  ;;  %3100 = vmatpush1.bf16.msra.mxu1 %v3019_v5  ;;  %v1262_v5 = vld [vmem:[%s4528_s5 + $0xd0] sm:$0xff] }
 0x294   :  { %v1105_v9 = vadd.f32 %v1104_v7, %v752_v6  ;;  %v1106_v10 = vpop.f32.mrb[63].mxu1  ;;  %3021 = vmatprep.subr.bf16.mxu0 %v4533_v62  ;;  %3085 = vmatprep.subr.bf16.mxu1 %v4533_v62  ;;  %v1230_v14 = vsel %vm1158_vm4, %v1100_v3, %v1194_v8  ;;  %v1259_v3 = vld [vmem:[%s4528_s5 + $0xb8] sm:$0xff]  ;;  %v1260_v6 = vld [vmem:[%s4528_s5 + $0xc0] sm:$0xff]  ;;  %v1265_v7 = vld [vmem:[%s4528_s5 + $0xe8] sm:$0xff] }
 0x295   :  { %v1264_v8 = vld [vmem:[%s4528_s5 + $0xe0] sm:$0xff]  ;;  %v1263_v10 = vld [vmem:[%s4528_s5 + $0xd8] sm:$0xff] }
 0x296   :  { %vm1159_vm5 = vcmp.ge.f32.partialorder %v1105_v9, 0.0  ;;  %v1195_v11 = vmul.f32 0.01, %v1105_v9 }
 0x297   :  { %v1109_v13 = vpop.f32.mrb[64].mxu1 }
 0x298   :  { %v1231_v15 = vsel %vm1159_vm5, %v1105_v9, %v1195_v11  ;;  %v1110_v16 = vadd.f32 %v1109_v13, %v757_v12  ;;  %v1111_v17 = vpop.f32.mrb[65].mxu1  ;;  %v1268_v9 = vld [vmem:[%s4528_s5 + $0x100] sm:$0xff]  ;;  %v1271_v11 = vld [vmem:[%s4528_s5 + $0x118] sm:$0xff]  ;;  %v1274_v13 = vld [vmem:[%s4528_s5 + $0x130] sm:$0xff] }
 0x299   :  { %v3022_v18 = vpack.c.bf16 %v1231_v15, %v1230_v14  ;;  %v1267_v12 = vld [vmem:[%s4528_s5 + $0xf8] sm:$0xff]  ;;  %v1266_v14 = vld [vmem:[%s4528_s5 + $0xf0] sm:$0xff]  ;;  %v1277_v15 = vld [vmem:[%s4528_s5 + $0x148] sm:$0xff] }
 0x29a   :  { %v1196_v23 = vmul.f32 0.01, %v1110_v16  ;;  %vm1160_vm2 = vcmp.ge.f32.partialorder %v1110_v16, 0.0  ;;  %v1280_v17 = vld [vmem:[%s4528_s5 + $0x160] sm:$0xff] }
 0x29b   :  { %v1114_v20 = vpop.f32.mrb[66].mxu1  ;;  %3023 = vmatpush1.bf16.msra.mxu0 %v3022_v18  ;;  %3101 = vmatpush1.bf16.msra.mxu1 %v3022_v18  ;;  %v1269_v18 = vld [vmem:[%s4528_s5 + $0x108] sm:$0xff] }
 0x29c   :  { %v1115_v24 = vadd.f32 %v1114_v20, %v762_v19  ;;  %v1116_v25 = vpop.f32.mrb[67].mxu1  ;;  %3064 = vmatprep.subr.bf16.mxu0 %v4533_v62  ;;  %v1232_v35 = vsel %vm1160_vm2, %v1110_v16, %v1196_v23  ;;  %v1270_v16 = vld [vmem:[%s4528_s5 + $0x110] sm:$0xff]  ;;  %v1283_v19 = vld [vmem:[%s4528_s5 + $0x178] sm:$0xff]  ;;  %v1273_v20 = vld [vmem:[%s4528_s5 + $0x128] sm:$0xff] }
 0x29d   :  { %v1289_v23 = vld [vmem:[%s4528_s5 + $0x1a8] sm:$0xff]  ;;  %v1292_v25 = vld [vmem:[%s4528_s5 + $0x1c0] sm:$0xff] }
 0x29e   :  { %vm1161_vm6 = vcmp.ge.f32.partialorder %v1115_v24, 0.0  ;;  %v1197_v28 = vmul.f32 0.01, %v1115_v24  ;;  %1734 = vmatmul.mubr.f32.vlgmr.msra.gmra.mrb[18].mxu0 %v1236_v21  ;;  %1904 = vmatmul.mubr.f32.vlgmr.msra.gmra.mrb[72].mxu1 %v1338_v22  ;;  %v1286_v21 = vld [vmem:[%s4528_s5 + $0x190] sm:$0xff]  ;;  %v1272_v22 = vld [vmem:[%s4528_s5 + $0x120] sm:$0xff] }
 0x29f   :  { %v1119_v30 = vpop.f32.mrb[68].mxu1  ;;  %1738 = vmatprep.mubr.f32.mxu0 %v1240_v26  ;;  %1908 = vmatprep.mubr.f32.mxu1 %v1342_v27  ;;  %v1275_v26 = vld [vmem:[%s4528_s5 + $0x138] sm:$0xff] }
 0x2a0   :  { %v1120_v33 = vadd.f32 %v1119_v30, %v767_v29  ;;  %v1121_v34 = vpop.f32.mrb[69].mxu1  ;;  %v1233_v36 = vsel %vm1161_vm6, %v1115_v24, %v1197_v28  ;;  %v1276_v24 = vld [vmem:[%s4528_s5 + $0x140] sm:$0xff]  ;;  %v1295_v27 = vld [vmem:[%s4528_s5 + $0x1d8] sm:$0xff]  ;;  %v1298_v29 = vld [vmem:[%s4528_s5 + $0x1f0] sm:$0xff] }
 0x2a1   :  { %v3024_v38 = vpack.c.bf16 %v1233_v36, %v1232_v35  ;;  %v1279_v28 = vld [vmem:[%s4528_s5 + $0x158] sm:$0xff]  ;;  %v1278_v30 = vld [vmem:[%s4528_s5 + $0x150] sm:$0xff]  ;;  %v1281_v34 = vld [vmem:[%s4528_s5 + $0x168] sm:$0xff] }
 0x2a2   :  { %1739 = vmatmul.mubr.f32.gmra.mrb[20].mxu0 %v1239_v31  ;;  %1909 = vmatmul.mubr.f32.gmra.mrb[74].mxu1 %v1341_v32  ;;  %v1198_v43 = vmul.f32 0.01, %v1120_v33  ;;  %vm1162_vm8 = vcmp.ge.f32.partialorder %v1120_v33, 0.0  ;;  %v1301_v31 = vld [vmem:[%s4528_s5 + $0x208] sm:$0xff]  ;;  %v1282_v32 = vld [vmem:[%s4528_s5 + $0x170] sm:$0xff]  ;;  %v1307_v35 = vld [vmem:[%s4528_s5 + $0x238] sm:$0xff] }
 0x2a3   :  { %v1124_v41 = vpop.f32.mrb[70].mxu1  ;;  %3025 = vmatprep.subr.bf16.mxu1 %v3024_v38  ;;  %1743 = vmatprep.mubr.f32.mxu0 %v1243_v37  ;;  %v1285_v36 = vld [vmem:[%s4528_s5 + $0x188] sm:$0xff]  ;;  %v1310_v37 = vld [vmem:[%s4528_s5 + $0x250] sm:$0xff] }
 0x2a4   :  { %v1125_v44 = vadd.f32 %v1124_v41, %v772_v40  ;;  %3027 = vmatpush3.bf16.msra.mxu1 %v3024_v38  ;;  %2824 = vmatprep.mubr.msk.f32.mxu1 %vm1560_vm7, %v1238_v39  ;;  %v1126_v46 = vpop.f32.mrb[71].mxu1  ;;  %v1234_v49 = vsel %vm1162_vm8, %v1120_v33, %v1198_v43  ;;  %v1304_v33 = vld [vmem:[%s4528_s5 + $0x220] sm:$0xff]  ;;  %v1313_v39 = vld [vmem:[%s4528_s5 + $0x268] sm:$0xff]  ;;  %v1319_v43 = vld [vmem:[%s4528_s5 + $0x298] sm:$0xff] }
 0x2a5   :  { %v1284_v38 = vld [vmem:[%s4528_s5 + $0x180] sm:$0xff]  ;;  %v1290_v46 = vld [vmem:[%s4528_s5 + $0x1b0] sm:$0xff] }
 0x2a6   :  { %vm1163_vm9 = vcmp.ge.f32.partialorder %v1125_v44, 0.0  ;;  %v1199_v47 = vmul.f32 0.01, %v1125_v44  ;;  %1744 = vmatmul.mubr.f32.gmra.mrb[22].mxu0 %v1242_v42  ;;  %v1288_v40 = vld [vmem:[%s4528_s5 + $0x1a0] sm:$0xff]  ;;  %v1287_v42 = vld [vmem:[%s4528_s5 + $0x198] sm:$0xff] }
 0x2a7   :  { %1748 = vmatprep.mubr.f32.mxu0 %v1246_v45  ;;  %v1316_v41 = vld [vmem:[%s4528_s5 + $0x280] sm:$0xff]  ;;  %v1322_v45 = vld [vmem:[%s4528_s5 + $0x2b0] sm:$0xff] }
 0x2a8   :  { %v1235_v50 = vsel %vm1163_vm9, %v1125_v44, %v1199_v47  ;;  %v1291_v44 = vld [vmem:[%s4528_s5 + $0x1b8] sm:$0xff]  ;;  %v1325_v47 = vld [vmem:[%s4528_s5 + $0x2c8] sm:$0xff] }
 0x2a9   :  { %v3028_v52 = vpack.c.bf16 %v1235_v50, %v1234_v49  ;;  %v1328_v49 = vld [vmem:[%s4528_s5 + $0x2e0] sm:$0xff]  ;;  %v1293_v50 = vld [vmem:[%s4528_s5 + $0x1c8] sm:$0xff] }
 0x2aa   :  { %1749 = vmatmul.mubr.f32.gmra.mrb[24].mxu0 %v1245_v48  ;;  %v1294_v48 = vld [vmem:[%s4528_s5 + $0x1d0] sm:$0xff] }
 0x2ab   :  { %3029 = vmatprep.subr.bf16.mxu1 %v3028_v52  ;;  %1753 = vmatprep.mubr.f32.mxu0 %v1249_v51  ;;  %v1331_v51 = vld [vmem:[%s4528_s5 + $0x2f8] sm:$0xff] }
 0x2ac   :  { %3031 = vmatpush3.bf16.msra.mxu1 %v3028_v52  ;;  %v1297_v52 = vld [vmem:[%s4528_s5 + $0x1e8] sm:$0xff] }
 0x2ae   :  { %1754 = vmatmul.mubr.f32.gmra.mrb[26].mxu0 %v1248_v53  ;;  %v1334_v53 = vld [vmem:[%s4528_s5 + $0x310] sm:$0xff] }
 0x2af   :  { %2825 = vmatmul.mubr.msk.f32.vlgmr.msra.gmra.mrb[76].mxu1 %vm1560_vm7, %v1241_v54  ;;  %1758 = vmatprep.mubr.f32.mxu0 %v1252_v55  ;;  %v1296_v54 = vld [vmem:[%s4528_s5 + $0x1e0] sm:$0xff]  ;;  %v1337_v55 = vld [vmem:[%s4528_s5 + $0x328] sm:$0xff] }
 0x2b0   :  { %2827 = vmatprep.mubr.msk.f32.mxu1 %vm1560_vm7, %v1244_v56  ;;  %v1300_v56 = vld [vmem:[%s4528_s5 + $0x200] sm:$0xff] }
 0x2b2   :  { %1759 = vmatmul.mubr.f32.gmra.mrb[28].mxu0 %v1251_v57  ;;  %v1340_v57 = vld [vmem:[%s4528_s5 + $0x340] sm:$0xff] }
 0x2b3   :  { %2828 = vmatmul.mubr.msk.f32.gmra.mrb[78].mxu1 %vm1560_vm7, %v1247_v58  ;;  %1763 = vmatprep.mubr.f32.mxu0 %v1255_v59  ;;  %v1299_v58 = vld [vmem:[%s4528_s5 + $0x1f8] sm:$0xff] }
 0x2b4   :  { %2830 = vmatprep.mubr.msk.f32.mxu1 %vm1560_vm7, %v1250_v60  ;;  %v1343_v59 = vld [vmem:[%s4528_s5 + $0x358] sm:$0xff] }
 0x2b5   :  { %v1303_v60 = vld [vmem:[%s4528_s5 + $0x218] sm:$0xff] }
 0x2b6   :  { %1764 = vmatmul.mubr.f32.gmra.mrb[30].mxu0 %v1254_v61  ;;  %v1302_v61 = vld [vmem:[%s4528_s5 + $0x210] sm:$0xff] }
 0x2b7   :  { %2831 = vmatmul.mubr.msk.f32.gmra.mrb[80].mxu1 %vm1560_vm7, %v1253_v63  ;;  %1768 = vmatprep.mubr.f32.mxu0 %v1258_v0  ;;  %v1306_v63 = vld [vmem:[%s4528_s5 + $0x230] sm:$0xff]  ;;  %v1305_v0 = vld [vmem:[%s4528_s5 + $0x228] sm:$0xff] }
 0x2b8   :  { %2833 = vmatprep.mubr.msk.f32.mxu1 %vm1560_vm7, %v1256_v1  ;;  %v1309_v1 = vld [vmem:[%s4528_s5 + $0x248] sm:$0xff] }
 0x2ba   :  { %1769 = vmatmul.mubr.f32.gmra.mrb[32].mxu0 %v1257_v2  ;;  %v1308_v2 = vld [vmem:[%s4528_s5 + $0x240] sm:$0xff] }
 0x2bb   :  { %2834 = vmatmul.mubr.msk.f32.gmra.mrb[82].mxu1 %vm1560_vm7, %v1259_v3  ;;  %1773 = vmatprep.mubr.f32.mxu0 %v1261_v4  ;;  %v1312_v3 = vld [vmem:[%s4528_s5 + $0x260] sm:$0xff]  ;;  %v1311_v4 = vld [vmem:[%s4528_s5 + $0x258] sm:$0xff] }
 0x2bc   :  { %2836 = vmatprep.mubr.msk.f32.mxu1 %vm1560_vm7, %v1262_v5  ;;  %v1315_v5 = vld [vmem:[%s4528_s5 + $0x278] sm:$0xff] }
 0x2be   :  { %1774 = vmatmul.mubr.f32.gmra.mrb[34].mxu0 %v1260_v6  ;;  %v1314_v6 = vld [vmem:[%s4528_s5 + $0x270] sm:$0xff] }
 0x2bf   :  { %2837 = vmatmul.mubr.msk.f32.gmra.mrb[84].mxu1 %vm1560_vm7, %v1265_v7  ;;  %1778 = vmatprep.mubr.f32.mxu0 %v1264_v8  ;;  %v1318_v7 = vld [vmem:[%s4528_s5 + $0x290] sm:$0xff]  ;;  %v1317_v8 = vld [vmem:[%s4528_s5 + $0x288] sm:$0xff] }
 0x2c0   :  { %2839 = vmatprep.mubr.msk.f32.mxu1 %vm1560_vm7, %v1268_v9  ;;  %v1321_v9 = vld [vmem:[%s4528_s5 + $0x2a8] sm:$0xff] }
 0x2c2   :  { %1779 = vmatmul.mubr.f32.gmra.mrb[36].mxu0 %v1263_v10  ;;  %v1320_v10 = vld [vmem:[%s4528_s5 + $0x2a0] sm:$0xff] }
 0x2c3   :  { %2840 = vmatmul.mubr.msk.f32.gmra.mrb[86].mxu1 %vm1560_vm7, %v1271_v11  ;;  %1783 = vmatprep.mubr.f32.mxu0 %v1267_v12  ;;  %v1324_v11 = vld [vmem:[%s4528_s5 + $0x2c0] sm:$0xff]  ;;  %v1323_v12 = vld [vmem:[%s4528_s5 + $0x2b8] sm:$0xff] }
 0x2c4   :  { %2842 = vmatprep.mubr.msk.f32.mxu1 %vm1560_vm7, %v1274_v13  ;;  %v1327_v13 = vld [vmem:[%s4528_s5 + $0x2d8] sm:$0xff] }
 0x2c6   :  { %1784 = vmatmul.mubr.f32.gmra.mrb[38].mxu0 %v1266_v14  ;;  %v1326_v14 = vld [vmem:[%s4528_s5 + $0x2d0] sm:$0xff] }
 0x2c7   :  { %2843 = vmatmul.mubr.msk.f32.gmra.mrb[88].mxu1 %vm1560_vm7, %v1277_v15  ;;  %1788 = vmatprep.mubr.f32.mxu0 %v1270_v16  ;;  %v1330_v15 = vld [vmem:[%s4528_s5 + $0x2f0] sm:$0xff]  ;;  %v1329_v16 = vld [vmem:[%s4528_s5 + $0x2e8] sm:$0xff] }
 0x2c8   :  { %2845 = vmatprep.mubr.msk.f32.mxu1 %vm1560_vm7, %v1280_v17  ;;  %v1333_v17 = vld [vmem:[%s4528_s5 + $0x308] sm:$0xff] }
 0x2ca   :  { %1789 = vmatmul.mubr.f32.gmra.mrb[40].mxu0 %v1269_v18  ;;  %v1332_v18 = vld [vmem:[%s4528_s5 + $0x300] sm:$0xff] }
 0x2cb   :  { %2846 = vmatmul.mubr.msk.f32.gmra.mrb[90].mxu1 %vm1560_vm7, %v1283_v19  ;;  %1793 = vmatprep.mubr.f32.mxu0 %v1273_v20  ;;  %v1336_v19 = vld [vmem:[%s4528_s5 + $0x320] sm:$0xff]  ;;  %v1335_v20 = vld [vmem:[%s4528_s5 + $0x318] sm:$0xff] }
 0x2cc   :  { %2848 = vmatprep.mubr.msk.f32.mxu1 %vm1560_vm7, %v1286_v21  ;;  %v4259_v21 = vpop.permute.xlu0 %1462 }
 0x2ce   :  { %1794 = vmatmul.mubr.f32.gmra.mrb[42].mxu0 %v1272_v22  ;;  %v4261_v22 = vpop.permute.xlu1 %1467 }
 0x2cf   :  { %2849 = vmatmul.mubr.msk.f32.gmra.mrb[92].mxu1 %vm1560_vm7, %v1289_v23  ;;  %1798 = vmatprep.mubr.f32.mxu0 %v1276_v24 }
 0x2d0   :  { %2851 = vmatprep.mubr.msk.f32.mxu1 %vm1560_vm7, %v1292_v25  ;;  %v1383_v23 = vpop.permute.xlu0 %1382 }
 0x2d2   :  { %1799 = vmatmul.mubr.f32.gmra.mrb[44].mxu0 %v1275_v26  ;;  %v1388_v24 = vpop.permute.xlu1 %1387 }
 0x2d3   :  { %2852 = vmatmul.mubr.msk.f32.gmra.mrb[94].mxu1 %vm1560_vm7, %v1295_v27  ;;  %1803 = vmatprep.mubr.f32.mxu0 %v1279_v28 }
 0x2d4   :  { %2854 = vmatprep.mubr.msk.f32.mxu1 %vm1560_vm7, %v1298_v29  ;;  %v4263_v25 = vpop.permute.xlu0 %1472 }
 0x2d6   :  { %1804 = vmatmul.mubr.f32.gmra.mrb[46].mxu0 %v1278_v30  ;;  %v4265_v26 = vpop.permute.xlu1 %1477 }
 0x2d7   :  { %2855 = vmatmul.mubr.msk.f32.gmra.mrb[96].mxu1 %vm1560_vm7, %v1301_v31  ;;  %1808 = vmatprep.mubr.f32.mxu0 %v1282_v32 }
 0x2d8   :  { %2857 = vmatprep.mubr.msk.f32.mxu1 %vm1560_vm7, %v1304_v33  ;;  %v1393_v27 = vpop.permute.xlu0 %1392 }
 0x2da   :  { %1809 = vmatmul.mubr.f32.gmra.mrb[48].mxu0 %v1281_v34  ;;  %v1398_v28 = vpop.permute.xlu1 %1397 }
 0x2db   :  { %2858 = vmatmul.mubr.msk.f32.gmra.mrb[98].mxu1 %vm1560_vm7, %v1307_v35  ;;  %1813 = vmatprep.mubr.f32.mxu0 %v1285_v36 }
 0x2dc   :  { %2860 = vmatprep.mubr.msk.f32.mxu1 %vm1560_vm7, %v1310_v37  ;;  %v4267_v29 = vpop.permute.xlu0 %1482 }
 0x2de   :  { %1814 = vmatmul.mubr.f32.gmra.mrb[50].mxu0 %v1284_v38  ;;  %v4269_v30 = vpop.permute.xlu1 %1487 }
 0x2df   :  { %2861 = vmatmul.mubr.msk.f32.gmra.mrb[100].mxu1 %vm1560_vm7, %v1313_v39  ;;  %1818 = vmatprep.mubr.f32.mxu0 %v1288_v40 }
 0x2e0   :  { %2863 = vmatprep.mubr.msk.f32.mxu1 %vm1560_vm7, %v1316_v41  ;;  %v1403_v31 = vpop.permute.xlu0 %1402 }
 0x2e2   :  { %1819 = vmatmul.mubr.f32.gmra.mrb[52].mxu0 %v1287_v42  ;;  %v1408_v32 = vpop.permute.xlu1 %1407 }
 0x2e3   :  { %2864 = vmatmul.mubr.msk.f32.gmra.mrb[102].mxu1 %vm1560_vm7, %v1319_v43  ;;  %1823 = vmatprep.mubr.f32.mxu0 %v1291_v44 }
 0x2e4   :  { %2866 = vmatprep.mubr.msk.f32.mxu1 %vm1560_vm7, %v1322_v45  ;;  %v4273_v37 = vpop.permute.xlu0 %1492 }
 0x2e6   :  { %1824 = vmatmul.mubr.f32.gmra.mrb[54].mxu0 %v1290_v46  ;;  %v4277_v42 = vpop.permute.xlu1 %1497  ;;  %v2268_v46 = vld [vmem:[%s4529_s7 + $0x8] sm:$0xff] }
 0x2e7   :  { %2867 = vmatmul.mubr.msk.f32.gmra.mrb[104].mxu1 %vm1560_vm7, %v1325_v47  ;;  %1828 = vmatprep.mubr.f32.mxu0 %v1294_v48 }
 0x2e8   :  { %2869 = vmatprep.mubr.msk.f32.mxu1 %vm1560_vm7, %v1328_v49  ;;  %v1413_v43 = vpop.permute.xlu0 %1412 }
 0x2ea   :  { %1829 = vmatmul.mubr.f32.gmra.mrb[56].mxu0 %v1293_v50  ;;  %v1418_v47 = vpop.permute.xlu1 %1417 }
 0x2eb   :  { %2870 = vmatmul.mubr.msk.f32.gmra.mrb[106].mxu1 %vm1560_vm7, %v1331_v51  ;;  %1833 = vmatprep.mubr.f32.mxu0 %v1297_v52 }
 0x2ec   :  { %2872 = vmatprep.mubr.msk.f32.mxu1 %vm1560_vm7, %v1334_v53  ;;  %v4282_v50 = vpop.permute.xlu0 %1502 }
 0x2ee   :  { %1834 = vmatmul.mubr.f32.gmra.mrb[58].mxu0 %v1296_v54 }
 0x2ef   :  { %2873 = vmatmul.mubr.msk.f32.gmra.mrb[108].mxu1 %vm1560_vm7, %v1337_v55  ;;  %1838 = vmatprep.mubr.f32.mxu0 %v1300_v56  ;;  %v4284_v56 = vpop.permute.xlu1 %1507 }
 0x2f0   :  { %2875 = vmatprep.mubr.msk.f32.mxu1 %vm1560_vm7, %v1340_v57 }
 0x2f2   :  { %1839 = vmatmul.mubr.f32.gmra.mrb[60].mxu0 %v1299_v58 }
 0x2f3   :  { %2876 = vmatmul.mubr.msk.f32.gmra.mrb[110].mxu1 %vm1560_vm7, %v1343_v59  ;;  %1843 = vmatprep.mubr.f32.mxu0 %v1303_v60  ;;  %v4531_v60 = vmov 0.0  }
 0x2f4   :  { %2391 = vmatprep.mubr.f32.mxu1 %v2268_v46 }
 0x2f6   :  { %1844 = vmatmul.mubr.f32.gmra.mrb[62].mxu0 %v1302_v61  ;;  %v1423_v61 = vpop.permute.xlu0 %1422 }
 0x2f7   :  { %1848 = vmatprep.mubr.f32.mxu0 %v1306_v63 }
 0x2fa   :  { %1849 = vmatmul.mubr.f32.gmra.mrb[64].mxu0 %v1305_v0 }
 0x2fb   :  { %1853 = vmatprep.mubr.f32.mxu0 %v1309_v1 }
 0x2fe   :  { %1854 = vmatmul.mubr.f32.gmra.mrb[66].mxu0 %v1308_v2 }
 0x2ff   :  { %1858 = vmatprep.mubr.f32.mxu0 %v1312_v3 }
 0x302   :  { %1859 = vmatmul.mubr.f32.gmra.mrb[68].mxu0 %v1311_v4 }
 0x303   :  { %1863 = vmatprep.mubr.f32.mxu0 %v1315_v5 }
 0x306   :  { %1864 = vmatmul.mubr.f32.gmra.mrb[70].mxu0 %v1314_v6 }
 0x307   :  { %1868 = vmatprep.mubr.f32.mxu0 %v1318_v7 }
 0x30a   :  { %1869 = vmatmul.mubr.f32.gmra.mrb[72].mxu0 %v1317_v8 }
 0x30b   :  { %1873 = vmatprep.mubr.f32.mxu0 %v1321_v9 }
 0x30e   :  { %1874 = vmatmul.mubr.f32.gmra.mrb[74].mxu0 %v1320_v10 }
 0x30f   :  { %1878 = vmatprep.mubr.f32.mxu0 %v1324_v11  ;;  %v1428_v11 = vpop.permute.xlu1 %1427 }
 0x312   :  { %1879 = vmatmul.mubr.f32.gmra.mrb[76].mxu0 %v1323_v12 }
 0x313   :  { %1883 = vmatprep.mubr.f32.mxu0 %v1327_v13 }
 0x316   :  { %1884 = vmatmul.mubr.f32.gmra.mrb[78].mxu0 %v1326_v14 }
 0x317   :  { %1888 = vmatprep.mubr.f32.mxu0 %v1330_v15 }
 0x31a   :  { %1889 = vmatmul.mubr.f32.gmra.mrb[80].mxu0 %v1329_v16 }
 0x31b   :  { %1893 = vmatprep.mubr.f32.mxu0 %v1333_v17 }
 0x31e   :  { %1894 = vmatmul.mubr.f32.gmra.mrb[82].mxu0 %v1332_v18 }
 0x31f   :  { %1898 = vmatprep.mubr.f32.mxu0 %v1336_v19 }
 0x322   :  { %1899 = vmatmul.mubr.f32.gmra.mrb[84].mxu0 %v1335_v20  ;;  %v4294_v20 = vpop.permute.xlu0 %1512 }
 0x323   :  { %2886 = vmatprep.mubr.msk.f32.mxu0 %vm3110_vm10, %v4531_v60 }
 0x371   :  { %v1735_v33 = vpop.f32.mrb[18].mxu0  ;;  %v4271_v34 = vpop.f32.mrb[72].mxu1 }
 0x372   :  { %v1737_v35 = vpop.f32.mrb[19].mxu0  ;;  %v1907_v36 = vpop.f32.mrb[73].mxu1  ;;  %v1736_v53 = vadd.f32 %v1735_v33, %v1383_v23 }
 0x375   :  { %v1740_v38 = vpop.f32.mrb[20].mxu0  ;;  %v4275_v39 = vpop.f32.mrb[74].mxu1 }
 0x376   :  { %v1742_v40 = vpop.f32.mrb[21].mxu0  ;;  %v1912_v41 = vpop.f32.mrb[75].mxu1  ;;  %v1741_v51 = vadd.f32 %v1740_v38, %v1388_v24 }
 0x379   :  { %v1745_v44 = vpop.f32.mrb[22].mxu0 }
 0x37a   :  { %v1747_v45 = vpop.f32.mrb[23].mxu0  ;;  %v1746_v2 = vadd.f32 %v1745_v44, %v1393_v27 }
 0x37b   :  { %v4302_v45 = vpop.permute.xlu1 %1517 }
 0x37d   :  { %v1750_v48 = vpop.f32.mrb[24].mxu0 }
 0x37e   :  { %v1752_v49 = vpop.f32.mrb[25].mxu0  ;;  %v1751_v63 = vadd.f32 %v1750_v48, %v1398_v28 }
 0x381   :  { %v1755_v52 = vpop.f32.mrb[26].mxu0 }
 0x382   :  { %v1757_v54 = vpop.f32.mrb[27].mxu0  ;;  %v2826_v55 = vpop.f32.mrb[76].mxu1  ;;  %v1756_v16 = vadd.f32 %v1755_v52, %v1403_v31 }
 0x383   :  { %v1986_v57 = vadd.f32 %v2826_v55, %v1741_v51  ;;  %v1980_v58 = vpop.f32.mrb[77].mxu1 }
 0x384   :  { %v1981_v59 = vadd.f32 %v1980_v58, %v1736_v53  ;;  %v1433_v53 = vpop.permute.xlu0 %1432 }
 0x385   :  { %vm2160_vm11 = vcmp.ge.f32.partialorder %v1986_v57, 0.0  ;;  %v2196_v0 = vmul.f32 0.01, %v1986_v57  ;;  %v1760_v1 = vpop.f32.mrb[28].mxu0 }
 0x386   :  { %vm2159_vm12 = vcmp.ge.f32.partialorder %v1981_v59, 0.0  ;;  %v2195_v3 = vmul.f32 0.01, %v1981_v59  ;;  %v1762_v4 = vpop.f32.mrb[29].mxu0  ;;  %v2829_v5 = vpop.f32.mrb[78].mxu1  ;;  %v1761_v13 = vadd.f32 %v1760_v1, %v1408_v32 }
 0x387   :  { %v4288_v6 = vsel %vm2160_vm11, %v1986_v57, %v2196_v0  ;;  %v1996_v7 = vadd.f32 %v2829_v5, %v1751_v63  ;;  %v1990_v8 = vpop.f32.mrb[79].mxu1 }
 0x388   :  { %v4290_v9 = vsel %vm2159_vm12, %v1981_v59, %v2195_v3  ;;  %v1991_v10 = vadd.f32 %v1990_v8, %v1746_v2  ;;  %v1438_v2 = vpop.permute.xlu1 %1437 }
 0x389   :  { %v3034_v12 = vpack.c.bf16 %v4288_v6, %v4290_v9  ;;  %vm2162_vm13 = vcmp.ge.f32.partialorder %v1996_v7, 0.0  ;;  %v2198_v14 = vmul.f32 0.01, %v1996_v7  ;;  %v1765_v15 = vpop.f32.mrb[30].mxu0 }
 0x38a   :  { %vm2161_vm14 = vcmp.ge.f32.partialorder %v1991_v10, 0.0  ;;  %v2197_v17 = vmul.f32 0.01, %v1991_v10  ;;  %v1767_v18 = vpop.f32.mrb[31].mxu0  ;;  %v2832_v19 = vpop.f32.mrb[80].mxu1  ;;  %v1766_v31 = vadd.f32 %v1765_v15, %v1413_v43 }
 0x38b   :  { %v4296_v23 = vsel %vm2162_vm13, %v1996_v7, %v2198_v14  ;;  %v2006_v24 = vadd.f32 %v2832_v19, %v1761_v13  ;;  %v2000_v27 = vpop.f32.mrb[81].mxu1  ;;  %v4316_v13 = vpop.permute.xlu0 %1522 }
 0x38c   :  { %v4298_v28 = vsel %vm2161_vm14, %v1991_v10, %v2197_v17  ;;  %v2001_v33 = vadd.f32 %v2000_v27, %v1756_v16  ;;  %v4318_v27 = vpop.permute.xlu1 %1527 }
 0x38d   :  { %vm2164_vm15 = vcmp.ge.f32.partialorder %v2006_v24, 0.0  ;;  %v2200_v35 = vmul.f32 0.01, %v2006_v24  ;;  %v1770_v36 = vpop.f32.mrb[32].mxu0 }
 0x38e   :  { %vm2163_vm0 = vcmp.ge.f32.partialorder %v2001_v33, 0.0  ;;  %v2199_v38 = vmul.f32 0.01, %v2001_v33  ;;  %v1771_v40 = vadd.f32 %v1770_v36, %v1418_v47  ;;  %v1772_v41 = vpop.f32.mrb[33].mxu0  ;;  %v2835_v44 = vpop.f32.mrb[82].mxu1 }
 0x38f   :  { %v4304_v46 = vsel %vm2164_vm15, %v2006_v24, %v2200_v35  ;;  %v2010_v48 = vpop.f32.mrb[83].mxu1 }
 0x390   :  { %v4306_v49 = vsel %vm2163_vm0, %v2001_v33, %v2199_v38  ;;  %v2016_v51 = vadd.f32 %v2835_v44, %v1771_v40  ;;  %v2011_v52 = vadd.f32 %v2010_v48, %v1766_v31  ;;  %v1443_v31 = vpop.permute.xlu0 %1442 }
 0x391   :  { %v1775_v55 = vpop.f32.mrb[34].mxu0 }
 0x392   :  { %vm2166_vm1 = vcmp.ge.f32.partialorder %v2016_v51, 0.0  ;;  %v2202_v43 = vmul.f32 0.01, %v2016_v51  ;;  %vm2165_vm3 = vcmp.ge.f32.partialorder %v2011_v52, 0.0  ;;  %v2201_v47 = vmul.f32 0.01, %v2011_v52 }
 0x393   :  { %v1776_v57 = vadd.f32 %v1775_v55, %v1423_v61  ;;  %v1777_v58 = vpop.f32.mrb[35].mxu0  ;;  %v2838_v59 = vpop.f32.mrb[84].mxu1 }
 0x394   :  { %v4310_v63 = vsel %vm2166_vm1, %v2016_v51, %v2202_v43  ;;  %v4312_v0 = vsel %vm2165_vm3, %v2011_v52, %v2201_v47  ;;  %v2020_v1 = vpop.f32.mrb[85].mxu1  ;;  %v1448_v55 = vpop.permute.xlu1 %1447 }
 0x395   :  { %v2021_v4 = vadd.f32 %v2020_v1, %v1776_v57  ;;  %v1780_v5 = vpop.f32.mrb[36].mxu0  ;;  %v4326_v1 = vpop.permute.xlu0 %1532 }
 0x396   :  { %v1781_v7 = vadd.f32 %v1780_v5, %v1428_v11  ;;  %v1782_v8 = vpop.f32.mrb[37].mxu0  ;;  %v2841_v10 = vpop.f32.mrb[86].mxu1 }
 0x397   :  { %v2030_v14 = vpop.f32.mrb[87].mxu1  ;;  %v2203_v61 = vmul.f32 0.01, %v2021_v4  ;;  %vm2167_vm4 = vcmp.ge.f32.partialorder %v2021_v4, 0.0 }
 0x398   :  { %v2026_v15 = vadd.f32 %v2838_v59, %v1781_v7 }
 0x399   :  { %v1785_v16 = vpop.f32.mrb[38].mxu0  ;;  %v4320_v35 = vsel %vm2167_vm4, %v2021_v4, %v2203_v61 }
 0x39a   :  { %vm2168_vm5 = vcmp.ge.f32.partialorder %v2026_v15, 0.0  ;;  %v2204_v17 = vmul.f32 0.01, %v2026_v15  ;;  %v1786_v18 = vadd.f32 %v1785_v16, %v1433_v53  ;;  %v1787_v19 = vpop.f32.mrb[39].mxu0  ;;  %v2844_v24 = vpop.f32.mrb[88].mxu1 }
 0x39b   :  { %v2040_v33 = vpop.f32.mrb[89].mxu1  ;;  %v4336_v16 = vpop.permute.xlu1 %1537 }
 0x39c   :  { %v4322_v11 = vsel %vm2168_vm5, %v2026_v15, %v2204_v17  ;;  %v2031_v36 = vadd.f32 %v2030_v14, %v1786_v18 }
 0x39d   :  { %v1790_v38 = vpop.f32.mrb[40].mxu0 }
 0x39e   :  { %v1791_v41 = vadd.f32 %v1790_v38, %v1438_v2  ;;  %v1792_v44 = vpop.f32.mrb[41].mxu0  ;;  %v2847_v48 = vpop.f32.mrb[90].mxu1  ;;  %v2205_v52 = vmul.f32 0.01, %v2031_v36  ;;  %vm2169_vm2 = vcmp.ge.f32.partialorder %v2031_v36, 0.0 }
 0x39f   :  { %v2050_v51 = vpop.f32.mrb[91].mxu1 }
 0x3a0   :  { %v2036_v53 = vadd.f32 %v2841_v10, %v1791_v41  ;;  %v4328_v5 = vsel %vm2169_vm2, %v2031_v36, %v2205_v52 }
 0x3a1   :  { %v1795_v43 = vpop.f32.mrb[42].mxu0 }
 0x3a2   :  { %vm2170_vm6 = vcmp.ge.f32.partialorder %v2036_v53, 0.0  ;;  %v2206_v47 = vmul.f32 0.01, %v2036_v53  ;;  %v1796_v57 = vadd.f32 %v1795_v43, %v1443_v31  ;;  %v1797_v58 = vpop.f32.mrb[43].mxu0  ;;  %v2850_v59 = vpop.f32.mrb[92].mxu1 }
 0x3a3   :  { %v2060_v4 = vpop.f32.mrb[93].mxu1  ;;  %v1453_v31 = vpop.permute.xlu0 %1452 }
 0x3a4   :  { %v4330_v7 = vsel %vm2170_vm6, %v2036_v53, %v2206_v47  ;;  %v2041_v2 = vadd.f32 %v2040_v33, %v1796_v57  ;;  %v1458_v47 = vpop.permute.xlu1 %1457 }
 0x3a5   :  { %v1800_v8 = vpop.f32.mrb[44].mxu0 }
 0x3a6   :  { %v1801_v14 = vadd.f32 %v1800_v8, %v1448_v55  ;;  %v1802_v61 = vpop.f32.mrb[45].mxu0  ;;  %v4334_v15 = vpop.f32.mrb[94].mxu1  ;;  %v2207_v18 = vmul.f32 0.01, %v2041_v2  ;;  %vm2171_vm8 = vcmp.ge.f32.partialorder %v2041_v2, 0.0 }
 0x3a7   :  { %v2070_v17 = vpop.f32.mrb[95].mxu1  ;;  %v4378_v3 = vpop.permute.xlu0 %1542 }
 0x3a8   :  { %v2046_v19 = vadd.f32 %v2844_v24, %v1801_v14  ;;  %v4342_v53 = vsel %vm2171_vm8, %v2041_v2, %v2207_v18 }
 0x3a9   :  { %v1805_v36 = vpop.f32.mrb[46].mxu0 }
 0x3aa   :  { %vm2172_vm9 = vcmp.ge.f32.partialorder %v2046_v19, 0.0  ;;  %v2208_v38 = vmul.f32 0.01, %v2046_v19  ;;  %v1806_v41 = vadd.f32 %v1805_v36, %v1453_v31  ;;  %v1807_v33 = vpop.f32.mrb[47].mxu0  ;;  %v4338_v44 = vpop.f32.mrb[96].mxu1 }
 0x3ab   :  { %v4340_v52 = vpop.f32.mrb[97].mxu1 }
 0x3ac   :  { %v4344_v55 = vsel %vm2172_vm9, %v2046_v19, %v2208_v38  ;;  %v2051_v43 = vadd.f32 %v2050_v51, %v1806_v41 }
 0x3ad   :  { %v1810_v57 = vpop.f32.mrb[48].mxu0 }
 0x3ae   :  { %v1811_v58 = vadd.f32 %v1810_v57, %v1458_v47  ;;  %v1812_v8 = vpop.f32.mrb[49].mxu0  ;;  %v4348_v14 = vpop.f32.mrb[98].mxu1  ;;  %v2209_v31 = vmul.f32 0.01, %v2051_v43  ;;  %vm2173_vm11 = vcmp.ge.f32.partialorder %v2051_v43, 0.0 }
 0x3af   :  { %v4350_v61 = vpop.f32.mrb[99].mxu1 }
 0x3b0   :  { %v2056_v36 = vadd.f32 %v2847_v48, %v1811_v58  ;;  %v4357_v41 = vsel %vm2173_vm11, %v2051_v43, %v2209_v31 }
 0x3b1   :  { %v1815_v33 = vpop.f32.mrb[50].mxu0 }
 0x3b2   :  { %vm2174_vm12 = vcmp.ge.f32.partialorder %v2056_v36, 0.0  ;;  %v2210_v2 = vmul.f32 0.01, %v2056_v36  ;;  %v1816_v18 = vadd.f32 %v1815_v33, %v4259_v21  ;;  %v1817_v51 = vpop.f32.mrb[51].mxu0  ;;  %v4353_v19 = vpop.f32.mrb[100].mxu1 }
 0x3b3   :  { %v4355_v38 = vpop.f32.mrb[101].mxu1 }
 0x3b4   :  { %v4359_v47 = vsel %vm2174_vm12, %v2056_v36, %v2210_v2  ;;  %v2061_v57 = vadd.f32 %v2060_v4, %v1816_v18 }
 0x3b5   :  { %v1820_v8 = vpop.f32.mrb[52].mxu0 }
 0x3b6   :  { %v1821_v58 = vadd.f32 %v1820_v8, %v4261_v22  ;;  %v1822_v60 = vpop.f32.mrb[53].mxu0  ;;  %v4364_v62 = vpop.f32.mrb[102].mxu1  ;;  %v2211_v33 = vmul.f32 0.01, %v2061_v57  ;;  %vm2175_vm13 = vcmp.ge.f32.partialorder %v2061_v57, 0.0 }
 0x3b7   :  { %v4366_v21 = vpop.f32.mrb[103].mxu1  ;;  %v4373_v8 = vpop.permute.xlu1 %1547 }
 0x3b8   :  { %v2066_v51 = vadd.f32 %v2850_v59, %v1821_v58  ;;  %v2247_v22 = vsel %vm2175_vm13, %v2061_v57, %v2211_v33 }
 0x3b9   :  { %v1825_v24 = vpop.f32.mrb[54].mxu0 }
 0x3ba   :  { %vm2176_vm14 = vcmp.ge.f32.partialorder %v2066_v51, 0.0  ;;  %v2212_v43 = vmul.f32 0.01, %v2066_v51  ;;  %v1826_v31 = vadd.f32 %v1825_v24, %v4263_v25  ;;  %v1827_v4 = vpop.f32.mrb[55].mxu0  ;;  %v4369_v36 = vpop.f32.mrb[104].mxu1 }
 0x3bb   :  { %v4371_v2 = vpop.f32.mrb[105].mxu1 }
 0x3bc   :  { %v2071_v18 = vadd.f32 %v2070_v17, %v1826_v31  ;;  %v2248_v60 = vsel %vm2176_vm14, %v2066_v51, %v2212_v43 }
 0x3bd   :  { %v1830_v48 = vpop.f32.mrb[56].mxu0  ;;  %v3032_v10 = vpack.c.bf16 %v2248_v60, %v2247_v22  ;;  %v1553_v22 = vpop.permute.xlu0 %1552 }
 0x3be   :  { %v1831_v59 = vadd.f32 %v1830_v48, %v4265_v26  ;;  %v1832_v58 = vpop.f32.mrb[57].mxu0  ;;  %v4376_v40 = vpop.f32.mrb[106].mxu1  ;;  %v2213_v24 = vmul.f32 0.01, %v2071_v18  ;;  %vm2177_vm15 = vcmp.ge.f32.partialorder %v2071_v18, 0.0  ;;  %v1906_v60 = vadd.f32 %v4271_v34, %v1553_v22 }
 0x3bf   :  { %3033 = vmatprep.subr.bf16.mxu1 %v3032_v10  ;;  %v4380_v25 = vpop.f32.mrb[107].mxu1  ;;  %v1558_v10 = vpop.permute.xlu1 %1557 }
 0x3c0   :  { %v2076_v4 = vadd.f32 %v4334_v15, %v1831_v59  ;;  %3035 = vmatpush3.bf16.msra.mxu1 %v3034_v12  ;;  %v2249_v31 = vsel %vm2177_vm15, %v2071_v18, %v2213_v24  ;;  %v1911_v6 = vadd.f32 %v4275_v39, %v1558_v10  ;;  %v4536_v18 = vpack.c.bf16 %v4296_v23, %v4298_v28 }
 0x3c1   :  { %v1835_v17 = vpop.f32.mrb[58].mxu0 }
 0x3c2   :  { %vm2178_vm0 = vcmp.ge.f32.partialorder %v2076_v4, 0.0  ;;  %v2214_v57 = vmul.f32 0.01, %v2076_v4  ;;  %v1836_v26 = vadd.f32 %v1835_v17, %v4267_v29  ;;  %v1837_v48 = vpop.f32.mrb[59].mxu0  ;;  %v4387_v33 = vpop.f32.mrb[108].mxu1 }
 0x3c3   :  { %v4389_v51 = vpop.f32.mrb[109].mxu1 }
 0x3c4   :  { %v2081_v43 = vadd.f32 %v4340_v52, %v1836_v26  ;;  %v2250_v15 = vsel %vm2178_vm0, %v2076_v4, %v2214_v57 }
 0x3c5   :  { %v1840_v9 = vpop.f32.mrb[60].mxu0  ;;  %v3036_v12 = vpack.c.bf16 %v2250_v15, %v2249_v31 }
 0x3c6   :  { %v1841_v59 = vadd.f32 %v1840_v9, %v4269_v30  ;;  %v1842_v29 = vpop.f32.mrb[61].mxu0  ;;  %v2877_v58 = vpop.f32.mrb[110].mxu1  ;;  %v2215_v54 = vmul.f32 0.01, %v2081_v43  ;;  %vm2179_vm1 = vcmp.ge.f32.partialorder %v2081_v43, 0.0 }
 0x3c7   :  { %v2156_v17 = vadd.f32 %v2877_v58, %v1911_v6  ;;  %v2150_v48 = vpop.f32.mrb[111].mxu1  ;;  %3037 = vmatprep.subr.bf16.mxu1 %v3036_v12 }
 0x3c8   :  { %v2086_v32 = vadd.f32 %v4338_v44, %v1841_v59  ;;  %v2151_v52 = vadd.f32 %v2150_v48, %v1906_v60  ;;  %3039 = vmatpush3.bf16.msra.mxu1 %v4536_v18  ;;  %v2251_v44 = vsel %vm2179_vm1, %v2081_v43, %v2215_v54 }
 0x3c9   :  { %vm2194_vm3 = vcmp.ge.f32.partialorder %v2156_v17, 0.0  ;;  %v2230_v39 = vmul.f32 0.01, %v2156_v17  ;;  %v1845_v24 = vpop.f32.mrb[62].mxu0 }
 0x3ca   :  { %vm2180_vm4 = vcmp.ge.f32.partialorder %v2086_v32, 0.0  ;;  %v2216_v34 = vmul.f32 0.01, %v2086_v32  ;;  %vm2193_vm5 = vcmp.ge.f32.partialorder %v2151_v52, 0.0  ;;  %v2229_v30 = vmul.f32 0.01, %v2151_v52 }
 0x3cb   :  { %v4399_v4 = vsel %vm2194_vm3, %v2156_v17, %v2230_v39  ;;  %v1846_v57 = vadd.f32 %v1845_v24, %v4273_v37  ;;  %v1847_v26 = vpop.f32.mrb[63].mxu0  ;;  %v4537_v37 = vpack.c.bf16 %v4304_v46, %v4306_v49  ;;  %v4538_v49 = vpack.c.bf16 %v4310_v63, %v4312_v0 }
 0x3cc   :  { %v4402_v10 = vsel %vm2193_vm5, %v2151_v52, %v2229_v30  ;;  %v2252_v31 = vsel %vm2180_vm4, %v2086_v32, %v2216_v34  ;;  %v4539_v0 = vpack.c.bf16 %v4322_v11, %v4320_v35  ;;  %v4540_v11 = vpack.c.bf16 %v4330_v7, %v4328_v5 }
 0x3cd   :  { %v3068_v23 = vpack.c.bf16 %v4399_v4, %v4402_v10  ;;  %v2091_v28 = vadd.f32 %v4350_v61, %v1846_v57  ;;  %v1850_v15 = vpop.f32.mrb[64].mxu0  ;;  %v3040_v22 = vpack.c.bf16 %v2252_v31, %v2251_v44  ;;  %v4541_v7 = vpack.c.bf16 %v4344_v55, %v4342_v53  ;;  %v2272_v4 = vld [vmem:[%s4529_s7 + $0x28] sm:$0xff]  ;;  %v2279_v10 = vld [vmem:[%s4529_s7 + $0x60] sm:$0xf] }
 0x3ce   :  { %v1851_v6 = vadd.f32 %v1850_v15, %v4277_v42  ;;  %v1852_v9 = vpop.f32.mrb[65].mxu0  ;;  %v4542_v55 = vpack.c.bf16 %v4359_v47, %v4357_v41  ;;  %v2270_v41 = vld [vmem:[%s4529_s7 + $0x18] sm:$0xff] }
 0x3cf   :  { %3041 = vmatprep.subr.bf16.mxu1 %v3040_v22  ;;  %v2217_v12 = vmul.f32 0.01, %v2091_v28  ;;  %vm2181_vm2 = vcmp.ge.f32.partialorder %v2091_v28, 0.0 }
 0x3d0   :  { %v2096_v60 = vadd.f32 %v4348_v14, %v1851_v6  ;;  %3043 = vmatpush3.bf16.msra.mxu1 %v4537_v37 }
 0x3d1   :  { %v1855_v32 = vpop.f32.mrb[66].mxu0  ;;  %v2253_v29 = vsel %vm2181_vm2, %v2091_v28, %v2217_v12 }
 0x3d2   :  { %vm2182_vm6 = vcmp.ge.f32.partialorder %v2096_v60, 0.0  ;;  %v2218_v54 = vmul.f32 0.01, %v2096_v60  ;;  %v1856_v43 = vadd.f32 %v1855_v32, %v4282_v50  ;;  %v1857_v61 = vpop.f32.mrb[67].mxu0 }
 0x3d4   :  { %v2101_v59 = vadd.f32 %v4355_v38, %v1856_v43  ;;  %v2254_v42 = vsel %vm2182_vm6, %v2096_v60, %v2218_v54 }
 0x3d5   :  { %v1860_v58 = vpop.f32.mrb[68].mxu0  ;;  %v3044_v17 = vpack.c.bf16 %v2254_v42, %v2253_v29 }
 0x3d6   :  { %v1861_v48 = vadd.f32 %v1860_v58, %v4284_v56  ;;  %v1862_v14 = vpop.f32.mrb[69].mxu0  ;;  %v2219_v52 = vmul.f32 0.01, %v2101_v59  ;;  %vm2183_vm8 = vcmp.ge.f32.partialorder %v2101_v59, 0.0 }
 0x3d7   :  { %3045 = vmatprep.subr.bf16.mxu1 %v3044_v17 }
 0x3d8   :  { %v2106_v46 = vadd.f32 %v4353_v19, %v1861_v48  ;;  %3047 = vmatpush3.bf16.msra.mxu1 %v4538_v49  ;;  %v2255_v34 = vsel %vm2183_vm8, %v2101_v59, %v2219_v52 }
 0x3d9   :  { %v1865_v50 = vpop.f32.mrb[70].mxu0 }
 0x3da   :  { %vm2184_vm9 = vcmp.ge.f32.partialorder %v2106_v46, 0.0  ;;  %v2220_v18 = vmul.f32 0.01, %v2106_v46  ;;  %v1866_v38 = vadd.f32 %v1865_v50, %v4294_v20  ;;  %v1867_v39 = vpop.f32.mrb[71].mxu0 }
 0x3db   :  { %v4543_v39 = vmov 0.0|0.0  }
 0x3dc   :  { %v2111_v24 = vadd.f32 %v4366_v21, %v1866_v38  ;;  %v2256_v56 = vsel %vm2184_vm9, %v2106_v46, %v2220_v18 }
 0x3dd   :  { %v1870_v30 = vpop.f32.mrb[72].mxu0  ;;  %v3048_v57 = vpack.c.bf16 %v2256_v56, %v2255_v34  ;;  %v2277_v34 = vld [vmem:[%s4529_s7 + $0x50] sm:$0xff] }
 0x3de   :  { %v1871_v26 = vadd.f32 %v1870_v30, %v4302_v45  ;;  %v1872_v19 = vpop.f32.mrb[73].mxu0  ;;  %v2221_v44 = vmul.f32 0.01, %v2111_v24  ;;  %vm2185_vm11 = vcmp.ge.f32.partialorder %v2111_v24, 0.0  ;;  %v2269_v56 = vld [vmem:[%s4529_s7 + $0x10] sm:$0xff]  ;;  %v2276_v30 = vld [vmem:[%s4529_s7 + $0x48] sm:$0xff] }
 0x3df   :  { %3049 = vmatprep.subr.bf16.mxu1 %v3048_v57  ;;  %v2280_v57 = vld [vmem:[%s4529_s7 + $0x68] sm:$0xf]  ;;  %v2278_v19 = vld [vmem:[%s4529_s7 + $0x58] sm:$0xff] }
 0x3e0   :  { %v2116_v63 = vadd.f32 %v4364_v62, %v1871_v26  ;;  %3051 = vmatpush3.bf16.msra.mxu1 %v4539_v0  ;;  %v2257_v22 = vsel %vm2185_vm11, %v2111_v24, %v2221_v44  ;;  %v2273_v24 = vld [vmem:[%s4529_s7 + $0x30] sm:$0xff]  ;;  %v4544_v26 = vmov 0.0  }
 0x3e1   :  { %v1875_v20 = vpop.f32.mrb[74].mxu0  ;;  %v2281_v44 = vld [vmem:[%s4529_s7 + $0x70] sm:$0xf] }
 0x3e2   :  { %vm2186_vm12 = vcmp.ge.f32.partialorder %v2116_v63, 0.0  ;;  %v2222_v31 = vmul.f32 0.01, %v2116_v63  ;;  %v1876_v21 = vadd.f32 %v1875_v20, %v4316_v13  ;;  %v1877_v28 = vpop.f32.mrb[75].mxu0 }
 0x3e4   :  { %v2121_v15 = vadd.f32 %v4371_v2, %v1876_v21  ;;  %v2258_v45 = vsel %vm2186_vm12, %v2116_v63, %v2222_v31 }
 0x3e5   :  { %v1880_v6 = vpop.f32.mrb[76].mxu0  ;;  %v3052_v9 = vpack.c.bf16 %v2258_v45, %v2257_v22  ;;  %v2290_v22 = vpop.permute.xlu0 %2289 }
 0x3e6   :  { %v1881_v12 = vadd.f32 %v1880_v6, %v4318_v27  ;;  %v1882_v62 = vpop.f32.mrb[77].mxu0  ;;  %v2223_v60 = vmul.f32 0.01, %v2121_v15  ;;  %vm2187_vm13 = vcmp.ge.f32.partialorder %v2121_v15, 0.0 }
 0x3e7   :  { %3053 = vmatprep.subr.bf16.mxu1 %v3052_v9 }
 0x3e8   :  { %v2126_v35 = vadd.f32 %v4369_v36, %v1881_v12  ;;  %3055 = vmatpush3.bf16.msra.mxu1 %v4540_v11  ;;  %v2259_v43 = vsel %vm2187_vm13, %v2121_v15, %v2223_v60  ;;  %v2295_v11 = vpop.permute.xlu1 %2294 }
 0x3e9   :  { %v1885_v13 = vpop.f32.mrb[78].mxu0 }
 0x3ea   :  { %vm2188_vm14 = vcmp.ge.f32.partialorder %v2126_v35, 0.0  ;;  %v2224_v37 = vmul.f32 0.01, %v2126_v35  ;;  %v1886_v2 = vadd.f32 %v1885_v13, %v4326_v1  ;;  %v1887_v32 = vpop.f32.mrb[79].mxu0 }
 0x3ec   :  { %v2131_v54 = vadd.f32 %v4380_v25, %v1886_v2  ;;  %v2260_v27 = vsel %vm2188_vm14, %v2126_v35, %v2224_v37 }
 0x3ed   :  { %v1890_v61 = vpop.f32.mrb[80].mxu0  ;;  %v3056_v59 = vpack.c.bf16 %v2260_v27, %v2259_v43 }
 0x3ee   :  { %v1891_v29 = vadd.f32 %v1890_v61, %v4336_v16  ;;  %v1892_v36 = vpop.f32.mrb[81].mxu0  ;;  %v2225_v42 = vmul.f32 0.01, %v2131_v54  ;;  %vm2189_vm15 = vcmp.ge.f32.partialorder %v2131_v54, 0.0  ;;  %v2300_v61 = vpop.permute.xlu0 %2299 }
 0x3ef   :  { %3057 = vmatprep.subr.bf16.mxu1 %v3056_v59 }
 0x3f0   :  { %v2136_v5 = vadd.f32 %v4376_v40, %v1891_v29  ;;  %3059 = vmatpush3.bf16.msra.mxu1 %v4541_v7  ;;  %v2261_v14 = vsel %vm2189_vm15, %v2131_v54, %v2225_v42 }
 0x3f1   :  { %v1895_v1 = vpop.f32.mrb[82].mxu0 }
 0x3f2   :  { %vm2190_vm0 = vcmp.ge.f32.partialorder %v2136_v5, 0.0  ;;  %v2226_v58 = vmul.f32 0.01, %v2136_v5  ;;  %v1896_v25 = vadd.f32 %v1895_v1, %v4378_v3  ;;  %v1897_v17 = vpop.f32.mrb[83].mxu0  ;;  %v2267_v3 = vld [vmem:[%s4529_s7] sm:$0xff]  ;;  %v2305_v1 = vpop.permute.xlu1 %2304 }
 0x3f4   :  { %v2141_v48 = vadd.f32 %v4389_v51, %v1896_v25  ;;  %v2262_v16 = vsel %vm2190_vm0, %v2136_v5, %v2226_v58  ;;  %v2271_v51 = vld [vmem:[%s4529_s7 + $0x20] sm:$0xff] }
 0x3f5   :  { %v1900_v52 = vpop.f32.mrb[84].mxu0  ;;  %v3060_v46 = vpack.c.bf16 %v2262_v16, %v2261_v14  ;;  %v2310_v14 = vpop.permute.xlu0 %2309 }
 0x3f6   :  { %v1901_v49 = vadd.f32 %v1900_v52, %v4373_v8  ;;  %v1902_v40 = vpop.f32.mrb[85].mxu0  ;;  %v2227_v50 = vmul.f32 0.01, %v2141_v48  ;;  %vm2191_vm1 = vcmp.ge.f32.partialorder %v2141_v48, 0.0 }
 0x3f7   :  { %3061 = vmatprep.subr.bf16.mxu1 %v3060_v46 }
 0x3f8   :  { %v2146_v53 = vadd.f32 %v4387_v33, %v1901_v49  ;;  %3063 = vmatpush3.bf16.msra.mxu1 %v4542_v55  ;;  %v2263_v18 = vsel %vm2191_vm1, %v2141_v48, %v2227_v50  ;;  %v2274_v33 = vld [vmem:[%s4529_s7 + $0x38] sm:$0xff] }
 0x3fa   :  { %vm2192_vm3 = vcmp.ge.f32.partialorder %v2146_v53, 0.0  ;;  %v2228_v8 = vmul.f32 0.01, %v2146_v53 }
 0x3fb   :  { %2392 = vmatmul.mubr.f32.vlgmr.msra.gmra.mrb[112].mxu1 %v2267_v3 }
 0x3fc   :  { %v2264_v38 = vsel %vm2192_vm3, %v2146_v53, %v2228_v8  ;;  %2396 = vmatprep.mubr.f32.mxu1 %v2271_v51 }
 0x3fd   :  { %v3065_v47 = vpack.c.bf16 %v2264_v38, %v2263_v18 }
 0x3ff   :  { %2397 = vmatmul.mubr.f32.gmra.mrb[114].mxu1 %v2270_v41  ;;  %3066 = vmatpush3.bf16.msra.mxu0 %v3065_v47 }
 0x400   :  { %2401 = vmatprep.mubr.f32.mxu1 %v2274_v33  ;;  %3067 = vmatprep.subr.bf16.mxu0 %v4543_v39 }
 0x403   :  { %2402 = vmatmul.mubr.f32.gmra.mrb[116].mxu1 %v2273_v24  ;;  %3069 = vmatpush3.bf16.msra.mxu0 %v3068_v23  ;;  %v2275_v23 = vld [vmem:[%s4529_s7 + $0x40] sm:$0xff] }
 0x404   :  { %2406 = vmatprep.mubr.f32.mxu1 %v2277_v34 }
 0x406   :  { %2887 = vmatmul.mubr.msk.f32.vlgmr.msra.gmra.mrb[86].mxu0 %vm1560_vm7, %v2269_v56 }
 0x407   :  { %2407 = vmatmul.mubr.f32.gmra.mrb[118].mxu1 %v2276_v30  ;;  %2889 = vmatprep.mubr.msk.f32.mxu0 %vm3110_vm10, %v4544_v26 }
 0x408   :  { %2411 = vmatprep.mubr.f32.mxu1 %v2280_v57 }
 0x40a   :  { %2890 = vmatmul.mubr.msk.f32.gmra.mrb[88].mxu0 %vm1560_vm7, %v2272_v4 }
 0x40b   :  { %2412 = vmatmul.mubr.f32.gmra.mrb[120].mxu1 %v2279_v10  ;;  %2892 = vmatprep.mubr.msk.f32.mxu0 %vm3110_vm10, %v4544_v26 }
 0x40e   :  { %2893 = vmatmul.mubr.msk.f32.gmra.mrb[90].mxu0 %vm1560_vm7, %v2275_v23 }
 0x40f   :  { %2895 = vmatprep.mubr.msk.f32.mxu0 %vm3110_vm10, %v4544_v26 }
 0x412   :  { %2896 = vmatmul.mubr.msk.f32.gmra.mrb[92].mxu0 %vm1560_vm7, %v2278_v19 }
 0x413   :  { %2898 = vmatprep.mubr.msk.f32.mxu0 %vm3110_vm10, %v4544_v26 }
 0x416   :  { %2899 = vmatmul.mubr.msk.f32.gmra.mrb[94].mxu0 %vm1560_vm7, %v2281_v44 }
 0x4ce   :  { %v2733_v63 = vpop.f32.mrb[112].mxu1 }
 0x4cf   :  { %v2734_v0 = vpop.f32.mrb[113].mxu1 }
 0x4d0   :  { %v2735_v20 = vadd.f32 %v2734_v0, %v2733_v63 }
 0x4d2   :  { %v2736_v31 = vpop.f32.mrb[114].mxu1  ;;  %v2394_v9 = vadd.f32 %v2735_v20, %v2290_v22 }
 0x4d3   :  { %v2737_v21 = vpop.f32.mrb[115].mxu1 }
 0x4d4   :  { %v2738_v28 = vadd.f32 %v2737_v21, %v2736_v31 }
 0x4d6   :  { %v2739_v15 = vpop.f32.mrb[116].mxu1  ;;  %v2399_v2 = vadd.f32 %v2738_v28, %v2295_v11 }
 0x4d7   :  { %v2740_v45 = vpop.f32.mrb[117].mxu1 }
 0x4d8   :  { %v2741_v6 = vadd.f32 %v2740_v45, %v2739_v15 }
 0x4d9   :  { %v2483_v12 = vpop.f32.mrb[86].mxu0 }
 0x4da   :  { %v2484_v62 = vadd.f32 %v2483_v12, %v2394_v9  ;;  %v2742_v60 = vpop.f32.mrb[118].mxu1  ;;  %v2888_v35 = vpop.f32.mrb[87].mxu0  ;;  %v2404_v36 = vadd.f32 %v2741_v6, %v2300_v61 }
 0x4db   :  { %v2743_v13 = vpop.f32.mrb[119].mxu1 }
 0x4dc   :  { %2507 = vst [vmem:[%s4530_s9] sm:$0xff] %v2484_v62  ;;  %v2744_v37 = vadd.f32 %v2743_v13, %v2742_v60 }
 0x4dd   :  { %v2488_v32 = vpop.f32.mrb[88].mxu0 }
 0x4de   :  { %v2489_v54 = vadd.f32 %v2488_v32, %v2399_v2  ;;  %v2745_v43 = vpop.f32.mrb[120].mxu1  ;;  %v2891_v27 = vpop.f32.mrb[89].mxu0  ;;  %v2409_v58 = vadd.f32 %v2744_v37, %v2305_v1 }
 0x4df   :  { %v2746_v59 = vpop.f32.mrb[121].mxu1 }
 0x4e0   :  { %2508 = vst [vmem:[%s4530_s9 + $0x8] sm:$0xff] %v2489_v54  ;;  %v2747_v29 = vadd.f32 %v2746_v59, %v2745_v43 }
 0x4e1   :  { %v2493_v42 = vpop.f32.mrb[90].mxu0 }
 0x4e2   :  { %v2494_v5 = vadd.f32 %v2493_v42, %v2404_v36  ;;  %v2894_v7 = vpop.f32.mrb[91].mxu0  ;;  %v2414_v16 = vadd.f32 %v2747_v29, %v2310_v14 }
 0x4e4   :  { %2509 = vst [vmem:[%s4530_s9 + $0x10] sm:$0xff] %v2494_v5 }
 0x4e5   :  { %v2498_v25 = vpop.f32.mrb[92].mxu0 }
 0x4e6   :  { %v2499_v17 = vadd.f32 %v2498_v25, %v2409_v58  ;;  %v2897_v48 = vpop.f32.mrb[93].mxu0 }
 0x4e8   :  { %2510 = vst [vmem:[%s4530_s9 + $0x18] sm:$0xff] %v2499_v17 }
 0x4e9   :  { %v2503_v52 = vpop.f32.mrb[94].mxu0 }
 0x4ea   :  { %v2504_v46 = vadd.f32 %v2503_v52, %v2414_v16  ;;  %v2900_v49 = vpop.f32.mrb[95].mxu0 }
 0x4ec   :  { %2511 = vst [vmem:[%s4530_s9 + $0x20] sm:$0xf] %v2504_v46 }

</bundles_post_ra>
